<compile_context>
chip_gen: v7x
topology: tpu7x:2x2x1
jax: 0.10.0
libtpu: 0.0.40
codegen_flags: <defaults>
</compile_context>

<pallas_src>
import math
import functools

import numpy as np
import jax
import jax.numpy as jnp
from jax.experimental import pallas as pl
from jax.experimental.pallas import tpu as pltpu


# --------------------------------------------------------------------------- kernels


def _project(x_ref, w, b_row):
    """(bblk, s, d) @ (d, d_out) + bias, f32 accumulation -> (bblk, s, d_out)."""
    bblk, s, d = x_ref.shape
    d_out = w.shape[-1]
    f32 = jnp.float32
    if s % 8 == 0:
        # Sublane-aligned -> the reshape is a free view; bblk*s rows fill the MXU.
        y = jnp.dot(x_ref[...].reshape(bblk * s, d), w,
                    preferred_element_type=f32) + b_row
        return y.reshape(bblk, s, d_out)
    # TODO(synk): non-8-aligned S -- keep the projection 3-D (or pad S wrapper-side)
    #             to avoid a Mosaic relayout copy of the whole slab every grid step.
    return jnp.einsum('bsd,de->bse', x_ref[...], w,
                      preferred_element_type=f32) + b_row


def _attend(q3, k3, v3f, wo_ref, bo_ref, o_ref, *, h, approx_recip):
    """Attention over one (bblk, s, d) slab; writes the (bblk, d) output block.

    q3/k3 carry the MXU operand dtype (wq/bq already include 1/sqrt(d_k));
    v3f stays f32 so the per-head weighted sum is exact VPU math on every TPU gen.
    """
    bblk, s, d = q3.shape
    d_k = d // h
    f32 = jnp.float32
    cdt = wo_ref.dtype

    ctx_parts = []
    for j in range(h):                                   # h is small and static
        sl = slice(j * d_k, (j + 1) * d_k)
        # Transposed scores: k index on sublanes, q index on lanes.  Softmax stats are
        # then sublane-direction reductions and the column-sum matmul below comes out
        # already laid out for the lane-wise PV weighted sum (no relayouts).
        scores_t = jnp.einsum('bkd,bqd->bkq', k3[:, :, sl], q3[:, :, sl],
                              preferred_element_type=f32)        # (bblk, s_k, s_q)
        m = jnp.max(scores_t, axis=1, keepdims=True)             # (bblk, 1, s_q)
        e = jnp.exp(scores_t - m)                                # unnormalized softmax
        denom = jnp.sum(e, axis=1, keepdims=True)                # (bblk, 1, s_q)
        r = pl.reciprocal(denom, approx=approx_recip)            # per-query 1/sum

        # Fold the normalization into the query-axis reduction on the MXU:
        #   colw[b, k] = sum_q e[b, k, q] * r[b, q]   (== column sums of softmax p)
        # matmul(p, v).sum(queries) == colw @ v, so p itself is never materialized.
        colw = jnp.einsum('bkq,biq->bki', e, r,
                          preferred_element_type=f32)            # (bblk, s_k, 1)

        # (sum_q p) @ v for this head as a lane-broadcast VPU multiply + cross-sublane
        # reduce -- result lands directly in the head's d_k lanes (no M=1 MXU matmul,
        # no masked VMEM store).
        ctx_parts.append(jnp.sum(colw * v3f[:, :, sl], axis=1))  # (bblk, d_k) f32
        # TODO(synk): nn.Dropout(p=0.1) on p_attn is identity here (eval/inference).

    ctx = jnp.concatenate(ctx_parts, axis=-1)                    # (bblk, d) lane-dense
    out = jnp.dot(ctx.astype(cdt), wo_ref[...],
                  preferred_element_type=f32) + bo_ref[...]
    o_ref[...] = out.astype(o_ref.dtype)


def _mha_kernel(q_ref, k_ref, v_ref, w_ref, wo_ref, b_ref, bo_ref, o_ref, *,
                h, approx_recip):
    """Cross-attention path: three projections from a stacked (3, D, D) weight."""
    d = q_ref.shape[-1]
    cdt = w_ref.dtype
    q3 = _project(q_ref, w_ref[0], b_ref[0:1, :]).astype(cdt)   # wq/bq pre-scaled
    k3 = _project(k_ref, w_ref[1], b_ref[1:2, :]).astype(cdt)
    v3f = _project(v_ref, w_ref[2], b_ref[2:3, :])              # keep f32
    _attend(q3, k3, v3f, wo_ref, bo_ref, o_ref, h=h, approx_recip=approx_recip)


def _mha_kernel_fused(x_ref, wqkv_ref, wo_ref, bqkv_ref, bo_ref, o_ref, *,
                      h, approx_recip):
    """Self-attention path: one fused (Bblk*S, D) @ (D, 3D) QKV projection."""
    d = x_ref.shape[-1]
    cdt = wqkv_ref.dtype
    y3 = _project(x_ref, wqkv_ref[...], bqkv_ref[...])          # (bblk, s, 3d) f32
    q3 = y3[:, :, 0:d].astype(cdt)
    k3 = y3[:, :, d:2 * d].astype(cdt)
    v3f = y3[:, :, 2 * d:3 * d]
    _attend(q3, k3, v3f, wo_ref, bo_ref, o_ref, h=h, approx_recip=approx_recip)


# --------------------------------------------------------------------------- wrapper


def _const_spec(shape, single_buffer):
    """BlockSpec for a grid-invariant operand; optionally single-buffered."""
    index_map = lambda b: (0,) * len(shape)
    if single_buffer:
        # Constant index_map -> one buffer is enough; frees VMEM (matters on v7x).
        return pl.BlockSpec(shape, index_map, pipeline_mode=pl.Buffered(1))
    return pl.BlockSpec(shape, index_map)


def _pick_batch_block(B, S, D, requested, itemsize, *, target_rows=512,
                      vmem_budget=32 * 1024 * 1024):
    """Pick bblk: 8-aligned divisor of B, >=2 grid steps when possible (v7x has 2 TCs),
    conservative VMEM fit (v7x: 64 MiB physical), ~target_rows projection rows/step
    (512 for the 256-wide v6e/v7x MXU; v5e's 128-wide MXU is happy with less)."""
    if requested is not None:
        bb = max(1, min(int(requested), B))
        while B % bb or (bb % 8 and bb != B):
            bb -= 1
            if bb == 0:
                return B
        return bb

    def vmem_est(bb):
        return (3 * 2 * bb * S * D * itemsize   # double-buffered q/k/v input blocks
                + 3 * bb * S * D * 4            # q3/k3/v3 in f32
                + 2 * bb * S * S * 4            # one head's scores + exp tile (f32)
                + 2 * bb * D * 4)               # context + output block

    divisors = [x for x in range(1, B + 1) if B % x == 0]
    aligned = [x for x in divisors if x % 8 == 0 or x == B]    # (8,128) output rule
    multi_step = [x for x in aligned if B // x >= 2]           # feed both v7x TCs
    pool = multi_step or aligned
    fits = [x for x in pool if vmem_est(x) <= vmem_budget]
    pool = fits or [min(pool)]
    want = max(1, target_rows // max(S, 1))
    under = [x for x in pool if x <= want]
    return max(under) if under else min(pool)


def multi_headed_attention(query, key, value, params, *, h, batch_block=None,
                           compute_dtype=None, approx_recip=False,
                           vmem_limit_bytes=48 * 1024 * 1024,
                           single_buffer_weights=True):
    """Pallas TPU forward for MultiHeadedAttention (mask=None, eval mode).

    compute_dtype: MXU operand dtype; pass jnp.bfloat16 on v6e/v7x (f32 accumulation,
    f32 softmax).  Keep the default (input dtype) on v5e for elementwise math.
    """
    B, S, D = query.shape
    assert D % h == 0
    d_k = D // h
    Wq, bq, Wk, bk, Wv, bv, Wo, bo = params              # PyTorch-style W: (D_out, D_in)

    cdt = jnp.dtype(compute_dtype) if compute_dtype is not None else jnp.dtype(query.dtype)
    scale = 1.0 / math.sqrt(d_k)

    # Pre-transpose to (D_in, D_out); fold the 1/sqrt(d_k) score scale into the query
    # projection (weight and bias) so the kernel never rescales score tiles.
    wq_t = (Wq.T * scale).astype(cdt)
    wk_t = Wk.T.astype(cdt)
    wv_t = Wv.T.astype(cdt)
    # Kernel flattens context head-major (j*d_k + d); PyTorch flattens d_k-major
    # (d*h + j).  Permute Wo^T's input rows host-side with a static numpy index.
    perm = (np.arange(d_k)[None, :] * h + np.arange(h)[:, None]).reshape(-1)
    wo_t = Wo.T[perm, :].astype(cdt)
    bo_row = bo.reshape(1, D).astype(jnp.float32)

    self_attn = (query is key) and (key is value)

    bblk = _pick_batch_block(B, S, D, batch_block, np.dtype(cdt).itemsize)
    grid = (B // bblk,)

    x_spec = pl.BlockSpec((bblk, S, D), lambda b: (b, 0, 0))
    out_spec = pl.BlockSpec((bblk, D), lambda b: (b, 0))
    cparams = pltpu.CompilerParams(dimension_semantics=("parallel",),
                                   vmem_limit_bytes=vmem_limit_bytes)

    def run(single_buffer):
        if self_attn:
            wqkv = jnp.concatenate([wq_t, wk_t, wv_t], axis=1)            # (D, 3D)
            bqkv = jnp.concatenate([bq * scale, bk, bv]).reshape(1, 3 * D)
            bqkv = bqkv.astype(jnp.float32)
            kernel = functools.partial(_mha_kernel_fused, h=h,
                                       approx_recip=approx_recip)
            in_specs = [x_spec,
                        _const_spec((D, 3 * D), single_buffer),
                        _const_spec((D, D), single_buffer),
                        _const_spec((1, 3 * D), single_buffer),
                        _const_spec((1, D), single_buffer)]
            args = (query.astype(cdt), wqkv, wo_t, bqkv, bo_row)
        else:
            w3 = jnp.stack([wq_t, wk_t, wv_t], axis=0)                    # (3, D, D)
            b3 = jnp.stack([bq * scale, bk, bv], axis=0).astype(jnp.float32)
            kernel = functools.partial(_mha_kernel, h=h,
                                       approx_recip=approx_recip)
            in_specs = [x_spec, x_spec, x_spec,
                        _const_spec((3, D, D), single_buffer),
                        _const_spec((D, D), single_buffer),
                        _const_spec((3, D), single_buffer),
                        _const_spec((1, D), single_buffer)]
            args = (query.astype(cdt), key.astype(cdt), value.astype(cdt),
                    w3, wo_t, b3, bo_row)
        return pl.pallas_call(
            kernel,
            out_shape=jax.ShapeDtypeStruct((B, D), query.dtype),
            grid=grid,
            in_specs=in_specs,
            out_specs=out_spec,
            compiler_params=cparams,
        )(*args)

    if single_buffer_weights:
        try:
            out2d = run(True)
        except Exception:
            # Older Pallas without BlockSpec pipeline_mode / Buffered(1) support.
            out2d = run(False)
    else:
        out2d = run(False)
    return out2d.reshape(B, 1, D)


# --------------------------------------------------------------------------- reference


def ref_forward(query, key, value, params, *, h):
    """Plain-JAX reference matching the PyTorch module (eval mode)."""
    B, S, D = query.shape
    d_k = D // h
    Wq, bq, Wk, bk, Wv, bv, Wo, bo = params

    def lin(x, W, b):
        return x @ W.T + b

    q = lin(query, Wq, bq).reshape(B, S, h, d_k).transpose(0, 2, 1, 3)
    k = lin(key, Wk, bk).reshape(B, S, h, d_k).transpose(0, 2, 1, 3)
    v = lin(value, Wv, bv).reshape(B, S, h, d_k).transpose(0, 2, 1, 3)
    scores = jnp.einsum("bhqd,bhkd->bhqk", q, k) / math.sqrt(d_k)
    p = jax.nn.softmax(scores, axis=-1)
    x = jnp.einsum("bhqk,bhkd->bhqd", p, v).sum(axis=2)       # (B, h, d_k)
    x = x.transpose(0, 2, 1).reshape(B, 1, h * d_k)           # d_k-major flatten
    return lin(x, Wo, bo)


def init_params(key, d_model):
    """Deterministic nn.Linear-style init (uniform +/- 1/sqrt(fan_in)) for 4 layers."""
    bound = 1.0 / math.sqrt(d_model)
    params = []
    for i in range(4):
        kw, kb = jax.random.split(jax.random.fold_in(key, i))
        W = jax.random.uniform(kw, (d_model, d_model), jnp.float32, -bound, bound)
        b = jax.random.uniform(kb, (d_model,), jnp.float32, -bound, bound)
        params += [W, b]
    return tuple(params)


if __name__ == "__main__":
    B, S, D, H = 16, 8, 32, 4

    root = jax.random.PRNGKey(0)
    kq, kk, kv, kp = jax.random.split(root, 4)
    query = jax.random.normal(kq, (B, S, D), jnp.float32)
    key_in = jax.random.normal(kk, (B, S, D), jnp.float32)
    value = jax.random.normal(kv, (B, S, D), jnp.float32)
    params = init_params(kp, D)

    # Cross-attention (distinct q/k/v), f32 path, auto batch block (8 -> 2 grid steps).
    ref = ref_forward(query, key_in, value, params, h=H)
    out = multi_headed_attention(query, key_in, value, params, h=H)
    out = jax.block_until_ready(out)
    assert out.shape == (B, 1, D), out.shape
    err = float(jnp.max(jnp.abs(out - ref)))
    assert err < 1e-3, err

    # Self-attention: exercises the fused (D, 3D) QKV projection path.
    ref_sa = ref_forward(query, query, query, params, h=H)
    out_sa = multi_headed_attention(query, query, query, params, h=H)
    out_sa = jax.block_until_ready(out_sa)
    err_sa = float(jnp.max(jnp.abs(out_sa - ref_sa)))
    assert err_sa < 1e-3, err_sa

    # bf16 MXU-operand path with approx reciprocal (v6e/v7x style) -- loose bound.
    out_bf = multi_headed_attention(query, key_in, value, params, h=H,
                                    compute_dtype=jnp.bfloat16, approx_recip=True)
    out_bf = jax.block_until_ready(out_bf)
    rel = float(jnp.max(jnp.abs(out_bf - ref)) / jnp.max(jnp.abs(ref)))
    assert rel < 0.1, rel

    print("KERNEL_OK")
</pallas_src>

<mosaic_0001>
module attributes {stable_mosaic.version = 11 : i64} {
  func.func @_mha_kernel(%arg0: i32, %arg1: memref<8x8x32xf32, #tpu.memory_space<vmem>>, %arg2: memref<8x8x32xf32, #tpu.memory_space<vmem>>, %arg3: memref<8x8x32xf32, #tpu.memory_space<vmem>>, %arg4: memref<3x32x32xf32, #tpu.memory_space<vmem>>, %arg5: memref<32x32xf32, #tpu.memory_space<vmem>>, %arg6: memref<3x32xf32, #tpu.memory_space<vmem>>, %arg7: memref<1x32xf32, #tpu.memory_space<vmem>>, %arg8: memref<8x32xf32, #tpu.memory_space<vmem>>) attributes {dimension_semantics = [#tpu.dimension_semantics<parallel>], iteration_bounds = array<i64: 2>, scalar_prefetch = 0 : i64, scratch_operands = 0 : i64, tpu.core_type = #tpu.core_type<tc>, window_params = [{transform_indices = @transform_0, window_bounds = array<i64: 8, 8, 32>}, {transform_indices = @transform_1, window_bounds = array<i64: 8, 8, 32>}, {transform_indices = @transform_2, window_bounds = array<i64: 8, 8, 32>}, {pipeline_mode = #tpu.pipeline_mode<synchronous>, transform_indices = @transform_3, window_bounds = array<i64: 3, 32, 32>}, {pipeline_mode = #tpu.pipeline_mode<synchronous>, transform_indices = @transform_4, window_bounds = array<i64: 32, 32>}, {pipeline_mode = #tpu.pipeline_mode<synchronous>, transform_indices = @transform_5, window_bounds = array<i64: 3, 32>}, {pipeline_mode = #tpu.pipeline_mode<synchronous>, transform_indices = @transform_6, window_bounds = array<i64: 1, 32>}, {transform_indices = @transform_7, window_bounds = array<i64: 8, 32>}]} {
    %c0 = arith.constant 0 : index
    %c0_0 = arith.constant 0 : index
    %c0_1 = arith.constant 0 : index
    %0 = vector.load %arg4[%c0, %c0_0, %c0_1] : memref<3x32x32xf32, #tpu.memory_space<vmem>>, vector<1x32x32xf32>
    %1 = vector.shape_cast %0 : vector<1x32x32xf32> to vector<32x32xf32>
    %c0_2 = arith.constant 0 : index
    %c0_3 = arith.constant 0 : index
    %2 = vector.load %arg6[%c0_2, %c0_3] : memref<3x32xf32, #tpu.memory_space<vmem>>, vector<1x32xf32>
    %c0_4 = arith.constant 0 : index
    %c0_5 = arith.constant 0 : index
    %c0_6 = arith.constant 0 : index
    %3 = vector.load %arg1[%c0_4, %c0_5, %c0_6] : memref<8x8x32xf32, #tpu.memory_space<vmem>>, vector<8x8x32xf32>
    %4 = vector.shape_cast %3 : vector<8x8x32xf32> to vector<64x32xf32>
    %cst = arith.constant dense<0.000000e+00> : vector<64x32xf32>
    %5 = tpu.matmul %4, %1, %cst {dimension_numbers = #tpu.dot_dimension_numbers<[1], [0], [0], [1], [0, 0, 1, 1], [], []>} : vector<64x32xf32>, vector<32x32xf32>, vector<64x32xf32> -> vector<64x32xf32>
    %6 = vector.broadcast %2 : vector<1x32xf32> to vector<64x32xf32>
    %7 = arith.addf %5, %6 : vector<64x32xf32>
    %8 = vector.shape_cast %7 : vector<64x32xf32> to vector<8x8x32xf32>
    %c1 = arith.constant 1 : index
    %c0_7 = arith.constant 0 : index
    %c0_8 = arith.constant 0 : index
    %9 = vector.load %arg4[%c1, %c0_7, %c0_8] : memref<3x32x32xf32, #tpu.memory_space<vmem>>, vector<1x32x32xf32>
    %10 = vector.shape_cast %9 : vector<1x32x32xf32> to vector<32x32xf32>
    %c1_9 = arith.constant 1 : index
    %c0_10 = arith.constant 0 : index
    %11 = vector.load %arg6[%c1_9, %c0_10] : memref<3x32xf32, #tpu.memory_space<vmem>>, vector<1x32xf32>
    %c0_11 = arith.constant 0 : index
    %c0_12 = arith.constant 0 : index
    %c0_13 = arith.constant 0 : index
    %12 = vector.load %arg2[%c0_11, %c0_12, %c0_13] : memref<8x8x32xf32, #tpu.memory_space<vmem>>, vector<8x8x32xf32>
    %13 = vector.shape_cast %12 : vector<8x8x32xf32> to vector<64x32xf32>
    %cst_14 = arith.constant dense<0.000000e+00> : vector<64x32xf32>
    %14 = tpu.matmul %13, %10, %cst_14 {dimension_numbers = #tpu.dot_dimension_numbers<[1], [0], [0], [1], [0, 0, 1, 1], [], []>} : vector<64x32xf32>, vector<32x32xf32>, vector<64x32xf32> -> vector<64x32xf32>
    %15 = vector.broadcast %11 : vector<1x32xf32> to vector<64x32xf32>
    %16 = arith.addf %14, %15 : vector<64x32xf32>
    %17 = vector.shape_cast %16 : vector<64x32xf32> to vector<8x8x32xf32>
    %c2 = arith.constant 2 : index
    %c0_15 = arith.constant 0 : index
    %c0_16 = arith.constant 0 : index
    %18 = vector.load %arg4[%c2, %c0_15, %c0_16] : memref<3x32x32xf32, #tpu.memory_space<vmem>>, vector<1x32x32xf32>
    %19 = vector.shape_cast %18 : vector<1x32x32xf32> to vector<32x32xf32>
    %c2_17 = arith.constant 2 : index
    %c0_18 = arith.constant 0 : index
    %20 = vector.load %arg6[%c2_17, %c0_18] : memref<3x32xf32, #tpu.memory_space<vmem>>, vector<1x32xf32>
    %c0_19 = arith.constant 0 : index
    %c0_20 = arith.constant 0 : index
    %c0_21 = arith.constant 0 : index
    %21 = vector.load %arg3[%c0_19, %c0_20, %c0_21] : memref<8x8x32xf32, #tpu.memory_space<vmem>>, vector<8x8x32xf32>
    %22 = vector.shape_cast %21 : vector<8x8x32xf32> to vector<64x32xf32>
    %cst_22 = arith.constant dense<0.000000e+00> : vector<64x32xf32>
    %23 = tpu.matmul %22, %19, %cst_22 {dimension_numbers = #tpu.dot_dimension_numbers<[1], [0], [0], [1], [0, 0, 1, 1], [], []>} : vector<64x32xf32>, vector<32x32xf32>, vector<64x32xf32> -> vector<64x32xf32>
    %24 = vector.broadcast %20 : vector<1x32xf32> to vector<64x32xf32>
    %25 = arith.addf %23, %24 : vector<64x32xf32>
    %26 = vector.shape_cast %25 : vector<64x32xf32> to vector<8x8x32xf32>
    %27 = vector.extract_strided_slice %17 {offsets = [0, 0, 0], sizes = [8, 8, 8], strides = [1, 1, 1]} : vector<8x8x32xf32> to vector<8x8x8xf32>
    %28 = vector.extract_strided_slice %8 {offsets = [0, 0, 0], sizes = [8, 8, 8], strides = [1, 1, 1]} : vector<8x8x32xf32> to vector<8x8x8xf32>
    "tpu.trace_start"() <{level = 10 : i32, message = "bkd,bqd->bkq"}> : () -> ()
    %cst_23 = arith.constant dense<0.000000e+00> : vector<8x8x8xf32>
    %29 = tpu.matmul %27, %28, %cst_23 {dimension_numbers = #tpu.dot_dimension_numbers<[2], [2], [1], [1], [0, 0, 0, 1, 1, 1], [0], [0]>} : vector<8x8x8xf32>, vector<8x8x8xf32>, vector<8x8x8xf32> -> vector<8x8x8xf32>
    "tpu.trace_stop"() : () -> ()
    %cst_24 = arith.constant dense<0xFF800000> : vector<8x8xf32>
    %30 = vector.multi_reduction <maximumf>, %29, %cst_24 [1] : vector<8x8x8xf32> to vector<8x8xf32>
    %31 = vector.shape_cast %30 : vector<8x8xf32> to vector<8x1x8xf32>
    %32 = vector.broadcast %31 : vector<8x1x8xf32> to vector<8x8x8xf32>
    %33 = arith.subf %29, %32 : vector<8x8x8xf32>
    %34 = math.exp %33 : vector<8x8x8xf32>
    %cst_25 = arith.constant dense<0.000000e+00> : vector<8x8xf32>
    %35 = vector.multi_reduction <add>, %34, %cst_25 [1] : vector<8x8x8xf32> to vector<8x8xf32>
    %36 = vector.shape_cast %35 : vector<8x8xf32> to vector<8x1x8xf32>
    %37 = tpu.reciprocal %36 : vector<8x1x8xf32> -> vector<8x1x8xf32>
    "tpu.trace_start"() <{level = 10 : i32, message = "bkq,biq->bki"}> : () -> ()
    %cst_26 = arith.constant dense<0.000000e+00> : vector<8x8x1xf32>
    %38 = tpu.matmul %34, %37, %cst_26 {dimension_numbers = #tpu.dot_dimension_numbers<[2], [2], [1], [1], [0, 0, 0, 1, 1, 1], [0], [0]>} : vector<8x8x8xf32>, vector<8x1x8xf32>, vector<8x8x1xf32> -> vector<8x8x1xf32>
    "tpu.trace_stop"() : () -> ()
    %39 = vector.extract_strided_slice %26 {offsets = [0, 0, 0], sizes = [8, 8, 8], strides = [1, 1, 1]} : vector<8x8x32xf32> to vector<8x8x8xf32>
    %40 = vector.broadcast %38 : vector<8x8x1xf32> to vector<8x8x8xf32>
    %41 = arith.mulf %40, %39 : vector<8x8x8xf32>
    %cst_27 = arith.constant dense<0.000000e+00> : vector<8x8xf32>
    %42 = vector.multi_reduction <add>, %41, %cst_27 [1] : vector<8x8x8xf32> to vector<8x8xf32>
    %43 = vector.extract_strided_slice %17 {offsets = [0, 0, 8], sizes = [8, 8, 8], strides = [1, 1, 1]} : vector<8x8x32xf32> to vector<8x8x8xf32>
    %44 = vector.extract_strided_slice %8 {offsets = [0, 0, 8], sizes = [8, 8, 8], strides = [1, 1, 1]} : vector<8x8x32xf32> to vector<8x8x8xf32>
    "tpu.trace_start"() <{level = 10 : i32, message = "bkd,bqd->bkq"}> : () -> ()
    %cst_28 = arith.constant dense<0.000000e+00> : vector<8x8x8xf32>
    %45 = tpu.matmul %43, %44, %cst_28 {dimension_numbers = #tpu.dot_dimension_numbers<[2], [2], [1], [1], [0, 0, 0, 1, 1, 1], [0], [0]>} : vector<8x8x8xf32>, vector<8x8x8xf32>, vector<8x8x8xf32> -> vector<8x8x8xf32>
    "tpu.trace_stop"() : () -> ()
    %cst_29 = arith.constant dense<0xFF800000> : vector<8x8xf32>
    %46 = vector.multi_reduction <maximumf>, %45, %cst_29 [1] : vector<8x8x8xf32> to vector<8x8xf32>
    %47 = vector.shape_cast %46 : vector<8x8xf32> to vector<8x1x8xf32>
    %48 = vector.broadcast %47 : vector<8x1x8xf32> to vector<8x8x8xf32>
    %49 = arith.subf %45, %48 : vector<8x8x8xf32>
    %50 = math.exp %49 : vector<8x8x8xf32>
    %cst_30 = arith.constant dense<0.000000e+00> : vector<8x8xf32>
    %51 = vector.multi_reduction <add>, %50, %cst_30 [1] : vector<8x8x8xf32> to vector<8x8xf32>
    %52 = vector.shape_cast %51 : vector<8x8xf32> to vector<8x1x8xf32>
    %53 = tpu.reciprocal %52 : vector<8x1x8xf32> -> vector<8x1x8xf32>
    "tpu.trace_start"() <{level = 10 : i32, message = "bkq,biq->bki"}> : () -> ()
    %cst_31 = arith.constant dense<0.000000e+00> : vector<8x8x1xf32>
    %54 = tpu.matmul %50, %53, %cst_31 {dimension_numbers = #tpu.dot_dimension_numbers<[2], [2], [1], [1], [0, 0, 0, 1, 1, 1], [0], [0]>} : vector<8x8x8xf32>, vector<8x1x8xf32>, vector<8x8x1xf32> -> vector<8x8x1xf32>
    "tpu.trace_stop"() : () -> ()
    %55 = vector.extract_strided_slice %26 {offsets = [0, 0, 8], sizes = [8, 8, 8], strides = [1, 1, 1]} : vector<8x8x32xf32> to vector<8x8x8xf32>
    %56 = vector.broadcast %54 : vector<8x8x1xf32> to vector<8x8x8xf32>
    %57 = arith.mulf %56, %55 : vector<8x8x8xf32>
    %cst_32 = arith.constant dense<0.000000e+00> : vector<8x8xf32>
    %58 = vector.multi_reduction <add>, %57, %cst_32 [1] : vector<8x8x8xf32> to vector<8x8xf32>
    %59 = vector.extract_strided_slice %17 {offsets = [0, 0, 16], sizes = [8, 8, 8], strides = [1, 1, 1]} : vector<8x8x32xf32> to vector<8x8x8xf32>
    %60 = vector.extract_strided_slice %8 {offsets = [0, 0, 16], sizes = [8, 8, 8], strides = [1, 1, 1]} : vector<8x8x32xf32> to vector<8x8x8xf32>
    "tpu.trace_start"() <{level = 10 : i32, message = "bkd,bqd->bkq"}> : () -> ()
    %cst_33 = arith.constant dense<0.000000e+00> : vector<8x8x8xf32>
    %61 = tpu.matmul %59, %60, %cst_33 {dimension_numbers = #tpu.dot_dimension_numbers<[2], [2], [1], [1], [0, 0, 0, 1, 1, 1], [0], [0]>} : vector<8x8x8xf32>, vector<8x8x8xf32>, vector<8x8x8xf32> -> vector<8x8x8xf32>
    "tpu.trace_stop"() : () -> ()
    %cst_34 = arith.constant dense<0xFF800000> : vector<8x8xf32>
    %62 = vector.multi_reduction <maximumf>, %61, %cst_34 [1] : vector<8x8x8xf32> to vector<8x8xf32>
    %63 = vector.shape_cast %62 : vector<8x8xf32> to vector<8x1x8xf32>
    %64 = vector.broadcast %63 : vector<8x1x8xf32> to vector<8x8x8xf32>
    %65 = arith.subf %61, %64 : vector<8x8x8xf32>
    %66 = math.exp %65 : vector<8x8x8xf32>
    %cst_35 = arith.constant dense<0.000000e+00> : vector<8x8xf32>
    %67 = vector.multi_reduction <add>, %66, %cst_35 [1] : vector<8x8x8xf32> to vector<8x8xf32>
    %68 = vector.shape_cast %67 : vector<8x8xf32> to vector<8x1x8xf32>
    %69 = tpu.reciprocal %68 : vector<8x1x8xf32> -> vector<8x1x8xf32>
    "tpu.trace_start"() <{level = 10 : i32, message = "bkq,biq->bki"}> : () -> ()
    %cst_36 = arith.constant dense<0.000000e+00> : vector<8x8x1xf32>
    %70 = tpu.matmul %66, %69, %cst_36 {dimension_numbers = #tpu.dot_dimension_numbers<[2], [2], [1], [1], [0, 0, 0, 1, 1, 1], [0], [0]>} : vector<8x8x8xf32>, vector<8x1x8xf32>, vector<8x8x1xf32> -> vector<8x8x1xf32>
    "tpu.trace_stop"() : () -> ()
    %71 = vector.extract_strided_slice %26 {offsets = [0, 0, 16], sizes = [8, 8, 8], strides = [1, 1, 1]} : vector<8x8x32xf32> to vector<8x8x8xf32>
    %72 = vector.broadcast %70 : vector<8x8x1xf32> to vector<8x8x8xf32>
    %73 = arith.mulf %72, %71 : vector<8x8x8xf32>
    %cst_37 = arith.constant dense<0.000000e+00> : vector<8x8xf32>
    %74 = vector.multi_reduction <add>, %73, %cst_37 [1] : vector<8x8x8xf32> to vector<8x8xf32>
    %75 = vector.extract_strided_slice %17 {offsets = [0, 0, 24], sizes = [8, 8, 8], strides = [1, 1, 1]} : vector<8x8x32xf32> to vector<8x8x8xf32>
    %76 = vector.extract_strided_slice %8 {offsets = [0, 0, 24], sizes = [8, 8, 8], strides = [1, 1, 1]} : vector<8x8x32xf32> to vector<8x8x8xf32>
    "tpu.trace_start"() <{level = 10 : i32, message = "bkd,bqd->bkq"}> : () -> ()
    %cst_38 = arith.constant dense<0.000000e+00> : vector<8x8x8xf32>
    %77 = tpu.matmul %75, %76, %cst_38 {dimension_numbers = #tpu.dot_dimension_numbers<[2], [2], [1], [1], [0, 0, 0, 1, 1, 1], [0], [0]>} : vector<8x8x8xf32>, vector<8x8x8xf32>, vector<8x8x8xf32> -> vector<8x8x8xf32>
    "tpu.trace_stop"() : () -> ()
    %cst_39 = arith.constant dense<0xFF800000> : vector<8x8xf32>
    %78 = vector.multi_reduction <maximumf>, %77, %cst_39 [1] : vector<8x8x8xf32> to vector<8x8xf32>
    %79 = vector.shape_cast %78 : vector<8x8xf32> to vector<8x1x8xf32>
    %80 = vector.broadcast %79 : vector<8x1x8xf32> to vector<8x8x8xf32>
    %81 = arith.subf %77, %80 : vector<8x8x8xf32>
    %82 = math.exp %81 : vector<8x8x8xf32>
    %cst_40 = arith.constant dense<0.000000e+00> : vector<8x8xf32>
    %83 = vector.multi_reduction <add>, %82, %cst_40 [1] : vector<8x8x8xf32> to vector<8x8xf32>
    %84 = vector.shape_cast %83 : vector<8x8xf32> to vector<8x1x8xf32>
    %85 = tpu.reciprocal %84 : vector<8x1x8xf32> -> vector<8x1x8xf32>
    "tpu.trace_start"() <{level = 10 : i32, message = "bkq,biq->bki"}> : () -> ()
    %cst_41 = arith.constant dense<0.000000e+00> : vector<8x8x1xf32>
    %86 = tpu.matmul %82, %85, %cst_41 {dimension_numbers = #tpu.dot_dimension_numbers<[2], [2], [1], [1], [0, 0, 0, 1, 1, 1], [0], [0]>} : vector<8x8x8xf32>, vector<8x1x8xf32>, vector<8x8x1xf32> -> vector<8x8x1xf32>
    "tpu.trace_stop"() : () -> ()
    %87 = vector.extract_strided_slice %26 {offsets = [0, 0, 24], sizes = [8, 8, 8], strides = [1, 1, 1]} : vector<8x8x32xf32> to vector<8x8x8xf32>
    %88 = vector.broadcast %86 : vector<8x8x1xf32> to vector<8x8x8xf32>
    %89 = arith.mulf %88, %87 : vector<8x8x8xf32>
    %cst_42 = arith.constant dense<0.000000e+00> : vector<8x8xf32>
    %90 = vector.multi_reduction <add>, %89, %cst_42 [1] : vector<8x8x8xf32> to vector<8x8xf32>
    %91 = tpu.concatenate %42, %58, %74, %90 in 1 : vector<8x8xf32>, vector<8x8xf32>, vector<8x8xf32>, vector<8x8xf32> -> vector<8x32xf32>
    %c0_43 = arith.constant 0 : index
    %c0_44 = arith.constant 0 : index
    %92 = vector.load %arg5[%c0_43, %c0_44] : memref<32x32xf32, #tpu.memory_space<vmem>>, vector<32x32xf32>
    %cst_45 = arith.constant dense<0.000000e+00> : vector<8x32xf32>
    %93 = tpu.matmul %91, %92, %cst_45 {dimension_numbers = #tpu.dot_dimension_numbers<[1], [0], [0], [1], [0, 0, 1, 1], [], []>} : vector<8x32xf32>, vector<32x32xf32>, vector<8x32xf32> -> vector<8x32xf32>
    %c0_46 = arith.constant 0 : index
    %c0_47 = arith.constant 0 : index
    %94 = vector.load %arg7[%c0_46, %c0_47] : memref<1x32xf32, #tpu.memory_space<vmem>>, vector<1x32xf32>
    %95 = vector.broadcast %94 : vector<1x32xf32> to vector<8x32xf32>
    %96 = arith.addf %93, %95 : vector<8x32xf32>
    %c0_48 = arith.constant 0 : index
    %c0_49 = arith.constant 0 : index
    %97 = vector.load %arg8[%c0_48, %c0_49] : memref<8x32xf32, #tpu.memory_space<vmem>>, vector<8x32xf32>
    tpu.vector_store %arg8[%c0_48, %c0_49], %96 {strides = array<i32>} : memref<8x32xf32, #tpu.memory_space<vmem>>, vector<8x32xf32>,
    return
  }
  func.func @transform_0(%arg0: i32) -> (i32, i32, i32) {
    %c0_i32 = arith.constant 0 : i32
    %c0_i32_0 = arith.constant 0 : i32
    %c0_i32_1 = arith.constant 0 : i32
    return %arg0, %c0_i32, %c0_i32_0 : i32, i32, i32
  }
  func.func @transform_1(%arg0: i32) -> (i32, i32, i32) {
    %c0_i32 = arith.constant 0 : i32
    %c0_i32_0 = arith.constant 0 : i32
    %c0_i32_1 = arith.constant 0 : i32
    return %arg0, %c0_i32, %c0_i32_0 : i32, i32, i32
  }
  func.func @transform_2(%arg0: i32) -> (i32, i32, i32) {
    %c0_i32 = arith.constant 0 : i32
    %c0_i32_0 = arith.constant 0 : i32
    %c0_i32_1 = arith.constant 0 : i32
    return %arg0, %c0_i32, %c0_i32_0 : i32, i32, i32
  }
  func.func @transform_3(%arg0: i32) -> (i32, i32, i32) {
    %c0_i32 = arith.constant 0 : i32
    %c0_i32_0 = arith.constant 0 : i32
    %c0_i32_1 = arith.constant 0 : i32
    %c0_i32_2 = arith.constant 0 : i32
    return %c0_i32, %c0_i32_0, %c0_i32_1 : i32, i32, i32
  }
  func.func @transform_4(%arg0: i32) -> (i32, i32) {
    %c0_i32 = arith.constant 0 : i32
    %c0_i32_0 = arith.constant 0 : i32
    %c0_i32_1 = arith.constant 0 : i32
    return %c0_i32, %c0_i32_0 : i32, i32
  }
  func.func @transform_5(%arg0: i32) -> (i32, i32) {
    %c0_i32 = arith.constant 0 : i32
    %c0_i32_0 = arith.constant 0 : i32
    %c0_i32_1 = arith.constant 0 : i32
    return %c0_i32, %c0_i32_0 : i32, i32
  }
  func.func @transform_6(%arg0: i32) -> (i32, i32) {
    %c0_i32 = arith.constant 0 : i32
    %c0_i32_0 = arith.constant 0 : i32
    %c0_i32_1 = arith.constant 0 : i32
    return %c0_i32, %c0_i32_0 : i32, i32
  }
  func.func @transform_7(%arg0: i32) -> (i32, i32) {
    %c0_i32 = arith.constant 0 : i32
    %c0_i32_0 = arith.constant 0 : i32
    return %arg0, %c0_i32 : i32, i32
  }
}

module attributes {stable_mosaic.version = 11 : i64} {
  func.func @_mha_kernel(%arg0: i32, %arg1: memref<8x8x32xf32, #tpu.memory_space<vmem>>, %arg2: memref<8x8x32xf32, #tpu.memory_space<vmem>>, %arg3: memref<8x8x32xf32, #tpu.memory_space<vmem>>, %arg4: memref<3x32x32xf32, #tpu.memory_space<vmem>>, %arg5: memref<32x32xf32, #tpu.memory_space<vmem>>, %arg6: memref<3x32xf32, #tpu.memory_space<vmem>>, %arg7: memref<1x32xf32, #tpu.memory_space<vmem>>, %arg8: memref<8x32xf32, #tpu.memory_space<vmem>>) attributes {dimension_semantics = [#tpu.dimension_semantics<parallel>], iteration_bounds = array<i64: 2>, scalar_prefetch = 0 : i64, scratch_operands = 0 : i64, tpu.core_type = #tpu.core_type<tc>, window_params = [{transform_indices = @transform_0, window_bounds = array<i64: 8, 8, 32>}, {transform_indices = @transform_1, window_bounds = array<i64: 8, 8, 32>}, {transform_indices = @transform_2, window_bounds = array<i64: 8, 8, 32>}, {pipeline_mode = #tpu.pipeline_mode<synchronous>, transform_indices = @transform_3, window_bounds = array<i64: 3, 32, 32>}, {pipeline_mode = #tpu.pipeline_mode<synchronous>, transform_indices = @transform_4, window_bounds = array<i64: 32, 32>}, {pipeline_mode = #tpu.pipeline_mode<synchronous>, transform_indices = @transform_5, window_bounds = array<i64: 3, 32>}, {pipeline_mode = #tpu.pipeline_mode<synchronous>, transform_indices = @transform_6, window_bounds = array<i64: 1, 32>}, {transform_indices = @transform_7, window_bounds = array<i64: 8, 32>}]} {
    %c0 = arith.constant 0 : index
    %c0_0 = arith.constant 0 : index
    %c0_1 = arith.constant 0 : index
    %0 = vector.load %arg4[%c0, %c0_0, %c0_1] : memref<3x32x32xf32, #tpu.memory_space<vmem>>, vector<1x32x32xf32>
    %1 = vector.shape_cast %0 : vector<1x32x32xf32> to vector<32x32xf32>
    %c0_2 = arith.constant 0 : index
    %c0_3 = arith.constant 0 : index
    %2 = vector.load %arg6[%c0_2, %c0_3] : memref<3x32xf32, #tpu.memory_space<vmem>>, vector<1x32xf32>
    %c0_4 = arith.constant 0 : index
    %c0_5 = arith.constant 0 : index
    %c0_6 = arith.constant 0 : index
    %3 = vector.load %arg1[%c0_4, %c0_5, %c0_6] : memref<8x8x32xf32, #tpu.memory_space<vmem>>, vector<8x8x32xf32>
    %4 = vector.shape_cast %3 : vector<8x8x32xf32> to vector<64x32xf32>
    %cst = arith.constant dense<0.000000e+00> : vector<64x32xf32>
    %5 = tpu.matmul %4, %1, %cst {dimension_numbers = #tpu.dot_dimension_numbers<[1], [0], [0], [1], [0, 0, 1, 1], [], []>} : vector<64x32xf32>, vector<32x32xf32>, vector<64x32xf32> -> vector<64x32xf32>
    %6 = vector.broadcast %2 : vector<1x32xf32> to vector<64x32xf32>
    %7 = arith.addf %5, %6 : vector<64x32xf32>
    %8 = vector.shape_cast %7 : vector<64x32xf32> to vector<8x8x32xf32>
    %c1 = arith.constant 1 : index
    %c0_7 = arith.constant 0 : index
    %c0_8 = arith.constant 0 : index
    %9 = vector.load %arg4[%c1, %c0_7, %c0_8] : memref<3x32x32xf32, #tpu.memory_space<vmem>>, vector<1x32x32xf32>
    %10 = vector.shape_cast %9 : vector<1x32x32xf32> to vector<32x32xf32>
    %c1_9 = arith.constant 1 : index
    %c0_10 = arith.constant 0 : index
    %11 = vector.load %arg6[%c1_9, %c0_10] : memref<3x32xf32, #tpu.memory_space<vmem>>, vector<1x32xf32>
    %c0_11 = arith.constant 0 : index
    %c0_12 = arith.constant 0 : index
    %c0_13 = arith.constant 0 : index
    %12 = vector.load %arg2[%c0_11, %c0_12, %c0_13] : memref<8x8x32xf32, #tpu.memory_space<vmem>>, vector<8x8x32xf32>
    %13 = vector.shape_cast %12 : vector<8x8x32xf32> to vector<64x32xf32>
    %cst_14 = arith.constant dense<0.000000e+00> : vector<64x32xf32>
    %14 = tpu.matmul %13, %10, %cst_14 {dimension_numbers = #tpu.dot_dimension_numbers<[1], [0], [0], [1], [0, 0, 1, 1], [], []>} : vector<64x32xf32>, vector<32x32xf32>, vector<64x32xf32> -> vector<64x32xf32>
    %15 = vector.broadcast %11 : vector<1x32xf32> to vector<64x32xf32>
    %16 = arith.addf %14, %15 : vector<64x32xf32>
    %17 = vector.shape_cast %16 : vector<64x32xf32> to vector<8x8x32xf32>
    %c2 = arith.constant 2 : index
    %c0_15 = arith.constant 0 : index
    %c0_16 = arith.constant 0 : index
    %18 = vector.load %arg4[%c2, %c0_15, %c0_16] : memref<3x32x32xf32, #tpu.memory_space<vmem>>, vector<1x32x32xf32>
    %19 = vector.shape_cast %18 : vector<1x32x32xf32> to vector<32x32xf32>
    %c2_17 = arith.constant 2 : index
    %c0_18 = arith.constant 0 : index
    %20 = vector.load %arg6[%c2_17, %c0_18] : memref<3x32xf32, #tpu.memory_space<vmem>>, vector<1x32xf32>
    %c0_19 = arith.constant 0 : index
    %c0_20 = arith.constant 0 : index
    %c0_21 = arith.constant 0 : index
    %21 = vector.load %arg3[%c0_19, %c0_20, %c0_21] : memref<8x8x32xf32, #tpu.memory_space<vmem>>, vector<8x8x32xf32>
    %22 = vector.shape_cast %21 : vector<8x8x32xf32> to vector<64x32xf32>
    %cst_22 = arith.constant dense<0.000000e+00> : vector<64x32xf32>
    %23 = tpu.matmul %22, %19, %cst_22 {dimension_numbers = #tpu.dot_dimension_numbers<[1], [0], [0], [1], [0, 0, 1, 1], [], []>} : vector<64x32xf32>, vector<32x32xf32>, vector<64x32xf32> -> vector<64x32xf32>
    %24 = vector.broadcast %20 : vector<1x32xf32> to vector<64x32xf32>
    %25 = arith.addf %23, %24 : vector<64x32xf32>
    %26 = vector.shape_cast %25 : vector<64x32xf32> to vector<8x8x32xf32>
    %27 = vector.extract_strided_slice %17 {offsets = [0, 0, 0], sizes = [8, 8, 8], strides = [1, 1, 1]} : vector<8x8x32xf32> to vector<8x8x8xf32>
    %28 = vector.extract_strided_slice %8 {offsets = [0, 0, 0], sizes = [8, 8, 8], strides = [1, 1, 1]} : vector<8x8x32xf32> to vector<8x8x8xf32>
    "tpu.trace_start"() <{level = 10 : i32, message = "bkd,bqd->bkq"}> : () -> ()
    %cst_23 = arith.constant dense<0.000000e+00> : vector<8x8x8xf32>
    %29 = tpu.matmul %27, %28, %cst_23 {dimension_numbers = #tpu.dot_dimension_numbers<[2], [2], [1], [1], [0, 0, 0, 1, 1, 1], [0], [0]>} : vector<8x8x8xf32>, vector<8x8x8xf32>, vector<8x8x8xf32> -> vector<8x8x8xf32>
    "tpu.trace_stop"() : () -> ()
    %cst_24 = arith.constant dense<0xFF800000> : vector<8x8xf32>
    %30 = vector.multi_reduction <maximumf>, %29, %cst_24 [1] : vector<8x8x8xf32> to vector<8x8xf32>
    %31 = vector.shape_cast %30 : vector<8x8xf32> to vector<8x1x8xf32>
    %32 = vector.broadcast %31 : vector<8x1x8xf32> to vector<8x8x8xf32>
    %33 = arith.subf %29, %32 : vector<8x8x8xf32>
    %34 = math.exp %33 : vector<8x8x8xf32>
    %cst_25 = arith.constant dense<0.000000e+00> : vector<8x8xf32>
    %35 = vector.multi_reduction <add>, %34, %cst_25 [1] : vector<8x8x8xf32> to vector<8x8xf32>
    %36 = vector.shape_cast %35 : vector<8x8xf32> to vector<8x1x8xf32>
    %37 = tpu.reciprocal %36 : vector<8x1x8xf32> -> vector<8x1x8xf32>
    "tpu.trace_start"() <{level = 10 : i32, message = "bkq,biq->bki"}> : () -> ()
    %cst_26 = arith.constant dense<0.000000e+00> : vector<8x8x1xf32>
    %38 = tpu.matmul %34, %37, %cst_26 {dimension_numbers = #tpu.dot_dimension_numbers<[2], [2], [1], [1], [0, 0, 0, 1, 1, 1], [0], [0]>} : vector<8x8x8xf32>, vector<8x1x8xf32>, vector<8x8x1xf32> -> vector<8x8x1xf32>
    "tpu.trace_stop"() : () -> ()
    %39 = vector.extract_strided_slice %26 {offsets = [0, 0, 0], sizes = [8, 8, 8], strides = [1, 1, 1]} : vector<8x8x32xf32> to vector<8x8x8xf32>
    %40 = vector.broadcast %38 : vector<8x8x1xf32> to vector<8x8x8xf32>
    %41 = arith.mulf %40, %39 : vector<8x8x8xf32>
    %cst_27 = arith.constant dense<0.000000e+00> : vector<8x8xf32>
    %42 = vector.multi_reduction <add>, %41, %cst_27 [1] : vector<8x8x8xf32> to vector<8x8xf32>
    %43 = vector.extract_strided_slice %17 {offsets = [0, 0, 8], sizes = [8, 8, 8], strides = [1, 1, 1]} : vector<8x8x32xf32> to vector<8x8x8xf32>
    %44 = vector.extract_strided_slice %8 {offsets = [0, 0, 8], sizes = [8, 8, 8], strides = [1, 1, 1]} : vector<8x8x32xf32> to vector<8x8x8xf32>
    "tpu.trace_start"() <{level = 10 : i32, message = "bkd,bqd->bkq"}> : () -> ()
    %cst_28 = arith.constant dense<0.000000e+00> : vector<8x8x8xf32>
    %45 = tpu.matmul %43, %44, %cst_28 {dimension_numbers = #tpu.dot_dimension_numbers<[2], [2], [1], [1], [0, 0, 0, 1, 1, 1], [0], [0]>} : vector<8x8x8xf32>, vector<8x8x8xf32>, vector<8x8x8xf32> -> vector<8x8x8xf32>
    "tpu.trace_stop"() : () -> ()
    %cst_29 = arith.constant dense<0xFF800000> : vector<8x8xf32>
    %46 = vector.multi_reduction <maximumf>, %45, %cst_29 [1] : vector<8x8x8xf32> to vector<8x8xf32>
    %47 = vector.shape_cast %46 : vector<8x8xf32> to vector<8x1x8xf32>
    %48 = vector.broadcast %47 : vector<8x1x8xf32> to vector<8x8x8xf32>
    %49 = arith.subf %45, %48 : vector<8x8x8xf32>
    %50 = math.exp %49 : vector<8x8x8xf32>
    %cst_30 = arith.constant dense<0.000000e+00> : vector<8x8xf32>
    %51 = vector.multi_reduction <add>, %50, %cst_30 [1] : vector<8x8x8xf32> to vector<8x8xf32>
    %52 = vector.shape_cast %51 : vector<8x8xf32> to vector<8x1x8xf32>
    %53 = tpu.reciprocal %52 : vector<8x1x8xf32> -> vector<8x1x8xf32>
    "tpu.trace_start"() <{level = 10 : i32, message = "bkq,biq->bki"}> : () -> ()
    %cst_31 = arith.constant dense<0.000000e+00> : vector<8x8x1xf32>
    %54 = tpu.matmul %50, %53, %cst_31 {dimension_numbers = #tpu.dot_dimension_numbers<[2], [2], [1], [1], [0, 0, 0, 1, 1, 1], [0], [0]>} : vector<8x8x8xf32>, vector<8x1x8xf32>, vector<8x8x1xf32> -> vector<8x8x1xf32>
    "tpu.trace_stop"() : () -> ()
    %55 = vector.extract_strided_slice %26 {offsets = [0, 0, 8], sizes = [8, 8, 8], strides = [1, 1, 1]} : vector<8x8x32xf32> to vector<8x8x8xf32>
    %56 = vector.broadcast %54 : vector<8x8x1xf32> to vector<8x8x8xf32>
    %57 = arith.mulf %56, %55 : vector<8x8x8xf32>
    %cst_32 = arith.constant dense<0.000000e+00> : vector<8x8xf32>
    %58 = vector.multi_reduction <add>, %57, %cst_32 [1] : vector<8x8x8xf32> to vector<8x8xf32>
    %59 = vector.extract_strided_slice %17 {offsets = [0, 0, 16], sizes = [8, 8, 8], strides = [1, 1, 1]} : vector<8x8x32xf32> to vector<8x8x8xf32>
    %60 = vector.extract_strided_slice %8 {offsets = [0, 0, 16], sizes = [8, 8, 8], strides = [1, 1, 1]} : vector<8x8x32xf32> to vector<8x8x8xf32>
    "tpu.trace_start"() <{level = 10 : i32, message = "bkd,bqd->bkq"}> : () -> ()
    %cst_33 = arith.constant dense<0.000000e+00> : vector<8x8x8xf32>
    %61 = tpu.matmul %59, %60, %cst_33 {dimension_numbers = #tpu.dot_dimension_numbers<[2], [2], [1], [1], [0, 0, 0, 1, 1, 1], [0], [0]>} : vector<8x8x8xf32>, vector<8x8x8xf32>, vector<8x8x8xf32> -> vector<8x8x8xf32>
    "tpu.trace_stop"() : () -> ()
    %cst_34 = arith.constant dense<0xFF800000> : vector<8x8xf32>
    %62 = vector.multi_reduction <maximumf>, %61, %cst_34 [1] : vector<8x8x8xf32> to vector<8x8xf32>
    %63 = vector.shape_cast %62 : vector<8x8xf32> to vector<8x1x8xf32>
    %64 = vector.broadcast %63 : vector<8x1x8xf32> to vector<8x8x8xf32>
    %65 = arith.subf %61, %64 : vector<8x8x8xf32>
    %66 = math.exp %65 : vector<8x8x8xf32>
    %cst_35 = arith.constant dense<0.000000e+00> : vector<8x8xf32>
    %67 = vector.multi_reduction <add>, %66, %cst_35 [1] : vector<8x8x8xf32> to vector<8x8xf32>
    %68 = vector.shape_cast %67 : vector<8x8xf32> to vector<8x1x8xf32>
    %69 = tpu.reciprocal %68 : vector<8x1x8xf32> -> vector<8x1x8xf32>
    "tpu.trace_start"() <{level = 10 : i32, message = "bkq,biq->bki"}> : () -> ()
    %cst_36 = arith.constant dense<0.000000e+00> : vector<8x8x1xf32>
    %70 = tpu.matmul %66, %69, %cst_36 {dimension_numbers = #tpu.dot_dimension_numbers<[2], [2], [1], [1], [0, 0, 0, 1, 1, 1], [0], [0]>} : vector<8x8x8xf32>, vector<8x1x8xf32>, vector<8x8x1xf32> -> vector<8x8x1xf32>
    "tpu.trace_stop"() : () -> ()
    %71 = vector.extract_strided_slice %26 {offsets = [0, 0, 16], sizes = [8, 8, 8], strides = [1, 1, 1]} : vector<8x8x32xf32> to vector<8x8x8xf32>
    %72 = vector.broadcast %70 : vector<8x8x1xf32> to vector<8x8x8xf32>
    %73 = arith.mulf %72, %71 : vector<8x8x8xf32>
    %cst_37 = arith.constant dense<0.000000e+00> : vector<8x8xf32>
    %74 = vector.multi_reduction <add>, %73, %cst_37 [1] : vector<8x8x8xf32> to vector<8x8xf32>
    %75 = vector.extract_strided_slice %17 {offsets = [0, 0, 24], sizes = [8, 8, 8], strides = [1, 1, 1]} : vector<8x8x32xf32> to vector<8x8x8xf32>
    %76 = vector.extract_strided_slice %8 {offsets = [0, 0, 24], sizes = [8, 8, 8], strides = [1, 1, 1]} : vector<8x8x32xf32> to vector<8x8x8xf32>
    "tpu.trace_start"() <{level = 10 : i32, message = "bkd,bqd->bkq"}> : () -> ()
    %cst_38 = arith.constant dense<0.000000e+00> : vector<8x8x8xf32>
    %77 = tpu.matmul %75, %76, %cst_38 {dimension_numbers = #tpu.dot_dimension_numbers<[2], [2], [1], [1], [0, 0, 0, 1, 1, 1], [0], [0]>} : vector<8x8x8xf32>, vector<8x8x8xf32>, vector<8x8x8xf32> -> vector<8x8x8xf32>
    "tpu.trace_stop"() : () -> ()
    %cst_39 = arith.constant dense<0xFF800000> : vector<8x8xf32>
    %78 = vector.multi_reduction <maximumf>, %77, %cst_39 [1] : vector<8x8x8xf32> to vector<8x8xf32>
    %79 = vector.shape_cast %78 : vector<8x8xf32> to vector<8x1x8xf32>
    %80 = vector.broadcast %79 : vector<8x1x8xf32> to vector<8x8x8xf32>
    %81 = arith.subf %77, %80 : vector<8x8x8xf32>
    %82 = math.exp %81 : vector<8x8x8xf32>
    %cst_40 = arith.constant dense<0.000000e+00> : vector<8x8xf32>
    %83 = vector.multi_reduction <add>, %82, %cst_40 [1] : vector<8x8x8xf32> to vector<8x8xf32>
    %84 = vector.shape_cast %83 : vector<8x8xf32> to vector<8x1x8xf32>
    %85 = tpu.reciprocal %84 : vector<8x1x8xf32> -> vector<8x1x8xf32>
    "tpu.trace_start"() <{level = 10 : i32, message = "bkq,biq->bki"}> : () -> ()
    %cst_41 = arith.constant dense<0.000000e+00> : vector<8x8x1xf32>
    %86 = tpu.matmul %82, %85, %cst_41 {dimension_numbers = #tpu.dot_dimension_numbers<[2], [2], [1], [1], [0, 0, 0, 1, 1, 1], [0], [0]>} : vector<8x8x8xf32>, vector<8x1x8xf32>, vector<8x8x1xf32> -> vector<8x8x1xf32>
    "tpu.trace_stop"() : () -> ()
    %87 = vector.extract_strided_slice %26 {offsets = [0, 0, 24], sizes = [8, 8, 8], strides = [1, 1, 1]} : vector<8x8x32xf32> to vector<8x8x8xf32>
    %88 = vector.broadcast %86 : vector<8x8x1xf32> to vector<8x8x8xf32>
    %89 = arith.mulf %88, %87 : vector<8x8x8xf32>
    %cst_42 = arith.constant dense<0.000000e+00> : vector<8x8xf32>
    %90 = vector.multi_reduction <add>, %89, %cst_42 [1] : vector<8x8x8xf32> to vector<8x8xf32>
    %91 = tpu.concatenate %42, %58, %74, %90 in 1 : vector<8x8xf32>, vector<8x8xf32>, vector<8x8xf32>, vector<8x8xf32> -> vector<8x32xf32>
    %c0_43 = arith.constant 0 : index
    %c0_44 = arith.constant 0 : index
    %92 = vector.load %arg5[%c0_43, %c0_44] : memref<32x32xf32, #tpu.memory_space<vmem>>, vector<32x32xf32>
    %cst_45 = arith.constant dense<0.000000e+00> : vector<8x32xf32>
    %93 = tpu.matmul %91, %92, %cst_45 {dimension_numbers = #tpu.dot_dimension_numbers<[1], [0], [0], [1], [0, 0, 1, 1], [], []>} : vector<8x32xf32>, vector<32x32xf32>, vector<8x32xf32> -> vector<8x32xf32>
    %c0_46 = arith.constant 0 : index
    %c0_47 = arith.constant 0 : index
    %94 = vector.load %arg7[%c0_46, %c0_47] : memref<1x32xf32, #tpu.memory_space<vmem>>, vector<1x32xf32>
    %95 = vector.broadcast %94 : vector<1x32xf32> to vector<8x32xf32>
    %96 = arith.addf %93, %95 : vector<8x32xf32>
    %c0_48 = arith.constant 0 : index
    %c0_49 = arith.constant 0 : index
    %97 = vector.load %arg8[%c0_48, %c0_49] : memref<8x32xf32, #tpu.memory_space<vmem>>, vector<8x32xf32>
    tpu.vector_store %arg8[%c0_48, %c0_49], %96 {strides = array<i32>} : memref<8x32xf32, #tpu.memory_space<vmem>>, vector<8x32xf32>,
    return
  }
  func.func @transform_0(%arg0: i32) -> (i32, i32, i32) {
    %c0_i32 = arith.constant 0 : i32
    %c0_i32_0 = arith.constant 0 : i32
    %c0_i32_1 = arith.constant 0 : i32
    return %arg0, %c0_i32, %c0_i32_0 : i32, i32, i32
  }
  func.func @transform_1(%arg0: i32) -> (i32, i32, i32) {
    %c0_i32 = arith.constant 0 : i32
    %c0_i32_0 = arith.constant 0 : i32
    %c0_i32_1 = arith.constant 0 : i32
    return %arg0, %c0_i32, %c0_i32_0 : i32, i32, i32
  }
  func.func @transform_2(%arg0: i32) -> (i32, i32, i32) {
    %c0_i32 = arith.constant 0 : i32
    %c0_i32_0 = arith.constant 0 : i32
    %c0_i32_1 = arith.constant 0 : i32
    return %arg0, %c0_i32, %c0_i32_0 : i32, i32, i32
  }
  func.func @transform_3(%arg0: i32) -> (i32, i32, i32) {
    %c0_i32 = arith.constant 0 : i32
    %c0_i32_0 = arith.constant 0 : i32
    %c0_i32_1 = arith.constant 0 : i32
    %c0_i32_2 = arith.constant 0 : i32
    return %c0_i32, %c0_i32_0, %c0_i32_1 : i32, i32, i32
  }
  func.func @transform_4(%arg0: i32) -> (i32, i32) {
    %c0_i32 = arith.constant 0 : i32
    %c0_i32_0 = arith.constant 0 : i32
    %c0_i32_1 = arith.constant 0 : i32
    return %c0_i32, %c0_i32_0 : i32, i32
  }
  func.func @transform_5(%arg0: i32) -> (i32, i32) {
    %c0_i32 = arith.constant 0 : i32
    %c0_i32_0 = arith.constant 0 : i32
    %c0_i32_1 = arith.constant 0 : i32
    return %c0_i32, %c0_i32_0 : i32, i32
  }
  func.func @transform_6(%arg0: i32) -> (i32, i32) {
    %c0_i32 = arith.constant 0 : i32
    %c0_i32_0 = arith.constant 0 : i32
    %c0_i32_1 = arith.constant 0 : i32
    return %c0_i32, %c0_i32_0 : i32, i32
  }
  func.func @transform_7(%arg0: i32) -> (i32, i32) {
    %c0_i32 = arith.constant 0 : i32
    %c0_i32_0 = arith.constant 0 : i32
    return %arg0, %c0_i32 : i32, i32
  }
}

</mosaic_0001>

<bundles_post_ra>
// kernel: tpu_custom_call.1
= control target key start
LH: loop header
LB: loop body
LE: loop exit
PB: predicated region body
PF: predicated region fallthrough
CT: control target
= control target key end

     0   :  { %s6877_s0 = inlined_call_operand.hbm [shape: f32[16,8,32], index: 0, kind: input, shape index: {}]   ;;  %s6878_s1 = inlined_call_operand.hbm [shape: f32[16,8,32], index: 1, kind: input, shape index: {}]   ;;  %s6879_s2 = inlined_call_operand.hbm [shape: f32[16,8,32], index: 2, kind: input, shape index: {}]   ;;  %s6880_s3 = inlined_call_operand.hbm [shape: f32[3,32,32], index: 3, kind: input, shape index: {}]   ;;  %s6881_s4 = inlined_call_operand.hbm [shape: f32[32,32], index: 4, kind: input, shape index: {}]   ;;  %s6882_s5 = inlined_call_operand.vmem [shape: f32[3,32], index: 5, kind: input, shape index: {}]   ;;  %s6883_s6 = inlined_call_operand.vmem [shape: f32[1,32], index: 6, kind: input, shape index: {}]   ;;  %s6884_s7 = inlined_call_operand.hbm [shape: f32[16,32], index: 7, kind: output, shape index: {}]  }
   0x1   :  { %6906 = sst [smem:[#allocation25_spill]] %s6878_s1 }
   0x2   :  { %6907 = sst [smem:[#allocation26_spill]] %s6880_s3 }
   0x3   :  { %12 = vsyncpa [#allocation3], 0 }
   0x4   :  { %14 = vsyncpa [#allocation3 + $0x1], 0 }
   0x5   :  { %15 = vsyncpa [#allocation6], 0 }
   0x6   :  { %17 = vsyncpa [#allocation6 + $0x1], 0 }
   0x7   :  { %18 = vsyncpa [#allocation9], 0 }
   0x8   :  { %19 = vsyncpa [#allocation4], 0 }
   0x9   :  { %21 = vsyncpa [#allocation4 + $0x1], 0  ;;  %s5742_s24 = smov 0   ;;  %s5744_s25 = smov 0  }
   0xa   :  { %s5746_s26 = smov 0   ;;  %s5748_s27 = smov 0  }
   0xb LB: > { %6908 = sst [smem:[#allocation16_spill]] %s5673_s24  ;;  %s5763_s28 = sadd.s32 4294967295, %s5685_s27   ;;  %s5685_s27 = sphi %s5748_s27, %s6951_s27   ;;  %s5681_s26 = sphi %s5746_s26, %s6955_s26   ;;  %s5677_s25 = sphi %s5744_s25, %s6954_s25   ;;  %s5673_s24 = sphi %s5742_s24, %s6953_s24  }
   0xc   : > { %6909 = sst [smem:[#allocation17_spill]] %s5685_s27  ;;  %s4758_s29 = sadd.s32 4294967294, %s5685_s27  }
   0xd   : > { %s5767_s30 = sadd.s32 1, %s5685_s27   ;;  %s34_s8 = sadd.s32 1, %s5681_s26 }
   0xe   : > { %6910 = sst [smem:[#allocation18_spill]] %s5767_s30  ;;  %s31_s9 = ssub.s32 %s5685_s27, %s5767_s30 }
   0xf   : > { %p41_p0 = scmp.ne.s32.totalorder %s5681_s26, %s5677_s25  ;;  %p32_p1 = scmp.eq.s32.totalorder %s31_s9, 0 }
  0x10   : > { %p42_p2 = scmp.eq.s32.totalorder %s5685_s27, 0  ;;  %p47_p3 = scmp.ne.s32.totalorder %s5677_s25, %s5673_s24 }
  0x11   : > { %p6886_p4 = scmp.eq.s32.totalorder %s5763_s28, 0  ;;  %p207_p7 = scmp.eq.s32.totalorder %s5763_s28, 1 }
  0x12   : > { %s5779_s10 = scalar_select %p32_p1, %s5681_s26, %s34_s8  }
  0x13   : > { %p5781_p5 = por %p42_p2, %p41_p0  ;;  %p5787_p6 = por %p6886_p4, %p47_p3 }
  0x14   : > { %6911 = sst [smem:[#allocation19_spill]] %s5779_s10  ;;  %p213_p8 = scmp.eq.s32.totalorder %s4758_s29, 1 }
  0x15   : > { %s6912_s11 = scalar_select %p5781_p5, 1, 0 }
  0x16   : > { %s6913_s12 = scalar_select %p5787_p6, 1, 0 }
  0x17   : > { %p4759_p9 = scmp.ge.s32.totalorder %s5685_s27, 1  ;;  %p220_p10 = scmp.lt.s32.totalorder %s5685_s27, 3 }
  0x18   : > { %p5794_p11 = por %p207_p7, %p41_p0  ;;  %p5798_p12 = por %p213_p8, %p47_p3 }
  0x19   : > { %p5802_p13 = pnand %p4759_p9, %p220_p10  ;;  %s5687_s16 = smov [#allocation8]  }
  0x1a   : > { %s6914_s13 = scalar_select %p5794_p11, 1, 0 }
  0x1b   : > { %s6915_s14 = scalar_select %p5798_p12, 1, 0 }
  0x1c   : > { %s6917_s15 = scalar_select %p5802_p13, 1, 0 }
  0x1d   : > { %6916 = sst [smem:[#allocation20_spill]] %s6915_s14  ;;  %p5265_p1 = pneg %p5802_p13 }
  0x1e   : > { %s232_s17 = sshll.u32 %s5687_s16, 4  ;;  %s6885_s19 = sand.u32 1, %s5681_s26   ;;  %s233_s17 = int_to_ptr.vmem [resolvable:$true] %s232_s17 }
  0x1f   : > { %p5810_p2 = pnand %p5265_p1, %p6886_p4  ;;  %s5819_s20 = sshll.u32 %s6885_s19, 6 }
  0x20   : > { %s6919_s3 = sld [smem:[#allocation26_spill]] }
  0x21   : > { %s6918_s18 = scalar_select %p5810_p2, 1, 0 }
  0x22   : > { %p6896_p8 = pneg %p5810_p2 }
  0x26   : > { %s5465_s23 = scalar_lea.hbm %s6919_s3, 1536 }
  0x27   : > { %p5466_p7 = scmp.ne.s32.totalorder %s6919_s3, %s5465_s23  ;;  %p5472_p1 = scmp.lt.u32.totalorder %s5465_s23, %s6919_s3 }
  0x29   : > { %p5468_p9 = pnand %p6896_p8, %p5466_p7 }
  0x2b   : > { %p5469_p10 = pneg %p5468_p9 }
  0x2d   : > { %p5474_p0 = pnand %p5472_p1, %p5469_p10 }
  0x2f   : > { %5477 = shalt.err (!%p5474_p0)
}
  0x30   : > { %s5478_s19 = scalar_lea.vmem %s233_s17, 1536  ;;  %p5486_p11 = scmp.lt.s32.totalorder %s233_s17, %s233_s17 }
  0x31   : > { %p5479_p4 = scmp.ne.s32.totalorder %s233_s17, %s5478_s19  ;;  %p5487_p6 = scmp.lt.s32.totalorder %s5478_s19, %s5478_s19 }
  0x33   : > { %p5481_p3 = pnand %p5479_p4, %p6896_p8  ;;  %p5488_p13 = por %p5487_p6, %p5486_p11 }
  0x35   : > { %p5482_p12 = pneg %p5481_p3 }
  0x37   : > { %p5489_p5 = pnand %p5488_p13, %p5482_p12 }
  0x39   : > { %5492 = shalt.err (!%p5489_p5)
}
  0x3a   : > { %s6892_s21 = smov 128   ;;  %s6894_s22 = smov 8  }
  0x3b   : > { %5268 = dma.hbm_to_vmem [thread:$0]  (!%p5810_p2), %s6919_s3, 1536, %s233_s17, [#allocation9], %s6892_s21, %s6892_s21, %s6894_s22  }
  0x3c   : > { %s5847_s19 = sshll.u32 %s5685_s27, 10  ;;  %p6920_p4 = scmp.ne.s32.totalorder %s6912_s11, 0 }
  0x3d   : > { %p6921_p5 = scmp.lt.s32.totalorder %s5685_s27, 2  ;;  %s286_s9 = sand.u32 1, %s5685_s27  }
  0x3e   : > { %s6923_s1 = sld [smem:[#allocation25_spill]]  ;;  %s290_s17 = scalar_lea.vmem [#allocation5], %s5819_s20 }
  0x3f   : > { %p5853_p6 = pnand %p6921_p5, %p6920_p4  ;;  %s297_s23 = sshll.u32 %s290_s17, 4  ;;  %s5865_s23 = int_to_ptr.vmem [resolvable:$true] %s297_s23 }
  0x40   : > { %s5867_s11 = scalar_lea.sflag [#allocation6], %s286_s9 }
  0x41   : > { %s6922_s8 = scalar_select %p5853_p6, 1, 0 }
  0x42   : > { %p5873_p12 = pneg %p5853_p6 }
  0x44   : > { %s5862_s30 = scalar_lea.hbm %s6923_s1, %s5847_s19  ;;  %s5498_s22 = scalar_lea.hbm %s6923_s1, 2048 }
  0x45   : > { %s5493_s29 = scalar_lea.hbm %s5862_s30, 1024  ;;  %p5499_p3 = scmp.lt.u32.totalorder %s5862_s30, %s6923_s1 }
  0x46   : > { %p5494_p11 = scmp.ne.s32.totalorder %s5862_s30, %s5493_s29  ;;  %p5500_p7 = scmp.lt.u32.totalorder %s5498_s22, %s5493_s29 }
  0x47   : > { %s6924_s21 = scalar_select %p5873_p12, 1, 0 }
  0x48   : > { %p5496_p13 = pnand %p5873_p12, %p5494_p11  ;;  %p5501_p9 = por %p5500_p7, %p5499_p3 }
  0x49   : > { %p5502_p10 = scmp.lt.u32.totalorder %s5493_s29, %s5862_s30 }
  0x4a   : > { %p5497_p0 = pneg %p5496_p13 }
  0x4b   : > { %p5503_p1 = por %p5502_p10, %p5501_p9 }
  0x4d   : > { %p5504_p4 = pnand %p5503_p1, %p5497_p0 }
  0x4f   : > { %5507 = shalt.err (!%p5504_p4)
}
  0x50   : > { %s5508_s9 = scalar_lea.vmem %s5865_s23, 1024  ;;  %s5690_s10 = smov [#allocation5]  }
  0x51   : > { %p5509_p5 = scmp.ne.s32.totalorder %s5865_s23, %s5508_s9  ;;  %s5513_s16 = sshll.u32 %s5690_s10, 4  ;;  %s5514_s16 = int_to_ptr.vmem [resolvable:$false] %s5513_s16 }
  0x52   : > { %s5515_s3 = scalar_lea.vmem %s5514_s16, 2048  ;;  %p5516_p8 = scmp.lt.s32.totalorder %s5865_s23, %s5514_s16 }
  0x53   : > { %p5511_p11 = pnand %p5509_p5, %p5873_p12  ;;  %p5517_p2 = scmp.lt.s32.totalorder %s5515_s3, %s5508_s9 }
  0x55   : > { %p5512_p13 = pneg %p5511_p11  ;;  %p5518_p3 = por %p5517_p2, %p5516_p8 }
  0x57   : > { %p5519_p7 = pnand %p5518_p3, %p5512_p13 }
  0x59   : > { %5522 = shalt.err (!%p5519_p7)
}
  0x5a   : > { %s6925_s22 = smov 8   ;;  %s6926_s29 = smov 128  }
  0x5b   : > { %5278 = dma.hbm_to_vmem [thread:$0]  (!%p5853_p6), %s5862_s30, 1024, %s5865_s23, %s5867_s11, %s6926_s29, %s6926_s29, %s6925_s22  }
  0x5c   : > { %s5691_s17 = smov [#allocation10]   ;;  %s5523_s9 = scalar_lea.hbm %s6881_s4, 512 }
  0x5d   : > { %s245_s1 = sshll.u32 %s5691_s17, 4  ;;  %p5524_p2 = scmp.ne.s32.totalorder %s6881_s4, %s5523_s9  ;;  %s246_s1 = int_to_ptr.vmem [resolvable:$true] %s245_s1 }
  0x5e   : > { %p6927_p8 = scmp.ne.s32.totalorder %s6918_s18, 0  ;;  %p5530_p1 = scmp.lt.u32.totalorder %s5523_s9, %s6881_s4 }
  0x60   : > { %p6928_p0 = pneg %p6927_p8 }
  0x62   : > { %p5526_p9 = pnand %p5524_p2, %p6928_p0 }
  0x64   : > { %p5527_p10 = pneg %p5526_p9 }
  0x66   : > { %p5532_p4 = pnand %p5530_p1, %p5527_p10 }
  0x68   : > { %5535 = shalt.err (!%p5532_p4)
}
  0x69   : > { %s5536_s30 = scalar_lea.vmem %s246_s1, 512  ;;  %p6929_p11 = pmov %p6928_p0 }
  0x6a   : > { %p5537_p5 = scmp.ne.s32.totalorder %s246_s1, %s5536_s30  ;;  %p5544_p7 = scmp.lt.s32.totalorder %s246_s1, %s246_s1 }
  0x6b   : > { %p5545_p6 = scmp.lt.s32.totalorder %s5536_s30, %s5536_s30 }
  0x6c   : > { %p5539_p13 = pnand %p5537_p5, %p6929_p11 }
  0x6d   : > { %p5546_p12 = por %p5545_p6, %p5544_p7 }
  0x6e   : > { %p5540_p3 = pneg %p5539_p13 }
  0x70   : > { %p5547_p0 = pnand %p5546_p12, %p5540_p3 }
  0x72   : > { %5550 = shalt.err (!%p5547_p0)
}
  0x73   : > { %5271 = dma.hbm_to_vmem [thread:$0]  (!%p6927_p8), %s6881_s4, 512, %s246_s1, [#allocation9], %s6926_s29, %s6926_s29, %s6925_s22  }
  0x74   : > { %s5927_s17 = scalar_lea.hbm %s6877_s0, %s5847_s19  ;;  %s269_s18 = scalar_lea.vmem [#allocation2], %s5819_s20 }
  0x75   : > { %s276_s10 = sshll.u32 %s269_s18, 4  ;;  %s6930_s9 = sand.u32 1, %s5681_s26   ;;  %s5930_s10 = int_to_ptr.vmem [resolvable:$true] %s276_s10 }
  0x76   : > { %s5934_s16 = scalar_lea.sflag [#allocation3], %s6930_s9  ;;  %s5551_s3 = scalar_lea.hbm %s5927_s17, 1024 }
  0x77   : > { %p5552_p6 = scmp.ne.s32.totalorder %s5927_s17, %s5551_s3  ;;  %p6931_p12 = scmp.ne.s32.totalorder %s6924_s21, 0 }
  0x78   : > { %s5556_s24 = scalar_lea.hbm %s6877_s0, 2048  ;;  %p5557_p9 = scmp.lt.u32.totalorder %s5927_s17, %s6877_s0 }
  0x79   : > { %p5554_p2 = pnand %p5552_p6, %p6931_p12  ;;  %p5558_p10 = scmp.lt.u32.totalorder %s5556_s24, %s5551_s3 }
  0x7a   : > { %p5560_p4 = scmp.lt.u32.totalorder %s5551_s3, %s5927_s17 }
  0x7b   : > { %p5555_p8 = pneg %p5554_p2  ;;  %p5559_p1 = por %p5558_p10, %p5557_p9 }
  0x7d   : > { %p5561_p5 = por %p5560_p4, %p5559_p1 }
  0x7f   : > { %p5562_p11 = pnand %p5561_p5, %p5555_p8 }
  0x81   : > { %5565 = shalt.err (!%p5562_p11)
}
  0x82   : > { %s5566_s23 = scalar_lea.vmem %s5930_s10, 1024  ;;  %s5692_s18 = smov [#allocation2]  }
  0x83   : > { %p5567_p13 = scmp.ne.s32.totalorder %s5930_s10, %s5566_s23  ;;  %s5571_s9 = sshll.u32 %s5692_s18, 4  ;;  %s5572_s9 = int_to_ptr.vmem [resolvable:$false] %s5571_s9 }
  0x84   : > { %s5573_s1 = scalar_lea.vmem %s5572_s9, 2048  ;;  %p5574_p0 = scmp.lt.s32.totalorder %s5930_s10, %s5572_s9 }
  0x85   : > { %p5569_p3 = pnand %p5567_p13, %p6931_p12  ;;  %p5575_p6 = scmp.lt.s32.totalorder %s5573_s1, %s5566_s23 }
  0x87   : > { %p5570_p7 = pneg %p5569_p3  ;;  %p5576_p2 = por %p5575_p6, %p5574_p0 }
  0x89   : > { %p5577_p9 = pnand %p5576_p2, %p5570_p7 }
  0x8b   : > { %5580 = shalt.err (!%p5577_p9)
}
  0x8c   : > { %p6932_p8 = scmp.ne.s32.totalorder %s6922_s8, 0  ;;  %s5965_s24 = scalar_lea.hbm %s6879_s2, %s5847_s19 }
  0x8d   : > { %s311_s27 = scalar_lea.vmem [#allocation7], %s5819_s20  ;;  %s5581_s23 = scalar_lea.hbm %s5965_s24, 1024 }
  0x8e   : > { %5275 = dma.hbm_to_vmem [thread:$0]  (!%p6932_p8), %s5927_s17, 1024, %s5930_s10, %s5934_s16, %s6926_s29, %s6926_s29, %s6925_s22  }
  0x8f   : > { %s318_s14 = sshll.u32 %s311_s27, 4  ;;  %p5582_p10 = scmp.ne.s32.totalorder %s5965_s24, %s5581_s23  ;;  %s5968_s14 = int_to_ptr.vmem [resolvable:$true] %s318_s14 }
  0x90   : > { %s5586_s10 = scalar_lea.hbm %s6879_s2, 2048  ;;  %p5587_p5 = scmp.lt.u32.totalorder %s5965_s24, %s6879_s2 }
  0x91   : > { %p5584_p1 = pnand %p5582_p10, %p6931_p12  ;;  %p5588_p11 = scmp.lt.u32.totalorder %s5586_s10, %s5581_s23 }
  0x92   : > { %p5590_p3 = scmp.lt.u32.totalorder %s5581_s23, %s5965_s24 }
  0x93   : > { %p5585_p4 = pneg %p5584_p1  ;;  %p5589_p13 = por %p5588_p11, %p5587_p5 }
  0x95   : > { %p5591_p7 = por %p5590_p3, %p5589_p13 }
  0x97   : > { %p5592_p0 = pnand %p5591_p7, %p5585_p4 }
  0x99   : > { %5595 = shalt.err (!%p5592_p0)
}
  0x9a   : > { %s5596_s20 = scalar_lea.vmem %s5968_s14, 1024  ;;  %s5693_s9 = smov [#allocation7]  }
  0x9b   : > { %p5597_p6 = scmp.ne.s32.totalorder %s5968_s14, %s5596_s20  ;;  %s5601_s1 = sshll.u32 %s5693_s9, 4  ;;  %s5602_s1 = int_to_ptr.vmem [resolvable:$false] %s5601_s1 }
  0x9c   : > { %s5603_s3 = scalar_lea.vmem %s5602_s1, 2048  ;;  %p5604_p10 = scmp.lt.s32.totalorder %s5968_s14, %s5602_s1 }
  0x9d   : > { %p5599_p2 = pnand %p5597_p6, %p6931_p12  ;;  %p5605_p1 = scmp.lt.s32.totalorder %s5603_s3, %s5596_s20 }
  0x9f   : > { %p5600_p9 = pneg %p5599_p2  ;;  %p5606_p5 = por %p5605_p1, %p5604_p10 }
  0xa1   : > { %p5607_p11 = pnand %p5606_p5, %p5600_p9 }
  0xa3   : > { %5610 = shalt.err (!%p5607_p11)
}
  0xa4   : > { %5281 = dma.hbm_to_vmem [thread:$0]  (!%p6932_p8), %s5965_s24, 1024, %s5968_s14, %s5867_s11, %s6926_s29, %s6926_s29, %s6925_s22  }
  0xa5   : > { %p6933_p12 = scmp.ne.s32.totalorder %s6917_s15, 0 }
  0xa7   : > { %330 = sbr.rel (%p6933_p12) target bundleno = 1623 (0x657), region = 48 }
  0xae   : > { %s5998_s21 = sand.u32 1, %s5677_s25   ;;  %p6934_p4 = scmp.ne.s32.totalorder %s6913_s12, 0 }
  0xaf   : > { %s4773_s30 = sshll.u32 %s5998_s21, 6  ;;  %s333_s27 = scalar_lea.sflag [#allocation3], %s5998_s21 }
  0xb0   : > { %s6002_s23 = scalar_lea.vmem [#allocation2], %s4773_s30 }
  0xb1   : > { %5656 = dma.done.wait (%p6934_p4), %s333_s27, 1024  }
  0xb2   : > { %5658 = vsyncadd (%p6934_p4), %s333_s27, 4294966272  ;;  %s341_s8 = sand.u32 1, %s5763_s28   ;;  %s6009_s11 = scalar_lea.vmem [#allocation5], %s4773_s30 }
  0xb3   : > { %s342_s15 = scalar_lea.sflag [#allocation6], %s341_s8 }
  0xb4   : > { %5660 = dma.done.wait (%p6934_p4), %s342_s15, 2048  }
  0xb5   : > { %5662 = vsyncadd (%p6934_p4), %s342_s15, 4294965248  ;;  %s6015_s22 = scalar_lea.vmem [#allocation7], %s4773_s30  ;;  %p6935_p8 = scmp.eq.s32.totalorder %s5763_s28, 0 }
  0xb7   : > { %5664 = dma.done.wait (%p6935_p8), [#allocation9], 2048   ;;  %p6936_p13 = pmov %p6935_p8 }
  0xb8   : > { %v406_v0 = vld [vmem:[#allocation8] sm:$0xff]  ;;  %v407_v1 = vld [vmem:[#allocation8 + $0x8] sm:$0xff]  ;;  %vm423_vm0 = vcmask 261120   ;;  %v408_v5 = vld [vmem:[#allocation8 + $0x10] sm:$0xff]  ;;  %v5694_v38 = vmov 0.0   ;;  %vm5695_vm1 = vmmov 0  }
  0xb9   : > { %5666 = vsyncadd (%p6936_p13), [#allocation9], 4294965248  ;;  %v554_v2 = vld [vmem:[#allocation8 + $0x20] sm:$0xff]  ;;  %v5215_v3 = vpack.c.bf16 %v407_v1, %v406_v0  ;;  %v555_v4 = vld [vmem:[#allocation8 + $0x28] sm:$0xff]  ;;  %vm847_vm2 = vcmask 64512   ;;  %s5696_s18 = smov 120  }
  0xba   : > { %v409_v6 = vld [vmem:[#allocation8 + $0x18] sm:$0xff]  ;;  %v5223_v7 = vpack.c.bf16 %v555_v4, %v554_v2  ;;  %v556_v9 = vld [vmem:[#allocation8 + $0x30] sm:$0xff]  ;;  %v411_v11 = vld [vmem:[%s6002_s23] sm:$0xff]  ;;  %s5697_s17 = smov 112   ;;  %s5698_s10 = smov 104   ;;  %vm4459_vm3 = vcmask 1041409  }
  0xbb   : > { %v5219_v8 = vpack.c.bf16 %v409_v6, %v408_v5  ;;  %v557_v10 = vld [vmem:[#allocation8 + $0x38] sm:$0xff]  ;;  %5216 = vmatprep.subr.bf16.mxu0 %v5215_v3  ;;  %4992 = vmatprep.mubr.msk.f32.mxu0 %vm423_vm0, %v411_v11  ;;  %v559_v13 = vld [vmem:[%s6009_s11] sm:$0xff]  ;;  %v412_v14 = vld [vmem:[%s6002_s23 + $0x8] sm:$0xff]  ;;  %vm4461_vm4 = vcmask 1042434   ;;  %vm4463_vm5 = vcmask 1043459   ;;  %vm4465_vm6 = vcmask 1044484  }
  0xbc   : > { %v5227_v12 = vpack.c.bf16 %v557_v10, %v556_v9  ;;  %5224 = vmatprep.subr.bf16.mxu1 %v5223_v7  ;;  %5218 = vmatpush3.bf16.msra.mxu0 %v5215_v3  ;;  %v701_v15 = vld [vmem:[#allocation8 + $0x40] sm:$0xff]  ;;  %v702_v16 = vld [vmem:[#allocation8 + $0x48] sm:$0xff]  ;;  %v703_v17 = vld [vmem:[#allocation8 + $0x50] sm:$0xff]  ;;  %vm4467_vm7 = vcmask 1045509   ;;  %vm4469_vm8 = vcmask 1046534   ;;  %vm2584_vm9 = vcmask 130112  }
  0xbd   : > { %5226 = vmatpush3.bf16.msra.mxu1 %v5223_v7  ;;  %5220 = vmatprep.subr.bf16.mxu0 %v5219_v8  ;;  %v560_v18 = vld [vmem:[%s6009_s11 + $0x8] sm:$0xff]  ;;  %v413_v19 = vld [vmem:[%s6002_s23 + $0x10] sm:$0xff]  ;;  %v5231_v20 = vpack.c.bf16 %v702_v16, %v701_v15  ;;  %v704_v21 = vld [vmem:[#allocation8 + $0x58] sm:$0xff]  ;;  %vm3489_vm10 = vcmask 195712   ;;  %vm4471_vm11 = vcmask 1047559   ;;  %vm4394_vm12 = vcmask 261312  }
  0xbe   : > { %5228 = vmatprep.subr.bf16.mxu1 %v5227_v12  ;;  %5012 = vmatprep.mubr.msk.f32.mxu1 %vm423_vm0, %v559_v13  ;;  %v561_v22 = vld [vmem:[%s6009_s11 + $0x10] sm:$0xff]  ;;  %v5235_v23 = vpack.c.bf16 %v704_v21, %v703_v17  ;;  %v414_v24 = vld [vmem:[%s6002_s23 + $0x18] sm:$0xff]  ;;  %v415_v25 = vld [vmem:[%s6002_s23 + $0x20] sm:$0xff]  ;;  %vm4523_vm13 = vcmask 130048   ;;  %vm4525_vm14 = vcmask 195584   ;;  %s4778_s20 = sshll.u32 %s5998_s21, 3 }
  0xbf   : > { %v562_v26 = vld [vmem:[%s6009_s11 + $0x18] sm:$0xff]  ;;  %v563_v27 = vld [vmem:[%s6009_s11 + $0x20] sm:$0xff]  ;;  %v416_v28 = vld [vmem:[%s6002_s23 + $0x28] sm:$0xff]  ;;  %s4873_s3 = sshll.u32 %s5763_s28, 7  ;;  %s402_s30 = scalar_lea.vmem [#allocation11], %s4778_s20 }
  0xc0   : > { %5222 = vmatpush3.bf16.msra.mxu0 %v5219_v8  ;;  %v417_v29 = vld [vmem:[%s6002_s23 + $0x30] sm:$0xff]  ;;  %v564_v30 = vld [vmem:[%s6009_s11 + $0x28] sm:$0xff]  ;;  %v418_v32 = vld [vmem:[%s6002_s23 + $0x38] sm:$0xff]  ;;  %s4626_s27 = sshll.u32 %s402_s30, 4  ;;  %s6832_s15 = scalar_lea.hbm %s6884_s7, %s4873_s3  ;;  %s6834_s27 = int_to_ptr.vmem [resolvable:$true] %s4626_s27 }
  0xc1   : > { %5230 = vmatpush3.bf16.msra.mxu1 %v5227_v12  ;;  %5232 = vmatprep.subr.bf16.mxu0 %v5231_v20  ;;  %v565_v31 = vld [vmem:[%s6009_s11 + $0x30] sm:$0xff]  ;;  %v566_v33 = vld [vmem:[%s6009_s11 + $0x38] sm:$0xff]  ;;  %v706_v34 = vld [vmem:[%s6015_s22] sm:$0xff]  ;;  %s4613_s11 = scalar_lea.sflag [#allocation4], %s5998_s21  ;;  %p6945_p7 = scmp.ne.s32.totalorder %s6914_s13, 0 }
  0xc2   : > { %5245 = vmatprep.subr.bf16.mxu1 %v5231_v20  ;;  %v712_v35 = vld [vmem:[%s6015_s22 + $0x30] sm:$0xff]  ;;  %v713_v36 = vld [vmem:[%s6015_s22 + $0x38] sm:$0xff]  ;;  %v707_v37 = vld [vmem:[%s6015_s22 + $0x8] sm:$0xff]  ;;  %s5701_s28 = smov [#allocation11]  }
  0xc3   : > { %4993 = vmatmul.mubr.msk.f32.vlgmr.msra.gmra.mrb[0].mxu0 %vm423_vm0, %v412_v14  ;;  %v708_v39 = vld [vmem:[%s6015_s22 + $0x10] sm:$0xff]  ;;  %v709_v40 = vld [vmem:[%s6015_s22 + $0x18] sm:$0xff]  ;;  %v710_v41 = vld [vmem:[%s6015_s22 + $0x20] sm:$0xff]  ;;  %s5615_s12 = sshll.u32 %s5701_s28, 4  ;;  %s5616_s12 = int_to_ptr.vmem [resolvable:$false] %s5615_s12 }
  0xc4   : > { %5013 = vmatmul.mubr.msk.f32.vlgmr.msra.gmra.mrb[0].mxu1 %vm423_vm0, %v560_v18  ;;  %4995 = vmatprep.mubr.msk.f32.mxu0 %vm423_vm0, %v413_v19  ;;  %v711_v42 = vld [vmem:[%s6015_s22 + $0x28] sm:$0xff]  ;;  %v6078_v43 = vld [vmem:[%s6882_s5] ss:$0 sm:$0xff]  ;;  %v6083_v44 = vld [vmem:[%s6882_s5 + $0x1] ss:$0 sm:$0xff]  ;;  %s5611_s22 = scalar_lea.vmem %s6834_s27, 128  ;;  %p5618_p2 = scmp.lt.s32.totalorder %s6834_s27, %s5616_s12 }
  0xc5   : > { %5015 = vmatprep.mubr.msk.f32.mxu1 %vm423_vm0, %v561_v22  ;;  %5247 = vmatpush3.bf16.msra.mxu1 %v5231_v20  ;;  %p5612_p3 = scmp.ne.s32.totalorder %s6834_s27, %s5611_s22  ;;  %s5617_s29 = scalar_lea.vmem %s5616_s12, 256 }
  0xc6   : > { %5246 = vmatprep.subr.bf16.mxu1 %v5235_v23  ;;  %5234 = vmatpush3.bf16.msra.mxu0 %v5231_v20  ;;  %p5619_p9 = scmp.lt.s32.totalorder %s5617_s29, %s5611_s22 }
  0xc7   : > { %4996 = vmatmul.mubr.msk.f32.gmra.mrb[2].mxu0 %vm423_vm0, %v414_v24  ;;  %5236 = vmatprep.subr.bf16.mxu0 %v5235_v23  ;;  %p5613_p0 = pnand %p5612_p3, %p6945_p7 }
  0xc8   : > { %4998 = vmatprep.mubr.msk.f32.mxu0 %vm423_vm0, %v415_v25  ;;  %5016 = vmatmul.mubr.msk.f32.gmra.mrb[2].mxu1 %vm423_vm0, %v562_v26  ;;  %p5620_p10 = por %p5619_p9, %p5618_p2 }
  0xc9   : > { %5018 = vmatprep.mubr.msk.f32.mxu1 %vm423_vm0, %v563_v27  ;;  %5248 = vmatpush3.bf16.msra.mxu1 %v5235_v23  ;;  %p5614_p6 = pneg %p5613_p0 }
  0xca   : > { %5238 = vmatpush3.bf16.msra.mxu0 %v5235_v23  ;;  %5044 = vmatprep.subr.mxu1 %v5694_v38 }
  0xcb   : > { %4999 = vmatmul.mubr.msk.f32.gmra.mrb[4].mxu0 %vm423_vm0, %v416_v28  ;;  %5064 = vmatprep.subr.mxu0 %v5694_v38  ;;  %p5621_p1 = pnand %p5620_p10, %p5614_p6 }
  0xcc   : > { %5001 = vmatprep.mubr.msk.f32.mxu0 %vm423_vm0, %v417_v29  ;;  %5019 = vmatmul.mubr.msk.f32.gmra.mrb[4].mxu1 %vm423_vm0, %v564_v30 }
  0xcd   : > { %5021 = vmatprep.mubr.msk.f32.mxu1 %vm423_vm0, %v565_v31 }
  0xcf   : > { %5002 = vmatmul.mubr.msk.f32.gmra.mrb[6].mxu0 %vm423_vm0, %v418_v32 }
  0xd0   : > { %5022 = vmatmul.mubr.msk.f32.gmra.mrb[6].mxu1 %vm423_vm0, %v566_v33  ;;  %5032 = vmatprep.mubr.msk.f32.mxu0 %vm423_vm0, %v706_v34 }
  0xd1   : > { %5041 = vmatprep.mubr.msk.f32.mxu1 %vm423_vm0, %v712_v35 }
  0xd3   : > { %5033 = vmatmul.mubr.msk.f32.vlgmr.msra.gmra.mrb[8].mxu0 %vm423_vm0, %v707_v37 }
  0xd4   : > { %5042 = vmatmul.mubr.msk.f32.vlgmr.msra.gmra.mrb[8].mxu1 %vm423_vm0, %v713_v36  ;;  %5035 = vmatprep.mubr.msk.f32.mxu0 %vm423_vm0, %v708_v39 }
  0xd5   : > { %5046 = vmatprep.mubr.msk.f32.mxu1 %vm5695_vm1, %v5694_v38 }
  0xd7   : > { %5036 = vmatmul.mubr.msk.f32.gmra.mrb[10].mxu0 %vm423_vm0, %v709_v40 }
  0xd8   : > { %5038 = vmatprep.mubr.msk.f32.mxu0 %vm423_vm0, %v710_v41 }
  0xdb   : > { %5039 = vmatmul.mubr.msk.f32.gmra.mrb[12].mxu0 %vm423_vm0, %v711_v42 }
  0xdc   : > { %5066 = vmatprep.mubr.msk.f32.mxu0 %vm5695_vm1, %v5694_v38 }
 0x196   : > { %v4994_v45 = vpop.f32.mrb[0].mxu0 }
 0x197   : > { %v520_v46 = vadd.f32 %v4994_v45, %v6078_v43  ;;  %v5014_v47 = vpop.f32.mrb[0].mxu1  ;;  %v514_v48 = vpop.f32.mrb[1].mxu0 }
 0x198   : > { %v667_v49 = vadd.f32 %v5014_v47, %v6083_v44  ;;  %v515_v50 = vadd.f32 %v6078_v43, %v514_v48  ;;  %v661_v51 = vpop.f32.mrb[1].mxu1 }
 0x199   : > { %1816 = vrot.lane.b32.xlu0 %v520_v46, %s5696_s18  ;;  %v662_v53 = vadd.f32 %v6083_v44, %v661_v51 }
 0x19a   : > { %1814 = vrot.lane.b32.xlu1 %v667_v49, %s5696_s18  ;;  %5045 = vmatpush3.xpose.msk.msra.mxu1 %vm847_vm2, %v515_v50  ;;  %v4997_v52 = vpop.f32.mrb[2].mxu0 }
 0x19b   : > { %v524_v54 = vpop.f32.mrb[3].mxu0  ;;  %5049 = vmatprep.subr.mxu1 %v5694_v38  ;;  %v5017_v55 = vpop.f32.mrb[2].mxu1  ;;  %v6118_v2 = vadd.f32 %v4997_v52, %v6078_v43 }
 0x19c   : > { %v671_v56 = vpop.f32.mrb[3].mxu1  ;;  %v6097_v57 = vadd.f32 %v6078_v43, %v524_v54  ;;  %v677_v8 = vadd.f32 %v5017_v55, %v6083_v44 }
 0x19d   : > { %1738 = vrot.lane.b32.xlu0 %v515_v50, %s5696_s18  ;;  %5047 = vmatmul.mubr.msk.f32.vlgmr.msra.gmra.mrb[10].mxu1 %vm847_vm2, %v662_v53  ;;  %v6107_v63 = vadd.f32 %v6083_v44, %v671_v56 }
 0x19e   : > { %2721 = vrot.lane.b32.xlu1 %v520_v46, %s5697_s17  ;;  %v5000_v58 = vpop.f32.mrb[4].mxu0  ;;  %5050 = vmatpush3.xpose.msk.msra.mxu1 %vm847_vm2, %v520_v46 }
 0x19f   : > { %v534_v59 = vpop.f32.mrb[5].mxu0  ;;  %5051 = vmatprep.mubr.msk.f32.mxu1 %vm5695_vm1, %v5694_v38  ;;  %v5020_v60 = vpop.f32.mrb[4].mxu1  ;;  %5054 = vmatprep.subr.mxu1 %v5694_v38  ;;  %v540_v9 = vadd.f32 %v5000_v58, %v6078_v43 }
 0x1a0   : > { %v6104_v61 = vadd.f32 %v6078_v43, %v534_v59  ;;  %v681_v62 = vpop.f32.mrb[5].mxu1  ;;  %v687_v10 = vadd.f32 %v5020_v60, %v6083_v44 }
 0x1a1   : > { %2643 = vrot.lane.b32.xlu0 %v515_v50, %s5697_s17  ;;  %5052 = vmatmul.mubr.msk.f32.vlgmr.msra.gmra.mrb[12].mxu1 %vm847_vm2, %v667_v49  ;;  %v6113_v1 = vadd.f32 %v6083_v44, %v681_v62 }
 0x1a2   : > { %2719 = vrot.lane.b32.xlu1 %v667_v49, %s5697_s17  ;;  %v5003_v0 = vpop.f32.mrb[6].mxu0  ;;  %5055 = vmatpush3.xpose.msk.msra.mxu1 %vm847_vm2, %v6097_v57 }
 0x1a3   : > { %5065 = vmatpush3.xpose.msk.msra.mxu0 %vm847_vm2, %v6104_v61  ;;  %v544_v3 = vpop.f32.mrb[7].mxu0  ;;  %5056 = vmatprep.mubr.msk.f32.mxu1 %vm5695_vm1, %v5694_v38  ;;  %v5023_v4 = vpop.f32.mrb[6].mxu1  ;;  %v550_v11 = vadd.f32 %v5003_v0, %v6078_v43 }
 0x1a4   : > { %v6125_v5 = vadd.f32 %v6078_v43, %v544_v3  ;;  %5074 = vmatprep.subr.mxu0 %v5694_v38  ;;  %5059 = vmatprep.subr.mxu1 %v5694_v38  ;;  %v691_v6 = vpop.f32.mrb[7].mxu1  ;;  %v697_v12 = vadd.f32 %v5023_v4, %v6083_v44 }
 0x1a5   : > { %2641 = vrot.lane.b32.xlu0 %v662_v53, %s5697_s17  ;;  %5057 = vmatmul.mubr.msk.f32.vlgmr.msra.gmra.mrb[14].mxu1 %vm847_vm2, %v6107_v63  ;;  %v6136_v7 = vadd.f32 %v6083_v44, %v691_v6 }
 0x1a6   : > { %3626 = vrot.lane.b32.xlu1 %v520_v46, %s5698_s10  ;;  %5067 = vmatmul.mubr.msk.f32.vlgmr.msra.gmra.mrb[14].mxu0 %vm847_vm2, %v6113_v1  ;;  %v6232_v15 = vpop.f32.mrb[8].mxu0 }
 0x1a7   : > { %5060 = vmatpush3.xpose.msk.msra.mxu1 %vm847_vm2, %v6118_v2  ;;  %5075 = vmatpush3.xpose.msk.msra.mxu0 %vm847_vm2, %v6125_v5  ;;  %v6224_v13 = vpop.f32.mrb[8].mxu1  ;;  %v6236_v16 = vpop.f32.mrb[9].mxu0 }
 0x1a8   : > { %5061 = vmatprep.mubr.msk.f32.mxu1 %vm5695_vm1, %v5694_v38  ;;  %5076 = vmatprep.mubr.msk.f32.mxu0 %vm5695_vm1, %v5694_v38  ;;  %6937 = vst [vmem:[#allocation21_spill] sm:$0xff] %v6224_v13  ;;  %v6227_v14 = vpop.f32.mrb[9].mxu1 }
 0x1a9   : > { %3548 = vrot.lane.b32.xlu0 %v515_v50, %s5698_s10  ;;  %5069 = vmatprep.subr.mxu1 %v5694_v38  ;;  %6938 = vst [vmem:[#allocation22_spill] sm:$0xff] %v6227_v14 }
 0x1aa   : > { %3624 = vrot.lane.b32.xlu1 %v667_v49, %s5698_s10  ;;  %5077 = vmatmul.mubr.msk.f32.vlgmr.msra.gmra.mrb[16].mxu0 %vm847_vm2, %v6136_v7  ;;  %v6239_v17 = vpop.f32.mrb[10].mxu0 }
 0x1ab   : > { %5062 = vmatmul.mubr.msk.f32.vlgmr.msra.gmra.mrb[16].mxu1 %vm847_vm2, %v677_v8  ;;  %5084 = vmatprep.subr.mxu0 %v5694_v38  ;;  %6939 = vst [vmem:[#allocation23_spill] sm:$0xff] %v6239_v17  ;;  %v6241_v18 = vpop.f32.mrb[11].mxu0 }
 0x1ac   : > { %5070 = vmatpush3.xpose.msk.msra.mxu1 %vm847_vm2, %v540_v9  ;;  %5071 = vmatprep.mubr.msk.f32.mxu1 %vm5695_vm1, %v5694_v38 }
 0x1ad   : > { %3546 = vrot.lane.b32.xlu0 %v662_v53, %s5698_s10  ;;  %5079 = vmatprep.subr.mxu1 %v5694_v38 }
 0x1ae   : > { %1736 = vrot.lane.b32.xlu1 %v662_v53, %s5696_s18  ;;  %5086 = vmatprep.mubr.msk.f32.mxu0 %vm5695_vm1, %v5694_v38  ;;  %v6243_v19 = vpop.f32.mrb[12].mxu0 }
 0x1af   : > { %5072 = vmatmul.mubr.msk.f32.vlgmr.msra.gmra.mrb[18].mxu1 %vm847_vm2, %v687_v10  ;;  %6940 = vst [vmem:[#allocation24_spill] sm:$0xff] %v6243_v19  ;;  %v6245_v20 = vpop.f32.mrb[13].mxu0 }
 0x1b0   : > { %5080 = vmatpush3.xpose.msk.msra.mxu1 %vm847_vm2, %v550_v11  ;;  %5081 = vmatprep.mubr.msk.f32.mxu1 %vm5695_vm1, %v5694_v38 }
 0x1b1   : > { %1894 = vrot.lane.b32.xlu0 %v6097_v57, %s5696_s18  ;;  %5089 = vmatprep.subr.mxu1 %v5694_v38 }
 0x1b2   : > { %1972 = vrot.lane.b32.xlu1 %v6118_v2, %s5696_s18 }
 0x1b3   : > { %5082 = vmatmul.mubr.msk.f32.vlgmr.msra.gmra.mrb[20].mxu1 %vm847_vm2, %v697_v12 }
 0x1b4   : > { %5091 = vmatprep.mubr.msk.f32.mxu1 %vm5695_vm1, %v5694_v38 }
 0x1b5   : > { %1892 = vrot.lane.b32.xlu0 %v6107_v63, %s5696_s18 }
 0x1b6   : > { %1970 = vrot.lane.b32.xlu1 %v677_v8, %s5696_s18 }
 0x1b9   : > { %2799 = vrot.lane.b32.xlu0 %v6097_v57, %s5697_s17 }
 0x1ba   : > { %2877 = vrot.lane.b32.xlu1 %v6118_v2, %s5697_s17 }
 0x1bd   : > { %2797 = vrot.lane.b32.xlu0 %v6107_v63, %s5697_s17 }
 0x1be   : > { %2875 = vrot.lane.b32.xlu1 %v677_v8, %s5697_s17 }
 0x1c1   : > { %2050 = vrot.lane.b32.xlu0 %v6104_v61, %s5696_s18 }
 0x1c2   : > { %2128 = vrot.lane.b32.xlu1 %v540_v9, %s5696_s18 }
 0x1c5   : > { %2048 = vrot.lane.b32.xlu0 %v6113_v1, %s5696_s18 }
 0x1c6   : > { %2126 = vrot.lane.b32.xlu1 %v687_v10, %s5696_s18 }
 0x1c9   : > { %2955 = vrot.lane.b32.xlu0 %v6104_v61, %s5697_s17 }
 0x1ca   : > { %3033 = vrot.lane.b32.xlu1 %v540_v9, %s5697_s17 }
 0x1cd   : > { %2953 = vrot.lane.b32.xlu0 %v6113_v1, %s5697_s17 }
 0x1ce   : > { %3031 = vrot.lane.b32.xlu1 %v687_v10, %s5697_s17 }
 0x1d1   : > { %2206 = vrot.lane.b32.xlu0 %v6125_v5, %s5696_s18 }
 0x1d2   : > { %2284 = vrot.lane.b32.xlu1 %v550_v11, %s5696_s18 }
 0x1d5   : > { %2204 = vrot.lane.b32.xlu0 %v6136_v7, %s5696_s18 }
 0x1d6   : > { %2282 = vrot.lane.b32.xlu1 %v697_v12, %s5696_s18 }
 0x1d9   : > { %3704 = vrot.lane.b32.xlu0 %v6097_v57, %s5698_s10 }
 0x1da   : > { %3189 = vrot.lane.b32.xlu1 %v550_v11, %s5697_s17 }
 0x1dd   : > { %3702 = vrot.lane.b32.xlu0 %v6107_v63, %s5698_s10 }
 0x1de   : > { %3187 = vrot.lane.b32.xlu1 %v697_v12, %s5697_s17 }
 0x1e1   : > { %3111 = vrot.lane.b32.xlu0 %v6125_v5, %s5697_s17 }
 0x1e2   : > { %3782 = vrot.lane.b32.xlu1 %v6118_v2, %s5698_s10 }
 0x1e5   : > { %3109 = vrot.lane.b32.xlu0 %v6136_v7, %s5697_s17 }
 0x1e6   : > { %3780 = vrot.lane.b32.xlu1 %v677_v8, %s5698_s10 }
 0x1e9   : > { %3860 = vrot.lane.b32.xlu0 %v6104_v61, %s5698_s10 }
 0x1ea   : > { %3938 = vrot.lane.b32.xlu1 %v540_v9, %s5698_s10 }
 0x1ed   : > { %3858 = vrot.lane.b32.xlu0 %v6113_v1, %s5698_s10 }
 0x1ee   : > { %3936 = vrot.lane.b32.xlu1 %v687_v10, %s5698_s10 }
 0x1f1   : > { %4016 = vrot.lane.b32.xlu0 %v6125_v5, %s5698_s10 }
 0x1f2   : > { %4094 = vrot.lane.b32.xlu1 %v550_v11, %s5698_s10 }
 0x1f5   : > { %4014 = vrot.lane.b32.xlu0 %v6136_v7, %s5698_s10 }
 0x1f6   : > { %4092 = vrot.lane.b32.xlu1 %v697_v12, %s5698_s10 }
 0x20b   : > { %v1817_v21 = vpop.permute.xlu0 %1816 }
 0x20c   : > { %v1815_v22 = vpop.permute.xlu1 %1814  ;;  %5090 = vmatpush3.xpose.msk.msra.mxu1 %vm847_vm2, %v1817_v21 }
 0x20d   : > { %5099 = vmatprep.subr.mxu1 %v5694_v38 }
 0x20f   : > { %v1739_v23 = vpop.permute.xlu0 %1738  ;;  %5092 = vmatmul.mubr.msk.f32.vlgmr.msra.gmra.mrb[22].mxu1 %vm847_vm2, %v1815_v22 }
 0x210   : > { %v2722_v24 = vpop.permute.xlu1 %2721  ;;  %5085 = vmatpush3.xpose.msk.msra.mxu0 %vm847_vm2, %v1739_v23  ;;  %5101 = vmatprep.mubr.msk.f32.mxu1 %vm5695_vm1, %v5694_v38 }
 0x211   : > { %5094 = vmatprep.subr.mxu0 %v5694_v38 }
 0x213   : > { %v2644_v25 = vpop.permute.xlu0 %2643 }
 0x214   : > { %v2720_v26 = vpop.permute.xlu1 %2719 }
 0x217   : > { %v2642_v27 = vpop.permute.xlu0 %2641 }
 0x218   : > { %v6254_v28 = vpop.permute.xlu1 %3626 }
 0x21b   : > { %v6256_v29 = vpop.permute.xlu0 %3548 }
 0x21c   : > { %v6258_v30 = vpop.permute.xlu1 %3624 }
 0x21f   : > { %v6260_v31 = vpop.permute.xlu0 %3546 }
 0x220   : > { %v1737_v32 = vpop.permute.xlu1 %1736 }
 0x221   : > { %5087 = vmatmul.mubr.msk.f32.vlgmr.msra.gmra.mrb[18].mxu0 %vm847_vm2, %v1737_v32 }
 0x222   : > { %5096 = vmatprep.mubr.msk.f32.mxu0 %vm5695_vm1, %v5694_v38 }
 0x223   : > { %v1895_v33 = vpop.permute.xlu0 %1894 }
 0x224   : > { %v1973_v34 = vpop.permute.xlu1 %1972  ;;  %5095 = vmatpush3.xpose.msk.msra.mxu0 %vm847_vm2, %v1895_v33 }
 0x225   : > { %5100 = vmatpush3.xpose.msk.msra.mxu1 %vm847_vm2, %v1973_v34  ;;  %5104 = vmatprep.subr.mxu0 %v5694_v38 }
 0x226   : > { %5109 = vmatprep.subr.mxu1 %v5694_v38 }
 0x227   : > { %v1893_v35 = vpop.permute.xlu0 %1892 }
 0x228   : > { %v1971_v36 = vpop.permute.xlu1 %1970  ;;  %5097 = vmatmul.mubr.msk.f32.vlgmr.msra.gmra.mrb[20].mxu0 %vm847_vm2, %v1893_v35 }
 0x229   : > { %5102 = vmatmul.mubr.msk.f32.vlgmr.msra.gmra.mrb[24].mxu1 %vm847_vm2, %v1971_v36  ;;  %5106 = vmatprep.mubr.msk.f32.mxu0 %vm5695_vm1, %v5694_v38 }
 0x22a   : > { %5111 = vmatprep.mubr.msk.f32.mxu1 %vm5695_vm1, %v5694_v38 }
 0x22b   : > { %v2800_v37 = vpop.permute.xlu0 %2799 }
 0x22c   : > { %v2878_v39 = vpop.permute.xlu1 %2877 }
 0x22f   : > { %v2798_v40 = vpop.permute.xlu0 %2797 }
 0x230   : > { %v2876_v41 = vpop.permute.xlu1 %2875 }
 0x233   : > { %v2051_v42 = vpop.permute.xlu0 %2050 }
 0x234   : > { %v2129_v43 = vpop.permute.xlu1 %2128  ;;  %5105 = vmatpush3.xpose.msk.msra.mxu0 %vm847_vm2, %v2051_v42 }
 0x235   : > { %5110 = vmatpush3.xpose.msk.msra.mxu1 %vm847_vm2, %v2129_v43  ;;  %5114 = vmatprep.subr.mxu0 %v5694_v38 }
 0x236   : > { %5119 = vmatprep.subr.mxu1 %v5694_v38 }
 0x237   : > { %v2049_v44 = vpop.permute.xlu0 %2048 }
 0x238   : > { %v2127_v45 = vpop.permute.xlu1 %2126  ;;  %5107 = vmatmul.mubr.msk.f32.vlgmr.msra.gmra.mrb[22].mxu0 %vm847_vm2, %v2049_v44 }
 0x239   : > { %5112 = vmatmul.mubr.msk.f32.vlgmr.msra.gmra.mrb[26].mxu1 %vm847_vm2, %v2127_v45  ;;  %5116 = vmatprep.mubr.msk.f32.mxu0 %vm5695_vm1, %v5694_v38 }
 0x23a   : > { %5121 = vmatprep.mubr.msk.f32.mxu1 %vm5695_vm1, %v5694_v38 }
 0x23b   : > { %v2956_v46 = vpop.permute.xlu0 %2955 }
 0x23c   : > { %v3034_v47 = vpop.permute.xlu1 %3033 }
 0x23f   : > { %v2954_v48 = vpop.permute.xlu0 %2953 }
 0x240   : > { %v3032_v49 = vpop.permute.xlu1 %3031 }
 0x243   : > { %v2207_v50 = vpop.permute.xlu0 %2206 }
 0x244   : > { %v2285_v51 = vpop.permute.xlu1 %2284  ;;  %5115 = vmatpush3.xpose.msk.msra.mxu0 %vm847_vm2, %v2207_v50 }
 0x245   : > { %5120 = vmatpush3.xpose.msk.msra.mxu1 %vm847_vm2, %v2285_v51  ;;  %5124 = vmatprep.subr.mxu0 %v5694_v38 }
 0x246   : > { %5129 = vmatprep.subr.mxu1 %v5694_v38 }
 0x247   : > { %v2205_v52 = vpop.permute.xlu0 %2204 }
 0x248   : > { %v2283_v53 = vpop.permute.xlu1 %2282  ;;  %5117 = vmatmul.mubr.msk.f32.vlgmr.msra.gmra.mrb[24].mxu0 %vm847_vm2, %v2205_v52 }
 0x249   : > { %5122 = vmatmul.mubr.msk.f32.vlgmr.msra.gmra.mrb[28].mxu1 %vm847_vm2, %v2283_v53  ;;  %5125 = vmatpush3.xpose.msk.msra.mxu0 %vm847_vm2, %v2644_v25 }
 0x24a   : > { %5130 = vmatpush3.xpose.msk.msra.mxu1 %vm847_vm2, %v2722_v24  ;;  %5126 = vmatprep.mubr.msk.f32.mxu0 %vm5695_vm1, %v5694_v38 }
 0x24b   : > { %5134 = vmatprep.subr.mxu0 %v5694_v38  ;;  %v3705_v54 = vpop.permute.xlu0 %3704  ;;  %5131 = vmatprep.mubr.msk.f32.mxu1 %vm5695_vm1, %v5694_v38 }
 0x24c   : > { %v3190_v55 = vpop.permute.xlu1 %3189  ;;  %5139 = vmatprep.subr.mxu1 %v5694_v38  ;;  %5127 = vmatmul.mubr.msk.f32.vlgmr.msra.gmra.mrb[26].mxu0 %vm847_vm2, %v2642_v27 }
 0x24d   : > { %5132 = vmatmul.mubr.msk.f32.vlgmr.msra.gmra.mrb[30].mxu1 %vm847_vm2, %v2720_v26  ;;  %5135 = vmatpush3.xpose.msk.msra.mxu0 %vm847_vm2, %v2800_v37 }
 0x24e   : > { %5140 = vmatpush3.xpose.msk.msra.mxu1 %vm847_vm2, %v2878_v39  ;;  %5136 = vmatprep.mubr.msk.f32.mxu0 %vm5695_vm1, %v5694_v38 }
 0x24f   : > { %5144 = vmatprep.subr.mxu0 %v5694_v38  ;;  %v3703_v56 = vpop.permute.xlu0 %3702  ;;  %5141 = vmatprep.mubr.msk.f32.mxu1 %vm5695_vm1, %v5694_v38 }
 0x250   : > { %v3188_v57 = vpop.permute.xlu1 %3187  ;;  %5149 = vmatprep.subr.mxu1 %v5694_v38  ;;  %5137 = vmatmul.mubr.msk.f32.vlgmr.msra.gmra.mrb[28].mxu0 %vm847_vm2, %v2798_v40 }
 0x251   : > { %5142 = vmatmul.mubr.msk.f32.vlgmr.msra.gmra.mrb[32].mxu1 %vm847_vm2, %v2876_v41  ;;  %5145 = vmatpush3.xpose.msk.msra.mxu0 %vm847_vm2, %v2956_v46 }
 0x252   : > { %5150 = vmatpush3.xpose.msk.msra.mxu1 %vm847_vm2, %v3034_v47  ;;  %5146 = vmatprep.mubr.msk.f32.mxu0 %vm5695_vm1, %v5694_v38 }
 0x253   : > { %5154 = vmatprep.subr.mxu0 %v5694_v38  ;;  %v3112_v58 = vpop.permute.xlu0 %3111  ;;  %5151 = vmatprep.mubr.msk.f32.mxu1 %vm5695_vm1, %v5694_v38 }
 0x254   : > { %v3783_v59 = vpop.permute.xlu1 %3782  ;;  %5159 = vmatprep.subr.mxu1 %v5694_v38  ;;  %5147 = vmatmul.mubr.msk.f32.vlgmr.msra.gmra.mrb[30].mxu0 %vm847_vm2, %v2954_v48 }
 0x255   : > { %5152 = vmatmul.mubr.msk.f32.vlgmr.msra.gmra.mrb[34].mxu1 %vm847_vm2, %v3032_v49  ;;  %5155 = vmatpush3.xpose.msk.msra.mxu0 %vm847_vm2, %v3112_v58 }
 0x256   : > { %5160 = vmatpush3.xpose.msk.msra.mxu1 %vm847_vm2, %v3190_v55  ;;  %5156 = vmatprep.mubr.msk.f32.mxu0 %vm5695_vm1, %v5694_v38 }
 0x257   : > { %5164 = vmatprep.subr.mxu0 %v5694_v38  ;;  %v3110_v60 = vpop.permute.xlu0 %3109  ;;  %5161 = vmatprep.mubr.msk.f32.mxu1 %vm5695_vm1, %v5694_v38 }
 0x258   : > { %v3781_v61 = vpop.permute.xlu1 %3780  ;;  %5169 = vmatprep.subr.mxu1 %v5694_v38  ;;  %5157 = vmatmul.mubr.msk.f32.vlgmr.msra.gmra.mrb[32].mxu0 %vm847_vm2, %v3110_v60 }
 0x259   : > { %5162 = vmatmul.mubr.msk.f32.vlgmr.msra.gmra.mrb[36].mxu1 %vm847_vm2, %v3188_v57  ;;  %5165 = vmatpush3.xpose.msk.msra.mxu0 %vm847_vm2, %v6256_v29 }
 0x25a   : > { %5170 = vmatpush3.xpose.msk.msra.mxu1 %vm847_vm2, %v6254_v28  ;;  %5166 = vmatprep.mubr.msk.f32.mxu0 %vm5695_vm1, %v5694_v38 }
 0x25b   : > { %5174 = vmatprep.subr.mxu0 %v5694_v38  ;;  %v3861_v62 = vpop.permute.xlu0 %3860  ;;  %5171 = vmatprep.mubr.msk.f32.mxu1 %vm5695_vm1, %v5694_v38 }
 0x25c   : > { %v3939_v63 = vpop.permute.xlu1 %3938  ;;  %5179 = vmatprep.subr.mxu1 %v5694_v38  ;;  %5167 = vmatmul.mubr.msk.f32.vlgmr.msra.gmra.mrb[34].mxu0 %vm847_vm2, %v6260_v31 }
 0x25d   : > { %5172 = vmatmul.mubr.msk.f32.vlgmr.msra.gmra.mrb[38].mxu1 %vm847_vm2, %v6258_v30  ;;  %5175 = vmatpush3.xpose.msk.msra.mxu0 %vm847_vm2, %v3705_v54 }
 0x25e   : > { %5180 = vmatpush3.xpose.msk.msra.mxu1 %vm847_vm2, %v3783_v59  ;;  %5176 = vmatprep.mubr.msk.f32.mxu0 %vm5695_vm1, %v5694_v38 }
 0x25f   : > { %5184 = vmatprep.subr.mxu0 %v5694_v38  ;;  %v3859_v0 = vpop.permute.xlu0 %3858  ;;  %5181 = vmatprep.mubr.msk.f32.mxu1 %vm5695_vm1, %v5694_v38 }
 0x260   : > { %v3937_v1 = vpop.permute.xlu1 %3936  ;;  %5189 = vmatprep.subr.mxu1 %v5694_v38  ;;  %5177 = vmatmul.mubr.msk.f32.vlgmr.msra.gmra.mrb[36].mxu0 %vm847_vm2, %v3703_v56 }
 0x261   : > { %5182 = vmatmul.mubr.msk.f32.vlgmr.msra.gmra.mrb[40].mxu1 %vm847_vm2, %v3781_v61  ;;  %5185 = vmatpush3.xpose.msk.msra.mxu0 %vm847_vm2, %v3861_v62 }
 0x262   : > { %5190 = vmatpush3.xpose.msk.msra.mxu1 %vm847_vm2, %v3939_v63  ;;  %5186 = vmatprep.mubr.msk.f32.mxu0 %vm5695_vm1, %v5694_v38 }
 0x263   : > { %5194 = vmatprep.subr.mxu0 %v5694_v38  ;;  %v4017_v2 = vpop.permute.xlu0 %4016  ;;  %5191 = vmatprep.mubr.msk.f32.mxu1 %vm5695_vm1, %v5694_v38 }
 0x264   : > { %v4095_v3 = vpop.permute.xlu1 %4094  ;;  %5199 = vmatprep.subr.mxu1 %v5694_v38  ;;  %5187 = vmatmul.mubr.msk.f32.vlgmr.msra.gmra.mrb[38].mxu0 %vm847_vm2, %v3859_v0 }
 0x265   : > { %5192 = vmatmul.mubr.msk.f32.vlgmr.msra.gmra.mrb[42].mxu1 %vm847_vm2, %v3937_v1  ;;  %5195 = vmatpush3.xpose.msk.msra.mxu0 %vm847_vm2, %v4017_v2 }
 0x266   : > { %5200 = vmatpush3.xpose.msk.msra.mxu1 %vm847_vm2, %v4095_v3  ;;  %5196 = vmatprep.mubr.msk.f32.mxu0 %vm5695_vm1, %v5694_v38 }
 0x267   : > { %v4015_v4 = vpop.permute.xlu0 %4014  ;;  %5201 = vmatprep.mubr.msk.f32.mxu1 %vm5695_vm1, %v5694_v38 }
 0x268   : > { %v4093_v5 = vpop.permute.xlu1 %4092  ;;  %5197 = vmatmul.mubr.msk.f32.vlgmr.msra.gmra.mrb[40].mxu0 %vm847_vm2, %v4015_v4 }
 0x269   : > { %5202 = vmatmul.mubr.msk.f32.vlgmr.msra.gmra.mrb[44].mxu1 %vm847_vm2, %v4093_v5  ;;  %5212 = vmatprep.mubr.msk.f32.mxu0 %vm5695_vm1, %v5694_v38 }
 0x270   : > { %v920_v6 = vpop.f32.mrb[10].mxu1 }
 0x271   : > { %v1456_v7 = vsel %vm847_vm2, %v920_v6, -inf  ;;  %v5048_v8 = vpop.f32.mrb[11].mxu1 }
 0x272   : > { %v1457_v9 = vrot.slane %v1456_v7, 4 }
 0x274   : > { %v1458_v10 = vmax.f32 %v1456_v7, %v1457_v9  ;;  %v996_v11 = vpop.f32.mrb[12].mxu1 }
 0x275   : > { %v1463_v12 = vsel %vm847_vm2, %v996_v11, -inf  ;;  %v5053_v21 = vpop.f32.mrb[13].mxu1 }
 0x276   : > { %v1459_v22 = vrot.slane %v1458_v10, 2  ;;  %v1464_v23 = vrot.slane %v1463_v12, 4 }
 0x278   : > { %v1460_v24 = vmax.f32 %v1458_v10, %v1459_v22  ;;  %v1465_v25 = vmax.f32 %v1463_v12, %v1464_v23  ;;  %v1072_v26 = vpop.f32.mrb[14].mxu1 }
 0x279   : > { %v1470_v27 = vsel %vm847_vm2, %v1072_v26, -inf  ;;  %v1224_v28 = vpop.f32.mrb[14].mxu0  ;;  %v5058_v29 = vpop.f32.mrb[15].mxu1 }
 0x27a   : > { %v1461_v38 = vrot.slane %v1460_v24, 1  ;;  %v1466_v30 = vrot.slane %v1465_v25, 2  ;;  %v1471_v31 = vrot.slane %v1470_v27, 4  ;;  %v1484_v32 = vsel %vm847_vm2, %v1224_v28, -inf  ;;  %v5068_v33 = vpop.f32.mrb[15].mxu0 }
 0x27b   : > { %v1485_v34 = vrot.slane %v1484_v32, 4 }
 0x27c   : > { %v1462_v35 = vmax.f32 %v1460_v24, %v1461_v38  ;;  %v1467_v36 = vmax.f32 %v1465_v25, %v1466_v30  ;;  %v1472_v37 = vmax.f32 %v1470_v27, %v1471_v31 }
 0x27d   : > { %v1486_v39 = vmax.f32 %v1484_v32, %v1485_v34  ;;  %v1376_v40 = vpop.f32.mrb[16].mxu0 }
 0x27e   : > { %v1512_v41 = vsub.f32 %v920_v6, %v1462_v35  ;;  %v1468_v42 = vrot.slane %v1467_v36, 1  ;;  %v1473_v43 = vrot.slane %v1472_v37, 2  ;;  %v1148_v44 = vpop.f32.mrb[16].mxu1  ;;  %v1498_v45 = vsel %vm847_vm2, %v1376_v40, -inf  ;;  %v5078_v46 = vpop.f32.mrb[17].mxu0 }
 0x27f   : > { %v1487_v47 = vrot.slane %v1486_v39, 2  ;;  %v1477_v48 = vsel %vm847_vm2, %v1148_v44, -inf  ;;  %v1499_v49 = vrot.slane %v1498_v45, 4  ;;  %v5063_v50 = vpop.f32.mrb[17].mxu1 }
 0x280   : > { %v1520_v51 = vmul.f32 1.442695, %v1512_v41  ;;  %v1469_v52 = vmax.f32 %v1467_v36, %v1468_v42  ;;  %v1474_v53 = vmax.f32 %v1472_v37, %v1473_v43  ;;  %v1478_v54 = vrot.slane %v1477_v48, 4 }
 0x281   : > { %v1488_v55 = vmax.f32 %v1486_v39, %v1487_v47  ;;  %v1500_v56 = vmax.f32 %v1498_v45, %v1499_v49 }
 0x282   : > { %5337 = vpow2.f32 %v1520_v51  ;;  %v1513_v57 = vsub.f32 %v996_v11, %v1469_v52  ;;  %v1475_v58 = vrot.slane %v1474_v53, 1  ;;  %v1479_v59 = vmax.f32 %v1477_v48, %v1478_v54  ;;  %v1300_v60 = vpop.f32.mrb[18].mxu1 }
 0x283   : > { %v1489_v61 = vrot.slane %v1488_v55, 1  ;;  %v1501_v62 = vrot.slane %v1500_v56, 2  ;;  %v1491_v63 = vsel %vm847_vm2, %v1300_v60, -inf  ;;  %v5073_v0 = vpop.f32.mrb[19].mxu1 }
 0x284   : > { %v1522_v1 = vmul.f32 1.442695, %v1513_v57  ;;  %v1476_v2 = vmax.f32 %v1474_v53, %v1475_v58  ;;  %v1480_v3 = vrot.slane %v1479_v59, 2  ;;  %v1492_v4 = vrot.slane %v1491_v63, 4 }
 0x285   : > { %v1490_v5 = vmax.f32 %v1488_v55, %v1489_v61  ;;  %v1502_v6 = vmax.f32 %v1500_v56, %v1501_v62 }
 0x286   : > { %5339 = vpow2.f32 %v1522_v1  ;;  %v1514_v7 = vsub.f32 %v1072_v26, %v1476_v2  ;;  %v1481_v8 = vmax.f32 %v1479_v59, %v1480_v3  ;;  %v1493_v9 = vmax.f32 %v1491_v63, %v1492_v4  ;;  %v1452_v10 = vpop.f32.mrb[20].mxu1 }
 0x287   : > { %v1516_v11 = vsub.f32 %v1224_v28, %v1490_v5  ;;  %v1503_v12 = vrot.slane %v1502_v6, 1  ;;  %v1505_v21 = vsel %vm847_vm2, %v1452_v10, -inf  ;;  %v5083_v22 = vpop.f32.mrb[21].mxu1 }
 0x288   : > { %v1524_v23 = vmul.f32 1.442695, %v1514_v7  ;;  %v1482_v24 = vrot.slane %v1481_v8, 1  ;;  %v1494_v25 = vrot.slane %v1493_v9, 2  ;;  %v1506_v27 = vrot.slane %v1505_v21, 4 }
 0x289   : > { %v1528_v29 = vmul.f32 1.442695, %v1516_v11  ;;  %v1504_v38 = vmax.f32 %v1502_v6, %v1503_v12 }
 0x28a   : > { %5341 = vpow2.f32 %v1524_v23  ;;  %v1483_v30 = vmax.f32 %v1481_v8, %v1482_v24  ;;  %v1495_v31 = vmax.f32 %v1493_v9, %v1494_v25  ;;  %v1507_v32 = vmax.f32 %v1505_v21, %v1506_v27 }
 0x28b   : > { %5343 = vpow2.f32 %v1528_v29  ;;  %v1518_v26 = vsub.f32 %v1376_v40, %v1504_v38 }
 0x28c   : > { %v6383_v33 = vpop.eup %5337  ;;  %v1515_v34 = vsub.f32 %v1148_v44, %v1483_v30  ;;  %v1496_v28 = vrot.slane %v1495_v31, 1  ;;  %v1508_v35 = vrot.slane %v1507_v32, 2 }
 0x28d   : > { %v1536_v36 = vsel %vm847_vm2, %v6383_v33, 0.0  ;;  %v1532_v37 = vmul.f32 1.442695, %v1518_v26 }
 0x28e   : > { %v1537_v39 = vrot.slane %v1536_v36, 4  ;;  %v1526_v41 = vmul.f32 1.442695, %v1515_v34  ;;  %v1497_v42 = vmax.f32 %v1495_v31, %v1496_v28  ;;  %v1509_v43 = vmax.f32 %v1507_v32, %v1508_v35 }
 0x28f   : > { %5345 = vpow2.f32 %v1532_v37 }
 0x290   : > { %v6387_v45 = vpop.eup %5339  ;;  %v1538_v46 = vadd.f32 %v1537_v39, %v1536_v36  ;;  %5347 = vpow2.f32 %v1526_v41  ;;  %v1517_v47 = vsub.f32 %v1300_v60, %v1497_v42  ;;  %v1510_v40 = vrot.slane %v1509_v43, 1 }
 0x291   : > { %v1543_v44 = vsel %vm847_vm2, %v6387_v45, 0.0 }
 0x292   : > { %v1539_v48 = vrot.slane %v1538_v46, 2  ;;  %v1544_v49 = vrot.slane %v1543_v44, 4  ;;  %v1530_v50 = vmul.f32 1.442695, %v1517_v47  ;;  %v1511_v51 = vmax.f32 %v1509_v43, %v1510_v40 }
 0x294   : > { %v6391_v52 = vpop.eup %5341  ;;  %v1545_v53 = vadd.f32 %v1544_v49, %v1543_v44  ;;  %5349 = vpow2.f32 %v1530_v50  ;;  %v1519_v54 = vsub.f32 %v1452_v10, %v1511_v51  ;;  %v1540_v55 = vadd.f32 %v1539_v48, %v1538_v46 }
 0x295   : > { %v6393_v56 = vpop.eup %5343  ;;  %v1550_v57 = vsel %vm847_vm2, %v6391_v52, 0.0 }
 0x296   : > { %v1546_v58 = vrot.slane %v1545_v53, 2  ;;  %v1551_v59 = vrot.slane %v1550_v57, 4  ;;  %v1564_v60 = vsel %vm847_vm2, %v6393_v56, 0.0  ;;  %v1534_v61 = vmul.f32 1.442695, %v1519_v54 }
 0x297   : > { %v1565_v62 = vrot.slane %v1564_v60, 4  ;;  %v1541_v63 = vrot.slane %v1540_v55, 1 }
 0x298   : > { %v1552_v0 = vadd.f32 %v1551_v59, %v1550_v57  ;;  %5351 = vpow2.f32 %v1534_v61  ;;  %v1547_v1 = vadd.f32 %v1546_v58, %v1545_v53 }
 0x299   : > { %v6399_v2 = vpop.eup %5345  ;;  %v1566_v3 = vadd.f32 %v1565_v62, %v1564_v60  ;;  %v1542_v4 = vadd.f32 %v1541_v63, %v1540_v55 }
 0x29a   : > { %v6401_v5 = vpop.eup %5347  ;;  %v1553_v6 = vrot.slane %v1552_v0, 2  ;;  %v1578_v7 = vsel %vm847_vm2, %v6399_v2, 0.0  ;;  %v1548_v8 = vrot.slane %v1547_v1, 1 }
 0x29b   : > { %v1567_v9 = vrot.slane %v1566_v3, 2  ;;  %v1557_v10 = vsel %vm847_vm2, %v6401_v5, 0.0  ;;  %v1579_v11 = vrot.slane %v1578_v7, 4  ;;  %5353 = vrcp.f32 %v1542_v4 }
 0x29c   : > { %v1558_v12 = vrot.slane %v1557_v10, 4  ;;  %v1549_v21 = vadd.f32 %v1548_v8, %v1547_v1  ;;  %v1554_v22 = vadd.f32 %v1553_v6, %v1552_v0 }
 0x29d   : > { %v1580_v23 = vadd.f32 %v1579_v11, %v1578_v7  ;;  %v1568_v24 = vadd.f32 %v1567_v9, %v1566_v3 }
 0x29e   : > { %v5350_v25 = vpop.eup %5349  ;;  %v1559_v27 = vadd.f32 %v1558_v12, %v1557_v10  ;;  %5355 = vrcp.f32 %v1549_v21  ;;  %v1555_v29 = vrot.slane %v1554_v22, 1 }
 0x29f   : > { %v1581_v38 = vrot.slane %v1580_v23, 2  ;;  %v1571_v30 = vsel %vm847_vm2, %v5350_v25, 0.0  ;;  %v1569_v31 = vrot.slane %v1568_v24, 1 }
 0x2a0   : > { %v1560_v32 = vrot.slane %v1559_v27, 2  ;;  %v1572_v26 = vrot.slane %v1571_v30, 4  ;;  %v1556_v34 = vadd.f32 %v1555_v29, %v1554_v22 }
 0x2a1   : > { %v1570_v28 = vadd.f32 %v1569_v31, %v1568_v24  ;;  %v1582_v35 = vadd.f32 %v1581_v38, %v1580_v23 }
 0x2a2   : > { %v5352_v36 = vpop.eup %5351  ;;  %v1573_v37 = vadd.f32 %v1572_v26, %v1571_v30  ;;  %5357 = vrcp.f32 %v1556_v34  ;;  %v1561_v39 = vadd.f32 %v1560_v32, %v1559_v27 }
 0x2a3   : > { %v1585_v41 = vsel %vm847_vm2, %v5352_v36, 0.0  ;;  %5359 = vrcp.f32 %v1570_v28  ;;  %v1583_v42 = vrot.slane %v1582_v35, 1 }
 0x2a4   : > { %v1574_v43 = vrot.slane %v1573_v37, 2  ;;  %v1586_v46 = vrot.slane %v1585_v41, 4  ;;  %v1562_v47 = vrot.slane %v1561_v39, 1 }
 0x2a5   : > { %v5354_v40 = vpop.eup %5353  ;;  %v1584_v44 = vadd.f32 %v1583_v42, %v1582_v35 }
 0x2a6   : > { %v1587_v48 = vadd.f32 %v1586_v46, %v1585_v41  ;;  %v1600_v49 = vmul.f32 %v5354_v40, %v6383_v33  ;;  %v1563_v50 = vadd.f32 %v1562_v47, %v1561_v39  ;;  %v1575_v51 = vadd.f32 %v1574_v43, %v1573_v37 }
 0x2a7   : > { %5361 = vrcp.f32 %v1584_v44 }
 0x2a8   : > { %v5356_v53 = vpop.eup %5355  ;;  %v1588_v54 = vrot.slane %v1587_v48, 2  ;;  %v1601_v55 = vsel %vm847_vm2, %v1600_v49, 0.0  ;;  %5363 = vrcp.f32 %v1563_v50  ;;  %v1576_v57 = vrot.slane %v1575_v51, 1 }
 0x2a9   : > { %1602 = vadd.xlane.f32.xlu0 %v1601_v55  ;;  %v1604_v58 = vmul.f32 %v5356_v53, %v6387_v45 }
 0x2aa   : > { %v1577_v59 = vadd.f32 %v1576_v57, %v1575_v51  ;;  %v1589_v60 = vadd.f32 %v1588_v54, %v1587_v48 }
 0x2ab   : > { %v1605_v61 = vsel %vm847_vm2, %v1604_v58, 0.0 }
 0x2ac   : > { %v5358_v62 = vpop.eup %5357  ;;  %1606 = vadd.xlane.f32.xlu1 %v1605_v61  ;;  %5365 = vrcp.f32 %v1577_v59  ;;  %v1590_v33 = vrot.slane %v1589_v60, 1 }
 0x2ad   : > { %v5360_v63 = vpop.eup %5359  ;;  %v1608_v0 = vmul.f32 %v5358_v62, %v6391_v52 }
 0x2ae   : > { %v1616_v1 = vmul.f32 %v5360_v63, %v6393_v56  ;;  %v1591_v3 = vadd.f32 %v1590_v33, %v1589_v60 }
 0x2af   : > { %v1609_v4 = vsel %vm847_vm2, %v1608_v0, 0.0 }
 0x2b0   : > { %v1617_v6 = vsel %vm847_vm2, %v1616_v1, 0.0  ;;  %1610 = vadd.xlane.f32.xlu1 %v1609_v4  ;;  %5367 = vrcp.f32 %v1591_v3 }
 0x2b1   : > { %v5362_v45 = vpop.eup %5361  ;;  %1618 = vadd.xlane.f32.xlu0 %v1617_v6 }
 0x2b2   : > { %v5364_v7 = vpop.eup %5363  ;;  %v1624_v8 = vmul.f32 %v5362_v45, %v6399_v2 }
 0x2b3   : > { %v1612_v9 = vmul.f32 %v5364_v7, %v6401_v5 }
 0x2b4   : > { %v1625_v10 = vsel %vm847_vm2, %v1624_v8, 0.0 }
 0x2b5   : > { %1626 = vadd.xlane.f32.xlu0 %v1625_v10  ;;  %v1613_v52 = vsel %vm847_vm2, %v1612_v9, 0.0  ;;  %v5699_v10 = vmov 0  }
 0x2b6   : > { %v5366_v56 = vpop.eup %5365  ;;  %1614 = vadd.xlane.f32.xlu1 %v1613_v52  ;;  %5336 = vset.pattern.permute.xlu0 %v5699_v10 }
 0x2b7   : > { %v1620_v11 = vmul.f32 %v5366_v56, %v5350_v25  ;;  %5335 = vset.pattern.permute.xlu1 %v5699_v10 }
 0x2b9   : > { %v1621_v12 = vsel %vm847_vm2, %v1620_v11, 0.0 }
 0x2ba   : > { %v5368_v21 = vpop.eup %5367  ;;  %1622 = vadd.xlane.f32.xlu0 %v1621_v12 }
 0x2bb   : > { %v1628_v22 = vmul.f32 %v5368_v21, %v5352_v36 }
 0x2bd   : > { %v1629_v23 = vsel %vm847_vm2, %v1628_v22, 0.0 }
 0x2be   : > { %1630 = vadd.xlane.f32.xlu0 %v1629_v23 }
 0x2e2   : > { %v1888_v24 = vpop.f32.mrb[22].mxu1 }
 0x2e3   : > { %v2367_v2 = vsel %vm847_vm2, %v1888_v24, -inf  ;;  %v5093_v5 = vpop.f32.mrb[23].mxu1 }
 0x2e4   : > { %v2368_v27 = vrot.slane %v2367_v2, 4 }
 0x2e6   : > { %v2369_v29 = vmax.f32 %v2367_v2, %v2368_v27 }
 0x2e8   : > { %v2370_v38 = vrot.slane %v2369_v29, 2 }
 0x2ea   : > { %v2371_v30 = vmax.f32 %v2369_v29, %v2370_v38 }
 0x2ec   : > { %v2372_v31 = vrot.slane %v2371_v30, 1 }
 0x2ee   : > { %v2373_v32 = vmax.f32 %v2371_v30, %v2372_v31 }
 0x2f0   : > { %v2417_v26 = vsub.f32 %v1888_v24, %v2373_v32 }
 0x2f2   : > { %v2426_v25 = vmul.f32 1.442695, %v2417_v26 }
 0x2f4   : > { %5369 = vpow2.f32 %v2426_v25  ;;  %v1810_v34 = vpop.f32.mrb[18].mxu0 }
 0x2f5   : > { %v2360_v28 = vsel %vm847_vm2, %v1810_v34, -inf  ;;  %v5088_v35 = vpop.f32.mrb[19].mxu0 }
 0x2f6   : > { %v2361_v36 = vrot.slane %v2360_v28, 4 }
 0x2f8   : > { %v2362_v37 = vmax.f32 %v2360_v28, %v2361_v36 }
 0x2fa   : > { %v2363_v39 = vrot.slane %v2362_v37, 2 }
 0x2fb   : > { %v1966_v41 = vpop.f32.mrb[20].mxu0 }
 0x2fc   : > { %v2364_v42 = vmax.f32 %v2362_v37, %v2363_v39  ;;  %v2374_v43 = vsel %vm847_vm2, %v1966_v41, -inf  ;;  %v2044_v46 = vpop.f32.mrb[24].mxu1  ;;  %v5098_v47 = vpop.f32.mrb[21].mxu0 }
 0x2fd   : > { %v2375_v40 = vrot.slane %v2374_v43, 4  ;;  %v2381_v44 = vsel %vm847_vm2, %v2044_v46, -inf  ;;  %v5103_v48 = vpop.f32.mrb[25].mxu1 }
 0x2fe   : > { %v5370_v49 = vpop.eup %5369  ;;  %v2365_v50 = vrot.slane %v2364_v42, 1  ;;  %v2382_v51 = vrot.slane %v2381_v44, 4 }
 0x2ff   : > { %v2447_v53 = vsel %vm847_vm2, %v5370_v49, 0.0  ;;  %v2376_v54 = vmax.f32 %v2374_v43, %v2375_v40 }
 0x300   : > { %v2448_v55 = vrot.slane %v2447_v53, 4  ;;  %v2366_v57 = vmax.f32 %v2364_v42, %v2365_v50  ;;  %v2383_v58 = vmax.f32 %v2381_v44, %v2382_v51 }
 0x301   : > { %v2377_v59 = vrot.slane %v2376_v54, 2 }
 0x302   : > { %v2449_v60 = vadd.f32 %v2448_v55, %v2447_v53  ;;  %v2416_v61 = vsub.f32 %v1810_v34, %v2366_v57  ;;  %v2384_v62 = vrot.slane %v2383_v58, 2 }
 0x303   : > { %v2378_v33 = vmax.f32 %v2376_v54, %v2377_v59 }
 0x304   : > { %v2450_v63 = vrot.slane %v2449_v60, 2  ;;  %v2424_v0 = vmul.f32 1.442695, %v2416_v61  ;;  %v2385_v1 = vmax.f32 %v2383_v58, %v2384_v62 }
 0x305   : > { %v2379_v3 = vrot.slane %v2378_v33, 1 }
 0x306   : > { %5371 = vpow2.f32 %v2424_v0  ;;  %v2386_v4 = vrot.slane %v2385_v1, 1  ;;  %v2451_v6 = vadd.f32 %v2450_v63, %v2449_v60 }
 0x307   : > { %v2380_v45 = vmax.f32 %v2378_v33, %v2379_v3 }
 0x308   : > { %v2387_v7 = vmax.f32 %v2385_v1, %v2386_v4  ;;  %v2452_v8 = vrot.slane %v2451_v6, 1 }
 0x309   : > { %v2418_v9 = vsub.f32 %v1966_v41, %v2380_v45 }
 0x30a   : > { %v2419_v52 = vsub.f32 %v2044_v46, %v2387_v7  ;;  %v2453_v56 = vadd.f32 %v2452_v8, %v2451_v6 }
 0x30b   : > { %v2428_v11 = vmul.f32 1.442695, %v2418_v9  ;;  %v6428_v12 = vpop.f32.mrb[22].mxu0 }
 0x30c   : > { %v2430_v21 = vmul.f32 1.442695, %v2419_v52  ;;  %v6430_v22 = vpop.f32.mrb[26].mxu1  ;;  %v5108_v23 = vpop.f32.mrb[23].mxu0  ;;  %5373 = vrcp.f32 %v2453_v56  ;;  %v2388_v2 = vsel %vm847_vm2, %v6428_v12, -inf }
 0x30d   : > { %5375 = vpow2.f32 %v2428_v11  ;;  %v5113_v24 = vpop.f32.mrb[27].mxu1  ;;  %v2395_v5 = vsel %vm847_vm2, %v6430_v22, -inf  ;;  %v2389_v38 = vrot.slane %v2388_v2, 4 }
 0x30e   : > { %5377 = vpow2.f32 %v2430_v21  ;;  %v2396_v31 = vrot.slane %v2395_v5, 4 }
 0x30f   : > { %v2390_v26 = vmax.f32 %v2388_v2, %v2389_v38 }
 0x310   : > { %v6436_v27 = vpop.eup %5371  ;;  %v2397_v28 = vmax.f32 %v2395_v5, %v2396_v31 }
 0x311   : > { %v2440_v29 = vsel %vm847_vm2, %v6436_v27, 0.0  ;;  %v2391_v43 = vrot.slane %v2390_v26, 2 }
 0x312   : > { %v2441_v30 = vrot.slane %v2440_v29, 4  ;;  %v2398_v47 = vrot.slane %v2397_v28, 2 }
 0x313   : > { %v2392_v54 = vmax.f32 %v2390_v26, %v2391_v43 }
 0x314   : > { %v2442_v32 = vadd.f32 %v2441_v30, %v2440_v29  ;;  %v2399_v59 = vmax.f32 %v2397_v28, %v2398_v47 }
 0x315   : > { %v2393_v4 = vrot.slane %v2392_v54, 1 }
 0x316   : > { %v5374_v25 = vpop.eup %5373  ;;  %v2443_v34 = vrot.slane %v2442_v32, 2  ;;  %v2400_v8 = vrot.slane %v2399_v59, 1 }
 0x317   : > { %v6440_v35 = vpop.eup %5375  ;;  %v2508_v36 = vmul.f32 %v5374_v25, %v5370_v49  ;;  %v2394_v5 = vmax.f32 %v2392_v54, %v2393_v4 }
 0x318   : > { %v6442_v37 = vpop.eup %5377  ;;  %v2454_v39 = vsel %vm847_vm2, %v6440_v35, 0.0  ;;  %v2444_v41 = vadd.f32 %v2443_v34, %v2442_v32  ;;  %v2401_v32 = vmax.f32 %v2399_v59, %v2400_v8 }
 0x319   : > { %v2461_v42 = vsel %vm847_vm2, %v6442_v37, 0.0  ;;  %v2509_v46 = vsel %vm847_vm2, %v2508_v36, 0.0  ;;  %v2455_v40 = vrot.slane %v2454_v39, 4 }
 0x31a   : > { %2510 = vadd.xlane.f32.xlu0 %v2509_v46  ;;  %v2462_v48 = vrot.slane %v2461_v42, 4  ;;  %v2445_v53 = vrot.slane %v2444_v41, 1 }
 0x31b   : > { %v6449_v44 = vpop.f32.mrb[24].mxu0  ;;  %v2456_v61 = vadd.f32 %v2455_v40, %v2454_v39 }
 0x31c   : > { %v2402_v49 = vsel %vm847_vm2, %v6449_v44, -inf  ;;  %v6453_v50 = vpop.f32.mrb[28].mxu1  ;;  %v5118_v51 = vpop.f32.mrb[25].mxu0  ;;  %v2463_v33 = vadd.f32 %v2462_v48, %v2461_v42  ;;  %v2446_v3 = vadd.f32 %v2445_v53, %v2444_v41 }
 0x31d   : > { %v2403_v55 = vrot.slane %v2402_v49, 4  ;;  %v2409_v57 = vsel %vm847_vm2, %v6453_v50, -inf  ;;  %v5123_v58 = vpop.f32.mrb[29].mxu1  ;;  %v2457_v52 = vrot.slane %v2456_v61, 2  ;;  %v2421_v51 = vsub.f32 %v6430_v22, %v2401_v32 }
 0x31e   : > { %v2410_v60 = vrot.slane %v2409_v57, 4  ;;  %v2464_v21 = vrot.slane %v2463_v33, 2  ;;  %5379 = vrcp.f32 %v2446_v3 }
 0x31f   : > { %v6457_v62 = vpop.f32.mrb[26].mxu0  ;;  %v2404_v6 = vmax.f32 %v2402_v49, %v2403_v55  ;;  %v2458_v39 = vadd.f32 %v2457_v52, %v2456_v61  ;;  %v2420_v49 = vsub.f32 %v6428_v12, %v2394_v5  ;;  %v2434_v12 = vmul.f32 1.442695, %v2421_v51 }
 0x320   : > { %v3265_v63 = vsel %vm847_vm2, %v6457_v62, -inf  ;;  %v6461_v0 = vpop.f32.mrb[30].mxu1  ;;  %v5128_v1 = vpop.f32.mrb[27].mxu0  ;;  %v2411_v9 = vmax.f32 %v2409_v57, %v2410_v60  ;;  %v2465_v46 = vadd.f32 %v2464_v21, %v2463_v33 }
 0x321   : > { %v3272_v45 = vsel %vm847_vm2, %v6461_v0, -inf  ;;  %v5133_v7 = vpop.f32.mrb[31].mxu1  ;;  %v3266_v10 = vrot.slane %v3265_v63, 4  ;;  %v2405_v29 = vrot.slane %v2404_v6, 2  ;;  %v2459_v58 = vrot.slane %v2458_v39, 1 }
 0x322   : > { %v3273_v56 = vrot.slane %v3272_v45, 4  ;;  %v2412_v26 = vrot.slane %v2411_v9, 2 }
 0x323   : > { %v6465_v11 = vpop.f32.mrb[28].mxu0  ;;  %v3267_v25 = vmax.f32 %v3265_v63, %v3266_v10  ;;  %v2406_v47 = vmax.f32 %v2404_v6, %v2405_v29  ;;  %v2466_v63 = vrot.slane %v2465_v46, 1  ;;  %v6483_v6 = vmul.f32 1.442695, %v2420_v49 }
 0x324   : > { %v3279_v23 = vsel %vm847_vm2, %v6465_v11, -inf  ;;  %v6469_v24 = vpop.f32.mrb[32].mxu1  ;;  %v5138_v2 = vpop.f32.mrb[29].mxu0  ;;  %v3274_v28 = vmax.f32 %v3272_v45, %v3273_v56  ;;  %v2413_v53 = vmax.f32 %v2411_v9, %v2412_v26  ;;  %v2460_v52 = vadd.f32 %v2459_v58, %v2458_v39 }
 0x325   : > { %v3280_v38 = vrot.slane %v3279_v23, 4  ;;  %v3286_v30 = vsel %vm847_vm2, %v6469_v24, -inf  ;;  %v5143_v31 = vpop.f32.mrb[33].mxu1  ;;  %v3268_v54 = vrot.slane %v3267_v25, 2  ;;  %v2407_v1 = vrot.slane %v2406_v47, 1 }
 0x326   : > { %v3287_v34 = vrot.slane %v3286_v30, 4  ;;  %v3275_v55 = vrot.slane %v3274_v28, 2  ;;  %v2414_v45 = vrot.slane %v2413_v53, 1  ;;  %v2467_v29 = vadd.f32 %v2466_v63, %v2465_v46 }
 0x327   : > { %v6473_v36 = vpop.f32.mrb[30].mxu0  ;;  %v3281_v41 = vmax.f32 %v3279_v23, %v3280_v38  ;;  %v3269_v22 = vmax.f32 %v3267_v25, %v3268_v54  ;;  %v2408_v38 = vmax.f32 %v2406_v47, %v2407_v1 }
 0x328   : > { %v6475_v42 = vpop.f32.mrb[34].mxu1  ;;  %v5148_v43 = vpop.f32.mrb[31].mxu0  ;;  %v3288_v40 = vmax.f32 %v3286_v30, %v3287_v34  ;;  %v3276_v7 = vmax.f32 %v3274_v28, %v3275_v55  ;;  %v3293_v8 = vsel %vm847_vm2, %v6473_v36, -inf  ;;  %v2415_v25 = vmax.f32 %v2413_v53, %v2414_v45 }
 0x329   : > { %v5153_v48 = vpop.f32.mrb[35].mxu1  ;;  %v3282_v59 = vrot.slane %v3281_v41, 2  ;;  %v5380_v4 = vpop.eup %5379  ;;  %v3300_v9 = vsel %vm847_vm2, %v6475_v42, -inf  ;;  %v3294_v21 = vrot.slane %v3293_v8, 4  ;;  %v3270_v34 = vrot.slane %v3269_v22, 1 }
 0x32a   : > { %v3289_v33 = vrot.slane %v3288_v40, 2  ;;  %v3301_v23 = vrot.slane %v3300_v9, 4  ;;  %v2504_v32 = vmul.f32 %v5380_v4, %v6436_v27  ;;  %v3277_v39 = vrot.slane %v3276_v7, 1 }
 0x32b   : > { %v6479_v57 = vpop.f32.mrb[32].mxu0  ;;  %v3283_v56 = vmax.f32 %v3281_v41, %v3282_v59  ;;  %v3295_v28 = vmax.f32 %v3293_v8, %v3294_v21  ;;  %5381 = vrcp.f32 %v2467_v29  ;;  %v2422_v63 = vsub.f32 %v6449_v44, %v2408_v38 }
 0x32c   : > { %v6481_v60 = vpop.f32.mrb[36].mxu1  ;;  %v5158_v61 = vpop.f32.mrb[33].mxu0  ;;  %v3290_v30 = vmax.f32 %v3288_v40, %v3289_v33  ;;  %v3307_v31 = vsel %vm847_vm2, %v6479_v57, -inf  ;;  %v3302_v43 = vmax.f32 %v3300_v9, %v3301_v23  ;;  %v2505_v48 = vsel %vm847_vm2, %v2504_v32, 0.0 }
 0x32d   : > { %v5163_v3 = vpop.f32.mrb[37].mxu1  ;;  %v3308_v41 = vrot.slane %v3307_v31, 4  ;;  %v3314_v49 = vsel %vm847_vm2, %v6481_v60, -inf  ;;  %v3284_v47 = vrot.slane %v3283_v56, 1  ;;  %v3296_v40 = vrot.slane %v3295_v28, 2  ;;  %2506 = vadd.xlane.f32.xlu0 %v2505_v48 }
 0x32e   : > { %v3303_v51 = vrot.slane %v3302_v43, 2  ;;  %v3315_v54 = vrot.slane %v3314_v49, 4  ;;  %v3291_v53 = vrot.slane %v3290_v30, 1  ;;  %v3271_v1 = vmax.f32 %v3269_v22, %v3270_v34 }
 0x32f   : > { %v6489_v10 = vpop.f32.mrb[34].mxu0  ;;  %v3309_v55 = vmax.f32 %v3307_v31, %v3308_v41  ;;  %v3278_v4 = vmax.f32 %v3276_v7, %v3277_v39  ;;  %v3297_v45 = vmax.f32 %v3295_v28, %v3296_v40  ;;  %v2423_v23 = vsub.f32 %v6453_v50, %v2415_v25 }
 0x330   : > { %v6491_v2 = vpop.f32.mrb[38].mxu1  ;;  %v5168_v5 = vpop.f32.mrb[35].mxu0  ;;  %v4170_v58 = vsel %vm847_vm2, %v6489_v10, -inf  ;;  %v3304_v33 = vmax.f32 %v3302_v43, %v3303_v51  ;;  %v3316_v3 = vmax.f32 %v3314_v49, %v3315_v54  ;;  %5383 = vpow2.f32 %v2434_v12 }
 0x331   : > { %v5173_v26 = vpop.f32.mrb[39].mxu1  ;;  %v3310_v8 = vrot.slane %v3309_v55, 2  ;;  %v4171_v9 = vrot.slane %v4170_v58, 4  ;;  %v3285_v5 = vmax.f32 %v3283_v56, %v3284_v47  ;;  %v3292_v41 = vmax.f32 %v3290_v30, %v3291_v53 }
 0x332   : > { %v3305_v31 = vrot.slane %v3304_v33, 1  ;;  %v3317_v32 = vrot.slane %v3316_v3, 2  ;;  %v2436_v34 = vmul.f32 1.442695, %v2422_v63  ;;  %v3321_v7 = vsub.f32 %v6457_v62, %v3271_v1 }
 0x333   : > { %v6499_v46 = vpop.f32.mrb[36].mxu0  ;;  %v3311_v44 = vmax.f32 %v3309_v55, %v3310_v8  ;;  %v4172_v22 = vmax.f32 %v4170_v58, %v4171_v9  ;;  %5385 = vrcp.f32 %v2460_v52  ;;  %v3322_v28 = vsub.f32 %v6461_v0, %v3278_v4 }
 0x334   : > { %v6501_v27 = vpop.f32.mrb[40].mxu1  ;;  %v5178_v59 = vpop.f32.mrb[37].mxu0  ;;  %v3298_v43 = vrot.slane %v3297_v45, 1  ;;  %v3318_v39 = vmax.f32 %v3316_v3, %v3317_v32  ;;  %v2438_v25 = vmul.f32 1.442695, %v2423_v23  ;;  %v3323_v48 = vsub.f32 %v6465_v11, %v3285_v5 }
 0x335   : > { %v5183_v61 = vpop.f32.mrb[41].mxu1  ;;  %v4173_v50 = vrot.slane %v4172_v22, 2  ;;  %v3306_v49 = vmax.f32 %v3304_v33, %v3305_v31  ;;  %5387 = vpow2.f32 %v6483_v6  ;;  %v3324_v47 = vsub.f32 %v6469_v24, %v3292_v41  ;;  %v5382_v40 = vpop.eup %5381 }
 0x336   : > { %v3312_v62 = vrot.slane %v3311_v44, 1  ;;  %5389 = vpow2.f32 %v2436_v34  ;;  %v3329_v0 = vmul.f32 1.442695, %v3321_v7  ;;  %v3331_v51 = vmul.f32 1.442695, %v3322_v28 }
 0x337   : > { %v6506_v21 = vpop.f32.mrb[38].mxu0  ;;  %v3299_v54 = vmax.f32 %v3297_v45, %v3298_v43  ;;  %v3319_v53 = vrot.slane %v3318_v39, 1  ;;  %v4174_v55 = vmax.f32 %v4172_v22, %v4173_v50  ;;  %5391 = vpow2.f32 %v2438_v25 }
 0x338   : > { %v6509_v26 = vpop.f32.mrb[42].mxu1  ;;  %v5188_v29 = vpop.f32.mrb[39].mxu0  ;;  %v3333_v58 = vmul.f32 1.442695, %v3323_v48  ;;  %v3326_v11 = vsub.f32 %v6475_v42, %v3306_v49  ;;  %v3335_v59 = vmul.f32 1.442695, %v3324_v47  ;;  %v3313_v61 = vmax.f32 %v3311_v44, %v3312_v62 }
 0x339   : > { %v5193_v38 = vpop.f32.mrb[43].mxu1  ;;  %5393 = vpow2.f32 %v3329_v0  ;;  %v3320_v63 = vmax.f32 %v3318_v39, %v3319_v53  ;;  %v3325_v24 = vsub.f32 %v6473_v36, %v3299_v54  ;;  %v4175_v1 = vrot.slane %v4174_v55, 1 }
 0x33a   : > { %v6521_v6 = vpop.eup %5383  ;;  %5395 = vpow2.f32 %v3331_v51  ;;  %v3339_v3 = vmul.f32 1.442695, %v3326_v11  ;;  %v2516_v4 = vmul.f32 %v5382_v40, %v6442_v37  ;;  %v3327_v45 = vsub.f32 %v6479_v57, %v3313_v61 }
 0x33b   : > { %v6513_v56 = vpop.f32.mrb[40].mxu0  ;;  %5397 = vpow2.f32 %v3333_v58  ;;  %v3328_v42 = vsub.f32 %v6481_v60, %v3320_v63  ;;  %v2475_v23 = vsel %vm847_vm2, %v6521_v6, 0.0  ;;  %v3337_v5 = vmul.f32 1.442695, %v3325_v24 }
 0x33c   : > { %v6516_v12 = vpop.f32.mrb[44].mxu1  ;;  %v5198_v30 = vpop.f32.mrb[41].mxu0  ;;  %5399 = vpow2.f32 %v3335_v59  ;;  %v2517_v8 = vsel %vm847_vm2, %v2516_v4, 0.0  ;;  %v4176_v36 = vmax.f32 %v4174_v55, %v4175_v1  ;;  %v3341_v32 = vmul.f32 1.442695, %v3327_v45 }
 0x33d   : > { %v5203_v52 = vpop.f32.mrb[45].mxu1  ;;  %v5386_v33 = vpop.eup %5385  ;;  %2518 = vadd.xlane.f32.xlu0 %v2517_v8  ;;  %5401 = vpow2.f32 %v3339_v3  ;;  %v2476_v60 = vrot.slane %v2475_v23, 4  ;;  %v3343_v41 = vmul.f32 1.442695, %v3328_v42 }
 0x33e   : > { %v2512_v37 = vmul.f32 %v5386_v33, %v6440_v35  ;;  %5403 = vpow2.f32 %v3337_v5  ;;  %v4226_v22 = vsub.f32 %v6489_v10, %v4176_v36  ;;  %v4177_v10 = vsel %vm847_vm2, %v6491_v2, -inf }
 0x33f   : > { %v6528_v9 = vpop.eup %5387  ;;  %5405 = vpow2.f32 %v3341_v32  ;;  %v2477_v39 = vadd.f32 %v2476_v60, %v2475_v23  ;;  %v4178_v52 = vrot.slane %v4177_v10, 4 }
 0x340   : > { %v6532_v31 = vpop.eup %5389  ;;  %v2468_v57 = vsel %vm847_vm2, %v6528_v9, 0.0  ;;  %v2513_v44 = vsel %vm847_vm2, %v2512_v37, 0.0  ;;  %5407 = vpow2.f32 %v3343_v41  ;;  %v4234_v48 = vmul.f32 1.442695, %v4226_v22 }
 0x341   : > { %v6535_v29 = vpop.eup %5391  ;;  %2514 = vadd.xlane.f32.xlu0 %v2513_v44  ;;  %v2469_v7 = vrot.slane %v2468_v57, 4  ;;  %v2482_v35 = vsel %vm847_vm2, %v6532_v31, 0.0  ;;  %v2478_v40 = vrot.slane %v2477_v39, 2  ;;  %v4179_v1 = vmax.f32 %v4177_v10, %v4178_v52 }
 0x342   : > { %v2489_v28 = vsel %vm847_vm2, %v6535_v29, 0.0  ;;  %v2483_v49 = vrot.slane %v2482_v35, 4  ;;  %5409 = vpow2.f32 %v4234_v48  ;;  %v4191_v37 = vsel %vm847_vm2, %v6501_v27, -inf }
 0x343   : > { %v6541_v38 = vpop.eup %5393  ;;  %v2490_v30 = vrot.slane %v2489_v28, 4  ;;  %v2470_v62 = vadd.f32 %v2469_v7, %v2468_v57  ;;  %v2479_v4 = vadd.f32 %v2478_v40, %v2477_v39  ;;  %v4180_v41 = vrot.slane %v4179_v1, 2 }
 0x344   : > { %v6543_v34 = vpop.eup %5395  ;;  %v3345_v25 = vsel %vm847_vm2, %v6541_v38, 0.0  ;;  %v2484_v58 = vadd.f32 %v2483_v49, %v2482_v35 }
 0x345   : > { %v6549_v43 = vpop.eup %5397  ;;  %v3352_v47 = vsel %vm847_vm2, %v6543_v34, 0.0  ;;  %v3346_v51 = vrot.slane %v3345_v25, 4  ;;  %v2491_v11 = vadd.f32 %v2490_v30, %v2489_v28  ;;  %v2471_v33 = vrot.slane %v2470_v62, 2 }
 0x346   : > { %v6553_v50 = vpop.eup %5399  ;;  %v3359_v54 = vsel %vm847_vm2, %v6549_v43, 0.0  ;;  %v3353_v55 = vrot.slane %v3352_v47, 4  ;;  %v2485_v32 = vrot.slane %v2484_v58, 2  ;;  %v2480_v7 = vrot.slane %v2479_v4, 1 }
 0x347   : > { %v6559_v0 = vpop.eup %5401  ;;  %v3366_v53 = vsel %vm847_vm2, %v6553_v50, 0.0  ;;  %v3360_v61 = vrot.slane %v3359_v54, 4  ;;  %v3347_v3 = vadd.f32 %v3346_v51, %v3345_v25  ;;  %v2492_v23 = vrot.slane %v2491_v11, 2 }
 0x348   : > { %v6565_v59 = vpop.eup %5403  ;;  %v3367_v63 = vrot.slane %v3366_v53, 4  ;;  %v3380_v24 = vsel %vm847_vm2, %v6559_v0, 0.0  ;;  %v3354_v42 = vadd.f32 %v3353_v55, %v3352_v47  ;;  %v2472_v35 = vadd.f32 %v2471_v33, %v2470_v62 }
 0x349   : > { %v6569_v45 = vpop.eup %5405  ;;  %v3373_v5 = vsel %vm847_vm2, %v6565_v59, 0.0  ;;  %v3381_v36 = vrot.slane %v3380_v24, 4  ;;  %v3361_v57 = vadd.f32 %v3360_v61, %v3359_v54  ;;  %v3348_v44 = vrot.slane %v3347_v3, 2 }
 0x34a   : > { %v6571_v8 = vpop.eup %5407  ;;  %v3368_v60 = vadd.f32 %v3367_v63, %v3366_v53  ;;  %v3387_v22 = vsel %vm847_vm2, %v6569_v45, 0.0  ;;  %v3355_v28 = vrot.slane %v3354_v42, 2  ;;  %v3374_v39 = vrot.slane %v3373_v5, 4 }
 0x34b   : > { %v3394_v10 = vsel %vm847_vm2, %v6571_v8, 0.0  ;;  %v4192_v25 = vrot.slane %v4191_v37, 4  ;;  %v3382_v48 = vadd.f32 %v3381_v36, %v3380_v24  ;;  %v2481_v49 = vadd.f32 %v2480_v7, %v2479_v4 }
 0x34c   : > { %v2473_v30 = vrot.slane %v2472_v35, 1  ;;  %v2493_v47 = vadd.f32 %v2492_v23, %v2491_v11  ;;  %v6581_v52 = vpop.eup %5409  ;;  %v3362_v40 = vrot.slane %v3361_v57, 2  ;;  %v3369_v51 = vrot.slane %v3368_v60, 2 }
 0x34d   : > { %v3388_v54 = vrot.slane %v3387_v22, 4  ;;  %v2486_v53 = vadd.f32 %v2485_v32, %v2484_v58  ;;  %v3395_v55 = vrot.slane %v3394_v10, 4  ;;  %5411 = vrcp.f32 %v2481_v49 }
 0x34e   : > { %v2474_v61 = vadd.f32 %v2473_v30, %v2472_v35  ;;  %v2494_v62 = vrot.slane %v2493_v47, 1  ;;  %v3375_v63 = vadd.f32 %v3374_v39, %v3373_v5  ;;  %v4193_v33 = vmax.f32 %v4191_v37, %v4192_v25 }
 0x34f   : > { %v2487_v13 = vrot.slane %v2486_v53, 1  ;;  %v3356_v19 = vadd.f32 %v3355_v28, %v3354_v42  ;;  %v3383_v14 = vrot.slane %v3382_v48, 2  ;;  %v4250_v24 = vsel %vm847_vm2, %v6581_v52, 0.0 }
 0x350   : > { %v2495_v4 = vadd.f32 %v2494_v62, %v2493_v47  ;;  %v3349_v11 = vadd.f32 %v3348_v44, %v3347_v3  ;;  %v3389_v23 = vadd.f32 %v3388_v54, %v3387_v22  ;;  %5413 = vrcp.f32 %v2474_v61 }
 0x351   : > { %v2488_v36 = vadd.f32 %v2487_v13, %v2486_v53  ;;  %v3357_v7 = vrot.slane %v3356_v19, 1  ;;  %v3396_v17 = vadd.f32 %v3395_v55, %v3394_v10  ;;  %v4219_v58 = vsel %vm847_vm2, %v6516_v12, -inf }
 0x352   : > { %5415 = vrcp.f32 %v2495_v4  ;;  %v3350_v32 = vrot.slane %v3349_v11, 1  ;;  %v3376_v5 = vrot.slane %v3375_v63, 2  ;;  %v4251_v37 = vrot.slane %v4250_v24, 4 }
 0x353   : > { %v4181_v35 = vmax.f32 %v4179_v1, %v4180_v41  ;;  %v3358_v42 = vadd.f32 %v3357_v7, %v3356_v19  ;;  %v4194_v28 = vrot.slane %v4193_v33, 2  ;;  %v3370_v25 = vadd.f32 %v3369_v51, %v3368_v60 }
 0x354   : > { %v3351_v39 = vadd.f32 %v3350_v32, %v3349_v11  ;;  %v3363_v49 = vadd.f32 %v3362_v40, %v3361_v57  ;;  %v3390_v30 = vrot.slane %v3389_v23, 2  ;;  %v4220_v3 = vrot.slane %v4219_v58, 4 }
 0x355   : > { %5417 = vrcp.f32 %v2488_v36  ;;  %v3384_v44 = vadd.f32 %v3383_v14, %v3382_v48  ;;  %v3397_v13 = vrot.slane %v3396_v17, 2  ;;  %v3371_v22 = vrot.slane %v3370_v25, 1 }
 0x356   : > { %5419 = vrcp.f32 %v3358_v42  ;;  %v3364_v10 = vrot.slane %v3363_v49, 1  ;;  %v4252_v47 = vadd.f32 %v4251_v37, %v4250_v24  ;;  %v3377_v53 = vadd.f32 %v3376_v5, %v3375_v63 }
 0x357   : > { %v3385_v54 = vrot.slane %v3384_v44, 1  ;;  %v5412_v55 = vpop.eup %5411  ;;  %v4182_v61 = vrot.slane %v4181_v35, 1  ;;  %v4195_v62 = vmax.f32 %v4193_v33, %v4194_v28  ;;  %5421 = vrcp.f32 %v3351_v39 }
 0x358   : > { %v3372_v19 = vadd.f32 %v3371_v22, %v3370_v25  ;;  %v2524_v1 = vmul.f32 %v5412_v55, %v6521_v6  ;;  %v3365_v60 = vadd.f32 %v3364_v10, %v3363_v49  ;;  %v3378_v41 = vrot.slane %v3377_v53, 1 }
 0x359   : > { %v3386_v57 = vadd.f32 %v3385_v54, %v3384_v44  ;;  %v4221_v40 = vmax.f32 %v4219_v58, %v4220_v3  ;;  %v3398_v14 = vadd.f32 %v3397_v13, %v3396_v17  ;;  %v3391_v48 = vadd.f32 %v3390_v30, %v3389_v23 }
 0x35a   : > { %5423 = vrcp.f32 %v3372_v19  ;;  %v5414_v51 = vpop.eup %5413  ;;  %v4253_v4 = vrot.slane %v4252_v47, 2  ;;  %v2525_v24 = vsel %vm847_vm2, %v2524_v1, 0.0  ;;  %v4183_v63 = vmax.f32 %v4181_v35, %v4182_v61 }
 0x35b   : > { %2526 = vadd.xlane.f32.xlu1 %v2525_v24  ;;  %v2520_v33 = vmul.f32 %v5414_v51, %v6528_v9  ;;  %5425 = vrcp.f32 %v3386_v57  ;;  %v3379_v36 = vadd.f32 %v3378_v41, %v3377_v53  ;;  %v4196_v7 = vrot.slane %v4195_v62, 1 }
 0x35c   : > { %v5416_v11 = vpop.eup %5415  ;;  %5427 = vrcp.f32 %v3365_v60  ;;  %v3399_v32 = vrot.slane %v3398_v14, 1  ;;  %v4222_v58 = vrot.slane %v4221_v40, 2  ;;  %v3392_v17 = vrot.slane %v3391_v48, 1 }
 0x35d   : > { %v2532_v6 = vmul.f32 %v5416_v11, %v6535_v29  ;;  %5429 = vrcp.f32 %v3379_v36  ;;  %v2521_v5 = vsel %vm847_vm2, %v2520_v33, 0.0  ;;  %v4254_v42 = vadd.f32 %v4253_v4, %v4252_v47 }
 0x35e   : > { %v3400_v37 = vadd.f32 %v3399_v32, %v3398_v14  ;;  %v4227_v35 = vsub.f32 %v6491_v2, %v4183_v63  ;;  %v4197_v9 = vmax.f32 %v4195_v62, %v4196_v7  ;;  %v4223_v49 = vmax.f32 %v4221_v40, %v4222_v58 }
 0x35f   : > { %v5418_v23 = vpop.eup %5417  ;;  %2522 = vadd.xlane.f32.xlu1 %v2521_v5  ;;  %v2533_v39 = vsel %vm847_vm2, %v2532_v6, 0.0  ;;  %v3393_v30 = vadd.f32 %v3392_v17, %v3391_v48  ;;  %v4255_v3 = vrot.slane %v4254_v42, 1 }
 0x360   : > { %v5420_v28 = vpop.eup %5419  ;;  %5431 = vrcp.f32 %v3400_v37  ;;  %v2528_v44 = vmul.f32 %v5418_v23, %v6532_v31  ;;  %v4236_v10 = vmul.f32 1.442695, %v4227_v35  ;;  %v4229_v54 = vsub.f32 %v6501_v27, %v4197_v9 }
 0x361   : > { %v3413_v25 = vmul.f32 %v5420_v28, %v6543_v34  ;;  %v5422_v29 = vpop.eup %5421  ;;  %v4224_v53 = vrot.slane %v4223_v49, 1  ;;  %5433 = vrcp.f32 %v3393_v30  ;;  %v4256_v34 = vadd.f32 %v4255_v3, %v4254_v42 }
 0x362   : > { %v2529_v61 = vsel %vm847_vm2, %v2528_v44, 0.0  ;;  %v3409_v62 = vmul.f32 %v5422_v29, %v6541_v38  ;;  %5435 = vpow2.f32 %v4236_v10  ;;  %v4240_v60 = vmul.f32 1.442695, %v4229_v54  ;;  %v1607_v54 = vpop.xlane.xlu1 %1606 }
 0x363   : > { %v3414_v13 = vsel %vm847_vm2, %v3413_v25, 0.0  ;;  %2534 = vadd.xlane.f32.xlu1 %v2533_v39  ;;  %5437 = vrcp.f32 %v4256_v34  ;;  %v4225_v27 = vmax.f32 %v4223_v49, %v4224_v53  ;;  %v4205_v25 = vsel %vm847_vm2, %v6509_v26, -inf }
 0x364   : > { %v5424_v22 = vpop.eup %5423  ;;  %3415 = vadd.xlane.f32.xlu0 %v3414_v13  ;;  %v3410_v57 = vsel %vm847_vm2, %v3409_v62, 0.0  ;;  %5439 = vpow2.f32 %v4240_v60  ;;  %v4206_v44 = vrot.slane %v4205_v25, 4 }
 0x365   : > { %v3421_v2 = vmul.f32 %v5424_v22, %v6553_v50  ;;  %v5426_v47 = vpop.eup %5425 }
 0x366   : > { %v5428_v55 = vpop.eup %5427  ;;  %v3429_v19 = vmul.f32 %v5426_v47, %v6559_v0  ;;  %v4233_v0 = vsub.f32 %v6516_v12, %v4225_v27  ;;  %v4207_v47 = vmax.f32 %v4205_v25, %v4206_v44 }
 0x367   : > { %v3422_v31 = vsel %vm847_vm2, %v3421_v2, 0.0  ;;  %v5430_v1 = vpop.eup %5429  ;;  %2530 = vadd.xlane.f32.xlu1 %v2529_v61  ;;  %v3417_v41 = vmul.f32 %v5428_v55, %v6549_v43 }
 0x368   : > { %3423 = vadd.xlane.f32.xlu0 %v3422_v31  ;;  %v3430_v50 = vsel %vm847_vm2, %v3429_v19, 0.0  ;;  %v3425_v40 = vmul.f32 %v5430_v1, %v6565_v59  ;;  %v4248_v11 = vmul.f32 1.442695, %v4233_v0  ;;  %v4208_v61 = vrot.slane %v4207_v47, 2 }
 0x369   : > { %v3418_v14 = vsel %vm847_vm2, %v3417_v41, 0.0 }
 0x36a   : > { %v5432_v38 = vpop.eup %5431  ;;  %v3426_v48 = vsel %vm847_vm2, %v3425_v40, 0.0  ;;  %5441 = vpow2.f32 %v4248_v11  ;;  %v4209_v19 = vmax.f32 %v4207_v47, %v4208_v61 }
 0x36b   : > { %3411 = vadd.xlane.f32.xlu1 %v3410_v57  ;;  %v3437_v51 = vmul.f32 %v5432_v38, %v6571_v8  ;;  %v5434_v4 = vpop.eup %5433 }
 0x36c   : > { %3431 = vadd.xlane.f32.xlu0 %v3430_v50  ;;  %v5436_v24 = vpop.eup %5435  ;;  %v3433_v59 = vmul.f32 %v5434_v4, %v6569_v45  ;;  %v1603_v45 = vpop.xlane.xlu0 %1602  ;;  %v4210_v60 = vrot.slane %v4209_v19, 1 }
 0x36d   : > { %v3438_v43 = vsel %vm847_vm2, %v3437_v51, 0.0  ;;  %v5438_v63 = vpop.eup %5437  ;;  %v4257_v7 = vsel %vm847_vm2, %v5436_v24, 0.0 }
 0x36e   : > { %v3434_v12 = vsel %vm847_vm2, %v3433_v59, 0.0  ;;  %v4314_v33 = vmul.f32 %v5438_v63, %v6581_v52  ;;  %v5440_v36 = vpop.eup %5439  ;;  %v4258_v8 = vrot.slane %v4257_v7, 4  ;;  %v4184_v52 = vsel %vm847_vm2, %v6499_v46, -inf }
 0x36f   : > { %3419 = vadd.xlane.f32.xlu1 %v3418_v14  ;;  %v4271_v32 = vsel %vm847_vm2, %v5440_v36, 0.0  ;;  %v4185_v39 = vrot.slane %v4184_v52, 4  ;;  %v4211_v41 = vmax.f32 %v4209_v19, %v4210_v60 }
 0x370   : > { %3427 = vadd.xlane.f32.xlu0 %v3426_v48  ;;  %v4315_v6 = vsel %vm847_vm2, %v4314_v33, 0.0  ;;  %v4259_v58 = vadd.f32 %v4258_v8, %v4257_v7  ;;  %v4272_v17 = vrot.slane %v4271_v32, 4 }
 0x371   : > { %v4186_v3 = vmax.f32 %v4184_v52, %v4185_v39  ;;  %v4231_v14 = vsub.f32 %v6509_v26, %v4211_v41 }
 0x372   : > { %v4260_v5 = vrot.slane %v4259_v58, 2  ;;  %v4273_v37 = vadd.f32 %v4272_v17, %v4271_v32  ;;  %v4198_v17 = vsel %vm847_vm2, %v6506_v21, -inf }
 0x373   : > { %v4187_v2 = vrot.slane %v4186_v3, 2  ;;  %v4244_v4 = vmul.f32 1.442695, %v4231_v14 }
 0x374   : > { %3439 = vadd.xlane.f32.xlu0 %v3438_v43  ;;  %v5442_v23 = vpop.eup %5441  ;;  %v4274_v28 = vrot.slane %v4273_v37, 2  ;;  %v4261_v9 = vadd.f32 %v4260_v5, %v4259_v58  ;;  %v4199_v5 = vrot.slane %v4198_v17, 4 }
 0x375   : > { %v4299_v42 = vsel %vm847_vm2, %v5442_v23, 0.0  ;;  %v4188_v55 = vmax.f32 %v4186_v3, %v4187_v2 }
 0x376   : > { %v4300_v35 = vrot.slane %v4299_v42, 4  ;;  %v4262_v49 = vrot.slane %v4261_v9, 1  ;;  %v4275_v30 = vadd.f32 %v4274_v28, %v4273_v37  ;;  %v4200_v52 = vmax.f32 %v4198_v17, %v4199_v5 }
 0x377   : > { %v4189_v31 = vrot.slane %v4188_v55, 1 }
 0x378   : > { %3435 = vadd.xlane.f32.xlu0 %v3434_v12  ;;  %v4301_v29 = vadd.f32 %v4300_v35, %v4299_v42  ;;  %v4263_v22 = vadd.f32 %v4262_v49, %v4261_v9  ;;  %v4276_v10 = vrot.slane %v4275_v30, 1  ;;  %v4201_v9 = vrot.slane %v4200_v52, 2 }
 0x379   : > { %v4190_v50 = vmax.f32 %v4188_v55, %v4189_v31 }
 0x37a   : > { %v4302_v13 = vrot.slane %v4301_v29, 2  ;;  %5443 = vrcp.f32 %v4263_v22  ;;  %v4277_v53 = vadd.f32 %v4276_v10, %v4275_v30 }
 0x37b   : > { %v4228_v57 = vsub.f32 %v6499_v46, %v4190_v50 }
 0x37c   : > { %4316 = vadd.xlane.f32.xlu0 %v4315_v6  ;;  %v4303_v34 = vadd.f32 %v4302_v13, %v4301_v29  ;;  %5445 = vrcp.f32 %v4277_v53  ;;  %v1619_v6 = vpop.xlane.xlu0 %1618  ;;  %v4202_v29 = vmax.f32 %v4200_v52, %v4201_v9 }
 0x37d   : > { %v4238_v0 = vmul.f32 1.442695, %v4228_v57 }
 0x37e   : > { %v4304_v62 = vrot.slane %v4303_v34, 1  ;;  %v4203_v49 = vrot.slane %v4202_v29, 1 }
 0x380   : > { %1634 = vperm.xlu1 %5335, %v1603_v45   ;;  %v4305_v1 = vadd.f32 %v4304_v62, %v4303_v34  ;;  %v1627_v39 = vpop.xlane.xlu0 %1626  ;;  %v4204_v3 = vmax.f32 %v4202_v29, %v4203_v49 }
 0x382   : > { %5447 = vrcp.f32 %v4305_v1  ;;  %v4230_v22 = vsub.f32 %v6506_v21, %v4204_v3 }
 0x383   : > { %5449 = vpow2.f32 %v4238_v0  ;;  %v4212_v0 = vsel %vm847_vm2, %v6513_v56, -inf }
 0x384   : > { %v5444_v27 = vpop.eup %5443  ;;  %5451 = vpow2.f32 %v4244_v4  ;;  %v6632_v30 = vpop.xlane.xlu0 %1622  ;;  %v4213_v4 = vrot.slane %v4212_v0, 4 }
 0x385   : > { %v4318_v40 = vmul.f32 %v5444_v27, %v5436_v24 }
 0x386   : > { %v5446_v38 = vpop.eup %5445 }
 0x387   : > { %v4319_v48 = vsel %vm847_vm2, %v4318_v40, 0.0  ;;  %v4326_v51 = vmul.f32 %v5446_v38, %v5440_v36  ;;  %v1611_v36 = vpop.xlane.xlu1 %1610 }
 0x388   : > { %v6634_v13 = vpop.xlane.xlu0 %1630 }
 0x389   : > { %v4327_v11 = vsel %vm847_vm2, %v4326_v51, 0.0 }
 0x38b   : > { %v1615_v61 = vpop.xlane.xlu1 %1614 }
 0x38c   : > { %v5448_v43 = vpop.eup %5447 }
 0x38d   : > { %v4342_v59 = vmul.f32 %v5448_v43, %v5442_v23  ;;  %v5450_v24 = vpop.eup %5449 }
 0x38e   : > { %v4264_v63 = vsel %vm847_vm2, %v5450_v24, 0.0  ;;  %v5452_v12 = vpop.eup %5451 }
 0x38f   : > { %v4343_v46 = vsel %vm847_vm2, %v4342_v59, 0.0  ;;  %v4265_v26 = vrot.slane %v4264_v63, 4  ;;  %v4285_v33 = vsel %vm847_vm2, %v5452_v12, 0.0 }
 0x390   : > { %v4286_v8 = vrot.slane %v4285_v33, 4 }
 0x391   : > { %v4266_v7 = vadd.f32 %v4265_v26, %v4264_v63 }
 0x392   : > { %1639 = vperm.xlu0 %5336, %v1607_v54   ;;  %v4287_v58 = vadd.f32 %v4286_v8, %v4285_v33  ;;  %v4242_v54 = vmul.f32 1.442695, %v4230_v22 }
 0x393   : > { %v4267_v32 = vrot.slane %v4266_v7, 2 }
 0x394   : > { %v4288_v45 = vrot.slane %v4287_v58, 2 }
 0x395   : > { %v4268_v23 = vadd.f32 %v4267_v32, %v4266_v7 }
 0x396   : > { %v4289_v42 = vadd.f32 %v4288_v45, %v4287_v58 }
 0x397   : > { %v4269_v37 = vrot.slane %v4268_v23, 1 }
 0x398   : > { %v4290_v35 = vrot.slane %v4289_v42, 1 }
 0x399   : > { %v4270_v28 = vadd.f32 %v4269_v37, %v4268_v23 }
 0x39a   : > { %v4291_v25 = vadd.f32 %v4290_v35, %v4289_v42 }
 0x39b   : > { %5453 = vrcp.f32 %v4270_v28 }
 0x39c   : > { %5455 = vrcp.f32 %v4291_v25 }
 0x39d   : > { %5457 = vpow2.f32 %v4242_v54 }
 0x3a4   : > { %4320 = vadd.xlane.f32.xlu1 %v4319_v48 }
 0x3a5   : > { %v5454_v44 = vpop.eup %5453 }
 0x3a6   : > { %v4322_v10 = vmul.f32 %v5454_v44, %v5450_v24  ;;  %v5456_v2 = vpop.eup %5455  ;;  %v6663_v24 = vld [vmem:[%s6882_s5 + $0x2] ss:$0 sm:$0xff] }
 0x3a7   : > { %v6637_v47 = vpop.xlane.xlu0 %2510  ;;  %v4334_v34 = vmul.f32 %v5456_v2, %v5452_v12  ;;  %v5458_v50 = vpop.eup %5457  ;;  %v6667_v63 = vadd.f32 %v6663_v24, %v6236_v16  ;;  %v6679_v42 = vadd.f32 %v6232_v15, %v6663_v24 }
 0x3a8   : > { %4328 = vadd.xlane.f32.xlu1 %v4327_v11  ;;  %v4323_v53 = vsel %vm847_vm2, %v4322_v10, 0.0  ;;  %v4278_v57 = vsel %vm847_vm2, %v5458_v50, 0.0 }
 0x3a9   : > { %v4335_v62 = vsel %vm847_vm2, %v4334_v34, 0.0  ;;  %v4279_v41 = vrot.slane %v4278_v57, 4 }
 0x3ab   : > { %v4280_v14 = vadd.f32 %v4279_v41, %v4278_v57 }
 0x3ad   : > { %v4281_v11 = vrot.slane %v4280_v14, 2 }
 0x3af   : > { %v4282_v33 = vadd.f32 %v4281_v11, %v4280_v14 }
 0x3b1   : > { %4344 = vadd.xlane.f32.xlu0 %v4343_v46  ;;  %v4214_v46 = vmax.f32 %v4212_v0, %v4213_v4  ;;  %v4283_v8 = vrot.slane %v4282_v33, 1  ;;  %v6690_v0 = vadd.f32 %v6663_v24, %v6241_v18 }
 0x3b3   : > { %v4284_v17 = vadd.f32 %v4283_v8, %v4282_v33 }
 0x3b5   : > { %5459 = vrcp.f32 %v4284_v17 }
 0x3b9   : > { %1644 = vperm.xlu1 %5335, %v1611_v36   ;;  %v4215_v36 = vrot.slane %v4214_v46, 2 }
 0x3ba   : > { %v6640_v55 = vpop.xlane.xlu0 %2506 }
 0x3bd   : > { %1654 = vperm.xlu1 %5335, %v1619_v6   ;;  %v4216_v6 = vmax.f32 %v4214_v46, %v4215_v36 }
 0x3bf   : > { %v4217_v45 = vrot.slane %v4216_v6, 1  ;;  %v5460_v49 = vpop.eup %5459 }
 0x3c0   : > { %v4330_v10 = vmul.f32 %v5460_v49, %v5458_v50 }
 0x3c1   : > { %v4218_v16 = vmax.f32 %v4216_v6, %v4217_v45 }
 0x3c3   : > { %v4232_v28 = vsub.f32 %v6513_v56, %v4218_v16 }
 0x3c5   : > { %v4246_v29 = vmul.f32 1.442695, %v4232_v28 }
 0x3c7   : > { %5461 = vpow2.f32 %v4246_v29 }
 0x3ca   : > { %v6643_v31 = vpop.xlane.xlu0 %2518 }
 0x3ce   : > { %v6645_v21 = vpop.xlane.xlu0 %2514 }
 0x3e1   : > { %4324 = vadd.xlane.f32.xlu1 %v4323_v53  ;;  %v4331_v53 = vsel %vm847_vm2, %v4330_v10, 0.0 }
 0x3e5   : > { %4336 = vadd.xlane.f32.xlu1 %v4335_v62  ;;  %v5462_v62 = vpop.eup %5461 }
 0x3e8   : > { %v2527_v19 = vpop.xlane.xlu1 %2526 }
 0x3e9   : > { %2563 = vperm.xlu0 %5336, %v2527_v19   ;;  %v4292_v19 = vsel %vm847_vm2, %v5462_v62, 0.0 }
 0x3ec   : > { %v2523_v1 = vpop.xlane.xlu1 %2522 }
 0x3ed   : > { %2558 = vperm.xlu0 %5336, %v2523_v1   ;;  %v4293_v1 = vrot.slane %v4292_v19, 4 }
 0x3f0   : > { %v2535_v60 = vpop.xlane.xlu1 %2534 }
 0x3f1   : > { %v6647_v27 = vpop.xlane.xlu0 %3415  ;;  %2573 = vperm.xlu0 %5336, %v2535_v60   ;;  %v4294_v60 = vadd.f32 %v4293_v1, %v4292_v19 }
 0x3f3   : > { %v4295_v57 = vrot.slane %v4294_v60, 2 }
 0x3f4   : > { %v2531_v40 = vpop.xlane.xlu1 %2530 }
 0x3f5   : > { %v6650_v38 = vpop.xlane.xlu0 %3423  ;;  %2568 = vperm.xlu0 %5336, %v2531_v40   ;;  %v4296_v40 = vadd.f32 %v4295_v57, %v4294_v60 }
 0x3f6   : > { %1649 = vperm.xlu1 %5335, %v1615_v61  }
 0x3f7   : > { %v4297_v4 = vrot.slane %v4296_v40, 1 }
 0x3f8   : > { %v6654_v48 = vpop.xlane.xlu1 %3411 }
 0x3f9   : > { %v6656_v51 = vpop.xlane.xlu0 %3431  ;;  %v4298_v33 = vadd.f32 %v4297_v4, %v4296_v40 }
 0x3fa   : > { %1664 = vperm.xlu1 %5335, %v1627_v39  }
 0x3fb   : > { %5463 = vrcp.f32 %v4298_v33 }
 0x3fc   : > { %v3420_v43 = vpop.xlane.xlu1 %3419 }
 0x3fd   : > { %v6658_v59 = vpop.xlane.xlu0 %3427  ;;  %3453 = vperm.xlu0 %5336, %v3420_v43   ;;  %v6695_v43 = vadd.f32 %v6663_v24, %v6245_v20 }
 0x400   : > { %v1635_v12 = vpop.permute.xlu1 %1634 }
 0x401   : > { %v6669_v26 = vpop.xlane.xlu0 %3439  ;;  %v1672_v7 = vmul.f32 %v1635_v12, %v6667_v63 }
 0x403   : > { %v1680_v58 = vsel %vm847_vm2, %v1672_v7, 0.0 }
 0x404   : > { %v1681_v23 = vrot.slane %v1680_v58, 4 }
 0x405   : > { %v6672_v32 = vpop.xlane.xlu0 %3435  ;;  %v5464_v45 = vpop.eup %5463 }
 0x406   : > { %v1682_v37 = vadd.f32 %v1681_v23, %v1680_v58  ;;  %v4338_v23 = vmul.f32 %v5464_v45, %v5462_v62  ;;  %v6943_v62 = vld [vmem:[#allocation24_spill] sm:$0xff] }
 0x407   : > { %v6731_v19 = vadd.f32 %v6943_v62, %v6663_v24  ;;  %v5700_v62 = vmov 0.0|0.0  }
 0x408   : > { %v1683_v9 = vrot.slane %v1682_v37, 2  ;;  %v4339_v20 = vsel %vm847_vm2, %v4338_v23, 0.0  ;;  %5239 = vmatprep.subr.bf16.mxu0 %v5700_v62 }
 0x409   : > { %v6675_v5 = vpop.xlane.xlu0 %4316 }
 0x40a   : > { %v1684_v3 = vadd.f32 %v1683_v9, %v1682_v37 }
 0x40c   : > { %v1685_v2 = vrot.slane %v1684_v3, 1 }
 0x40e   : > { %v1686_v56 = vadd.f32 %v1685_v2, %v1684_v3 }
 0x411   : > { %v1640_v52 = vpop.permute.xlu0 %1639 }
 0x412   : > { %v1673_v35 = vmul.f32 %v1640_v52, %v6679_v42 }
 0x414   : > { %v1687_v39 = vsel %vm847_vm2, %v1673_v35, 0.0  ;;  %v6941_v35 = vld [vmem:[#allocation23_spill] sm:$0xff] }
 0x415   : > { %v1688_v25 = vrot.slane %v1687_v39, 4  ;;  %v6709_v9 = vadd.f32 %v6941_v35, %v6663_v24 }
 0x417   : > { %v1689_v44 = vadd.f32 %v1688_v25, %v1687_v39 }
 0x419   : > { %v1690_v22 = vrot.slane %v1689_v44, 2 }
 0x41b   : > { %v1691_v54 = vadd.f32 %v1690_v22, %v1689_v44 }
 0x41d   : > { %v1692_v15 = vrot.slane %v1691_v54, 1 }
 0x41e   : > { %4332 = vadd.xlane.f32.xlu1 %v4331_v53 }
 0x41f   : > { %v1693_v34 = vadd.f32 %v1692_v15, %v1691_v54 }
 0x421   : > { %v4460_v61 = vsel %vm4459_vm3, %v1693_v34, %v1686_v56 }
 0x42f   : > { %1659 = vperm.xlu1 %5335, %v6632_v30  }
 0x431   : > { %v4321_v50 = vpop.xlane.xlu1 %4320 }
 0x432   : > { %4353 = vperm.xlu0 %5336, %v4321_v50  }
 0x435   : > { %v4329_v41 = vpop.xlane.xlu1 %4328 }
 0x436   : > { %4363 = vperm.xlu0 %5336, %v4329_v41  }
 0x439   : > { %v1645_v14 = vpop.permute.xlu1 %1644 }
 0x43a   : > { %v1674_v11 = vmul.f32 %v1645_v14, %v6690_v0 }
 0x43c   : > { %v1694_v30 = vsel %vm847_vm2, %v1674_v11, 0.0 }
 0x43d   : > { %v1695_v46 = vrot.slane %v1694_v30, 4  ;;  %v1655_v12 = vpop.permute.xlu1 %1654 }
 0x43e   : > { %v1676_v36 = vmul.f32 %v1655_v12, %v6695_v43 }
 0x43f   : > { %v1696_v7 = vadd.f32 %v1695_v46, %v1694_v30 }
 0x440   : > { %v1708_v16 = vsel %vm847_vm2, %v1676_v36, 0.0 }
 0x441   : > { %v1697_v8 = vrot.slane %v1696_v7, 2  ;;  %v1709_v52 = vrot.slane %v1708_v16, 4 }
 0x443   : > { %v1698_v18 = vadd.f32 %v1697_v8, %v1696_v7 }
 0x445   : > { %v1699_v6 = vrot.slane %v1698_v18, 1 }
 0x447   : > { %v1700_v58 = vadd.f32 %v1699_v6, %v1698_v18  ;;  %v6944_v18 = vld [vmem:[#allocation21_spill] sm:$0xff] }
 0x448   : > { %v6741_v6 = vadd.f32 %v6944_v18, %v6663_v24 }
 0x449   : > { %v4462_v17 = vsel %vm4461_vm4, %v1700_v58, %v4460_v61 }
 0x453   : > { %4340 = vadd.xlane.f32.xlu1 %v4339_v20 }
 0x464   : > { %1669 = vperm.xlu1 %5335, %v6634_v13   ;;  %v1710_v13 = vadd.f32 %v1709_v52, %v1708_v16 }
 0x468   : > { %2543 = vperm.xlu1 %5335, %v6637_v47  }
 0x46c   : > { %2538 = vperm.xlu1 %5335, %v6640_v55   ;;  %v6942_v55 = vld [vmem:[#allocation22_spill] sm:$0xff] }
 0x46d   : > { %v6715_v25 = vadd.f32 %v6663_v24, %v6942_v55 }
 0x46e   : > { %v4325_v37 = vpop.xlane.xlu1 %4324 }
 0x46f   : > { %4358 = vperm.xlu0 %5336, %v4325_v37  }
 0x470   : > { %2553 = vperm.xlu1 %5335, %v6643_v31   ;;  %v1711_v31 = vrot.slane %v1710_v13, 2 }
 0x472   : > { %v4337_v28 = vpop.xlane.xlu1 %4336  ;;  %v1712_v22 = vadd.f32 %v1711_v31, %v1710_v13 }
 0x473   : > { %4373 = vperm.xlu0 %5336, %v4337_v28  }
 0x474   : > { %2548 = vperm.xlu1 %5335, %v6645_v21  }
 0x476   : > { %v1650_v39 = vpop.permute.xlu1 %1649 }
 0x477   : > { %v1675_v47 = vmul.f32 %v1650_v39, %v6709_v9 }
 0x478   : > { %3448 = vperm.xlu1 %5335, %v6647_v27   ;;  %v1713_v27 = vrot.slane %v1712_v22, 1 }
 0x479   : > { %v1701_v29 = vsel %vm847_vm2, %v1675_v47, 0.0 }
 0x47a   : > { %v1702_v49 = vrot.slane %v1701_v29, 4  ;;  %v1665_v3 = vpop.permute.xlu1 %1664  ;;  %v1714_v53 = vadd.f32 %v1713_v27, %v1712_v22 }
 0x47b   : > { %v1678_v21 = vmul.f32 %v1665_v3, %v6715_v25 }
 0x47c   : > { %v1703_v44 = vadd.f32 %v1702_v49, %v1701_v29  ;;  %3443 = vperm.xlu1 %5335, %v6654_v48  }
 0x47d   : > { %v1722_v48 = vsel %vm847_vm2, %v1678_v21, 0.0 }
 0x47e   : > { %v1704_v10 = vrot.slane %v1703_v44, 2  ;;  %v1723_v61 = vrot.slane %v1722_v48, 4 }
 0x480   : > { %v1705_v2 = vadd.f32 %v1704_v10, %v1703_v44  ;;  %3458 = vperm.xlu1 %5335, %v6650_v38   ;;  %v4345_v38 = vpop.xlane.xlu0 %4344  ;;  %v1724_v1 = vadd.f32 %v1723_v61, %v1722_v48 }
 0x482   : > { %v1706_v54 = vrot.slane %v1705_v2, 1 }
 0x484   : > { %v1707_v15 = vadd.f32 %v1706_v54, %v1705_v2  ;;  %3468 = vperm.xlu1 %5335, %v6656_v51   ;;  %v2564_v33 = vpop.permute.xlu0 %2563 }
 0x485   : > { %v2581_v58 = vmul.f32 %v2564_v33, %v6731_v19 }
 0x486   : > { %v4464_v56 = vsel %vm4463_vm5, %v1707_v15, %v4462_v17 }
 0x487   : > { %v4466_v34 = vsel %vm4465_vm6, %v1714_v53, %v4464_v56  ;;  %v2620_v52 = vsel %vm2584_vm9, %v2581_v58, 0.0  ;;  %v4527_v56 = vld [vmem:[#allocation10] sm:$0xff] }
 0x488   : > { %3463 = vperm.xlu1 %5335, %v6658_v59   ;;  %v2559_v36 = vpop.permute.xlu0 %2558  ;;  %v2621_v31 = vrot.slane %v2620_v52, 4 }
 0x489   : > { %v2580_v17 = vmul.f32 %v2559_v36, %v6695_v43 }
 0x48a   : > { %v2622_v48 = vadd.f32 %v2621_v31, %v2620_v52 }
 0x48b   : > { %v2613_v28 = vsel %vm2584_vm9, %v2580_v17, 0.0 }
 0x48c   : > { %3473 = vperm.xlu1 %5335, %v6672_v32   ;;  %v1725_v32 = vrot.slane %v1724_v1, 2  ;;  %v2574_v7 = vpop.permute.xlu0 %2573  ;;  %v2614_v29 = vrot.slane %v2613_v28, 4 }
 0x48d   : > { %v2583_v20 = vmul.f32 %v2574_v7, %v6741_v6 }
 0x48e   : > { %v1726_v50 = vadd.f32 %v1725_v32, %v1724_v1  ;;  %v2615_v61 = vadd.f32 %v2614_v29, %v2613_v28 }
 0x48f   : > { %v2634_v47 = vsel %vm2584_vm9, %v2583_v20, 0.0 }
 0x490   : > { %4348 = vperm.xlu1 %5335, %v6675_v5   ;;  %v1727_v14 = vrot.slane %v1726_v50, 1  ;;  %v2569_v16 = vpop.permute.xlu0 %2568  ;;  %v2635_v10 = vrot.slane %v2634_v47, 4  ;;  %v2616_v36 = vrot.slane %v2615_v61, 2 }
 0x491   : > { %v2582_v13 = vmul.f32 %v2569_v16, %v6715_v25 }
 0x492   : > { %v1728_v30 = vadd.f32 %v1727_v14, %v1726_v50  ;;  %v2636_v50 = vadd.f32 %v2635_v10, %v2634_v47 }
 0x493   : > { %v2627_v2 = vsel %vm2584_vm9, %v2582_v13, 0.0  ;;  %v2617_v13 = vadd.f32 %v2616_v36, %v2615_v61 }
 0x494   : > { %3478 = vperm.xlu1 %5335, %v6669_v26   ;;  %v3454_v49 = vpop.permute.xlu0 %3453  ;;  %v2637_v17 = vrot.slane %v2636_v50, 2 }
 0x495   : > { %v3483_v54 = vmul.f32 %v3454_v49, %v6690_v0 }
 0x496   : > { %v2638_v31 = vadd.f32 %v2637_v17, %v2636_v50 }
 0x497   : > { %v3504_v14 = vsel %vm3489_vm10, %v3483_v54, 0.0  ;;  %v2618_v54 = vrot.slane %v2617_v13, 1 }
 0x498   : > { %4383 = vperm.xlu1 %5335, %v4345_v38   ;;  %v4529_v38 = vld [vmem:[#allocation10 + $0x10] sm:$0xff] }
 0x4ab   : > { %v4333_v51 = vpop.xlane.xlu1 %4332 }
 0x4ac   : > { %4368 = vperm.xlu0 %5336, %v4333_v51  }
 0x4af   : > { %v1660_v60 = vpop.permute.xlu1 %1659 }
 0x4b0   : > { %v1677_v59 = vmul.f32 %v1660_v60, %v6731_v19  ;;  %v4530_v60 = vld [vmem:[#allocation10 + $0x18] sm:$0xff] }
 0x4b1   : > { %v4354_v16 = vpop.permute.xlu0 %4353 }
 0x4b2   : > { %v1715_v5 = vsel %vm847_vm2, %v1677_v59, 0.0  ;;  %v2628_v59 = vrot.slane %v2627_v2, 4 }
 0x4b3   : > { %v1716_v57 = vrot.slane %v1715_v5, 4 }
 0x4b4   : > { %v2629_v7 = vadd.f32 %v2628_v59, %v2627_v2 }
 0x4b5   : > { %v1717_v26 = vadd.f32 %v1716_v57, %v1715_v5 }
 0x4b7   : > { %v1718_v41 = vrot.slane %v1717_v26, 2 }
 0x4b9   : > { %v1719_v40 = vadd.f32 %v1718_v41, %v1717_v26 }
 0x4bb   : > { %v1720_v4 = vrot.slane %v1719_v40, 1 }
 0x4bd   : > { %v1721_v11 = vadd.f32 %v1720_v4, %v1719_v40  ;;  %v5243_v40 = vpack.c.bf16 %v4530_v60, %v4529_v38 }
 0x4bf   : > { %v4468_v46 = vsel %vm4467_vm7, %v1721_v11, %v4466_v34  ;;  %v4528_v34 = vld [vmem:[#allocation10 + $0x8] sm:$0xff] }
 0x4c0   : > { %v6737_v12 = vsel %vm4469_vm8, %v1728_v30, %v4468_v46  ;;  %v5240_v1 = vpack.c.bf16 %v4528_v34, %v4527_v56  ;;  %v2623_v46 = vrot.slane %v2622_v48, 2 }
 0x4c2   : > { %5241 = vmatpush3.bf16.msra.mxu0 %v5240_v1  ;;  %v2624_v28 = vadd.f32 %v2623_v46, %v2622_v48  ;;  %v2639_v48 = vrot.slane %v2638_v31, 1 }
 0x4c3   : > { %5242 = vmatprep.subr.bf16.mxu0 %v5700_v62 }
 0x4c4   : > { %v2625_v10 = vrot.slane %v2624_v28, 1 }
 0x4c6   : > { %5244 = vmatpush3.bf16.msra.mxu0 %v5243_v40  ;;  %v2626_v60 = vadd.f32 %v2625_v10, %v2624_v28 }
 0x4e0   : > { %v4341_v8 = vpop.xlane.xlu1 %4340 }
 0x4e1   : > { %4378 = vperm.xlu0 %5336, %v4341_v8  }
 0x4e4   : > { %v1670_v45 = vpop.permute.xlu1 %1669 }
 0x4e5   : > { %v1679_v23 = vmul.f32 %v1670_v45, %v6741_v6  ;;  %v3505_v45 = vrot.slane %v3504_v14, 4 }
 0x4e7   : > { %v1729_v37 = vsel %vm847_vm2, %v1679_v23, 0.0  ;;  %v3506_v29 = vadd.f32 %v3505_v45, %v3504_v14 }
 0x4e8   : > { %v1730_v35 = vrot.slane %v1729_v37, 4  ;;  %v2544_v24 = vpop.permute.xlu1 %2543 }
 0x4e9   : > { %v2577_v39 = vmul.f32 %v2544_v24, %v6679_v42  ;;  %v3507_v61 = vrot.slane %v3506_v29, 2 }
 0x4ea   : > { %v1731_v55 = vadd.f32 %v1730_v35, %v1729_v37 }
 0x4eb   : > { %v2592_v3 = vsel %vm2584_vm9, %v2577_v39, 0.0  ;;  %v2630_v39 = vrot.slane %v2629_v7, 2 }
 0x4ec   : > { %v1732_v21 = vrot.slane %v1731_v55, 2  ;;  %v2593_v44 = vrot.slane %v2592_v3, 4  ;;  %v2539_v22 = vpop.permute.xlu1 %2538 }
 0x4ed   : > { %v2576_v27 = vmul.f32 %v2539_v22, %v6667_v63 }
 0x4ee   : > { %v1733_v15 = vadd.f32 %v1732_v21, %v1731_v55  ;;  %v2594_v53 = vadd.f32 %v2593_v44, %v2592_v3 }
 0x4ef   : > { %v2585_v51 = vsel %vm2584_vm9, %v2576_v27, 0.0 }
 0x4f0   : > { %v1734_v32 = vrot.slane %v1733_v15, 1  ;;  %v2595_v5 = vrot.slane %v2594_v53, 2  ;;  %v2586_v57 = vrot.slane %v2585_v51, 4  ;;  %v2554_v26 = vpop.permute.xlu1 %2553 }
 0x4f1   : > { %v2579_v41 = vmul.f32 %v2554_v26, %v6709_v9 }
 0x4f2   : > { %v1735_v4 = vadd.f32 %v1734_v32, %v1733_v15  ;;  %v2596_v11 = vadd.f32 %v2595_v5, %v2594_v53  ;;  %v2587_v30 = vadd.f32 %v2586_v57, %v2585_v51  ;;  %v2631_v15 = vadd.f32 %v2630_v39, %v2629_v7  ;;  %v4364_v53 = vpop.permute.xlu0 %4363 }
 0x4f3   : > { %v2606_v33 = vsel %vm2584_vm9, %v2579_v41, 0.0  ;;  %v2619_v57 = vadd.f32 %v2618_v54, %v2617_v13  ;;  %v4389_v36 = vmul.f32 %v4364_v53, %v6709_v9 }
 0x4f4   : > { %v6763_v8 = vsel %vm4471_vm11, %v1735_v4, %v6737_v12  ;;  %v2588_v18 = vrot.slane %v2587_v30, 2  ;;  %v2549_v58 = vpop.permute.xlu1 %2548  ;;  %v2607_v23 = vrot.slane %v2606_v33, 4  ;;  %v2597_v37 = vrot.slane %v2596_v11, 1 }
 0x4f5   : > { %v2578_v20 = vmul.f32 %v2549_v58, %v6690_v0  ;;  %v2632_v26 = vrot.slane %v2631_v15, 1  ;;  %v2640_v4 = vadd.f32 %v2639_v48, %v2638_v31 }
 0x4f6   : > { %v2589_v52 = vadd.f32 %v2588_v18, %v2587_v30  ;;  %v2608_v35 = vadd.f32 %v2607_v23, %v2606_v33  ;;  %v2598_v21 = vadd.f32 %v2597_v37, %v2596_v11  ;;  %v4359_v50 = vpop.permute.xlu0 %4358  ;;  %v3508_v11 = vadd.f32 %v3507_v61, %v3506_v29 }
 0x4f7   : > { %v2599_v24 = vsel %vm2584_vm9, %v2578_v20, 0.0  ;;  %v4387_v33 = vmul.f32 %v4354_v16, %v6679_v42  ;;  %v4388_v58 = vmul.f32 %v4359_v50, %v6690_v0  ;;  %v2633_v20 = vadd.f32 %v2632_v26, %v2631_v15 }
 0x4f8   : > { %v2590_v47 = vrot.slane %v2589_v52, 1  ;;  %v2600_v12 = vrot.slane %v2599_v24, 4  ;;  %v3449_v55 = vpop.permute.xlu1 %3448  ;;  %v2609_v49 = vrot.slane %v2608_v35, 2 }
 0x4f9   : > { %v3482_v3 = vmul.f32 %v3449_v55, %v6679_v42  ;;  %v4402_v16 = vsel %vm4394_vm12, %v4387_v33, 0.0  ;;  %v4409_v55 = vsel %vm4394_vm12, %v4388_v58, 0.0 }
 0x4fa   : > { %v2591_v44 = vadd.f32 %v2590_v47, %v2589_v52  ;;  %v2601_v22 = vadd.f32 %v2600_v12, %v2599_v24  ;;  %v2610_v2 = vadd.f32 %v2609_v49, %v2608_v35  ;;  %v3509_v24 = vrot.slane %v3508_v11, 1 }
 0x4fb   : > { %v3497_v27 = vsel %vm3489_vm10, %v3482_v3, 0.0  ;;  %v4416_v12 = vsel %vm4394_vm12, %v4389_v36, 0.0  ;;  %v4403_v10 = vrot.slane %v4402_v16, 4  ;;  %v4410_v61 = vrot.slane %v4409_v55, 4 }
 0x4fc   : > { %v4482_v56 = vsel %vm4459_vm3, %v2598_v21, %v2591_v44  ;;  %v2602_v34 = vrot.slane %v2601_v22, 2  ;;  %v3444_v38 = vpop.permute.xlu1 %3443  ;;  %v3498_v51 = vrot.slane %v3497_v27, 4  ;;  %v2611_v59 = vrot.slane %v2610_v2, 1 }
 0x4fd   : > { %v3481_v62 = vmul.f32 %v3444_v38, %v6667_v63  ;;  %v3510_v38 = vadd.f32 %v3509_v24, %v3508_v11  ;;  %v4417_v48 = vrot.slane %v4416_v12, 4  ;;  %v4404_v26 = vadd.f32 %v4403_v10, %v4402_v16 }
 0x4fe   : > { %v2603_v1 = vadd.f32 %v2602_v34, %v2601_v22  ;;  %v3499_v32 = vadd.f32 %v3498_v51, %v3497_v27  ;;  %v2612_v17 = vadd.f32 %v2611_v59, %v2610_v2 }
 0x4ff   : > { %v3490_v5 = vsel %vm3489_vm10, %v3481_v62, 0.0 }
 0x500   : > { %v2604_v41 = vrot.slane %v2603_v1, 1  ;;  %v3491_v40 = vrot.slane %v3490_v5, 4  ;;  %v3459_v14 = vpop.permute.xlu1 %3458  ;;  %v3500_v30 = vrot.slane %v3499_v32, 2 }
 0x501   : > { %v3484_v46 = vmul.f32 %v3459_v14, %v6709_v9 }
 0x502   : > { %v2605_v7 = vadd.f32 %v2604_v41, %v2603_v1  ;;  %v3492_v18 = vadd.f32 %v3491_v40, %v3490_v5  ;;  %v3501_v45 = vadd.f32 %v3500_v30, %v3499_v32  ;;  %v4411_v40 = vadd.f32 %v4410_v61, %v4409_v55 }
 0x503   : > { %v3511_v23 = vsel %vm3489_vm10, %v3484_v46, 0.0 }
 0x504   : > { %v4483_v37 = vsel %vm4461_vm4, %v2605_v7, %v4482_v56  ;;  %v3493_v52 = vrot.slane %v3492_v18, 2  ;;  %v3512_v28 = vrot.slane %v3511_v23, 4  ;;  %v3469_v35 = vpop.permute.xlu1 %3468  ;;  %v3502_v42 = vrot.slane %v3501_v45, 1 }
 0x505   : > { %v4484_v13 = vsel %vm4463_vm5, %v2612_v17, %v4483_v37  ;;  %v3486_v9 = vmul.f32 %v3469_v35, %v6731_v19  ;;  %v4405_v7 = vrot.slane %v4404_v26, 2 }
 0x506   : > { %v4485_v0 = vsel %vm4465_vm6, %v2619_v57, %v4484_v13  ;;  %v3494_v39 = vadd.f32 %v3493_v52, %v3492_v18  ;;  %v3513_v47 = vadd.f32 %v3512_v28, %v3511_v23  ;;  %v3503_v2 = vadd.f32 %v3502_v42, %v3501_v45 }
 0x507   : > { %v3525_v31 = vsel %vm3489_vm10, %v3486_v9, 0.0  ;;  %v4486_v29 = vsel %vm4467_vm7, %v2626_v60, %v4485_v0  ;;  %v4412_v45 = vrot.slane %v4411_v40, 2  ;;  %v4406_v13 = vadd.f32 %v4405_v7, %v4404_v26 }
 0x508   : > { %v3495_v49 = vrot.slane %v3494_v39, 1  ;;  %v3514_v3 = vrot.slane %v3513_v47, 2  ;;  %v3526_v21 = vrot.slane %v3525_v31, 4  ;;  %v3464_v44 = vpop.permute.xlu1 %3463  ;;  %v4487_v22 = vsel %vm4469_vm8, %v2633_v20, %v4486_v29 }
 0x509   : > { %v3485_v27 = vmul.f32 %v3464_v44, %v6695_v43  ;;  %v4488_v54 = vsel %vm4471_vm11, %v2640_v4, %v4487_v22 }
 0x50a   : > { %v3496_v15 = vadd.f32 %v3495_v49, %v3494_v39  ;;  %v3515_v53 = vadd.f32 %v3514_v3, %v3513_v47  ;;  %v3527_v56 = vadd.f32 %v3526_v21, %v3525_v31  ;;  %v6791_v34 = vsel %vm847_vm2, %v6763_v8, %v4488_v54 }
 0x50b   : > { %v3518_v51 = vsel %vm3489_vm10, %v3485_v27, 0.0  ;;  %v4418_v8 = vadd.f32 %v4417_v48, %v4416_v12  ;;  %v4407_v3 = vrot.slane %v4406_v13, 1  ;;  %v4374_v27 = vpop.permute.xlu0 %4373 }
 0x50c   : > { %v4498_v62 = vsel %vm4459_vm3, %v3503_v2, %v3496_v15  ;;  %v3516_v1 = vrot.slane %v3515_v53, 1  ;;  %v3528_v60 = vrot.slane %v3527_v56, 2  ;;  %v3519_v59 = vrot.slane %v3518_v51, 4  ;;  %v3474_v32 = vpop.permute.xlu1 %3473 }
 0x50d   : > { %v4499_v5 = vsel %vm4461_vm4, %v3510_v38, %v4498_v62  ;;  %v3487_v57 = vmul.f32 %v3474_v32, %v6715_v25  ;;  %v4419_v17 = vrot.slane %v4418_v8, 2 }
 0x50e   : > { %v3517_v50 = vadd.f32 %v3516_v1, %v3515_v53  ;;  %v3520_v41 = vadd.f32 %v3519_v59, %v3518_v51  ;;  %v3529_v14 = vadd.f32 %v3528_v60, %v3527_v56  ;;  %v4408_v56 = vadd.f32 %v4407_v3, %v4406_v13 }
 0x50f   : > { %v3532_v4 = vsel %vm3489_vm10, %v3487_v57, 0.0  ;;  %v4420_v0 = vadd.f32 %v4419_v17, %v4418_v8  ;;  %v4391_v51 = vmul.f32 %v4374_v27, %v6731_v19 }
 0x510   : > { %v4500_v11 = vsel %vm4463_vm5, %v3517_v50, %v4499_v5  ;;  %v3521_v30 = vrot.slane %v3520_v41, 2  ;;  %v3533_v46 = vrot.slane %v3532_v4, 4  ;;  %v4349_v33 = vpop.permute.xlu1 %4348  ;;  %v3530_v23 = vrot.slane %v3529_v14, 1 }
 0x511   : > { %v4386_v36 = vmul.f32 %v4349_v33, %v6667_v63  ;;  %v4413_v63 = vadd.f32 %v4412_v45, %v4411_v40  ;;  %v4421_v2 = vrot.slane %v4420_v0, 1  ;;  %v4430_v57 = vsel %vm4394_vm12, %v4391_v51, 0.0 }
 0x512   : > { %v3522_v18 = vadd.f32 %v3521_v30, %v3520_v41  ;;  %v3534_v58 = vadd.f32 %v3533_v46, %v3532_v4  ;;  %v3531_v39 = vadd.f32 %v3530_v23, %v3529_v14  ;;  %v4431_v41 = vrot.slane %v4430_v57, 4 }
 0x513   : > { %v4395_v20 = vsel %vm4394_vm12, %v4386_v36, 0.0  ;;  %v4414_v10 = vrot.slane %v4413_v63, 1  ;;  %v4422_v62 = vadd.f32 %v4421_v2, %v4420_v0 }
 0x514   : > { %v3523_v37 = vrot.slane %v3522_v18, 1  ;;  %v3535_v52 = vrot.slane %v3534_v58, 2  ;;  %v4396_v28 = vrot.slane %v4395_v20, 4  ;;  %v3479_v35 = vpop.permute.xlu1 %3478  ;;  %v4432_v8 = vadd.f32 %v4431_v41, %v4430_v57 }
 0x515   : > { %v3488_v24 = vmul.f32 %v3479_v35, %v6741_v6  ;;  %v4415_v61 = vadd.f32 %v4414_v10, %v4413_v63 }
 0x516   : > { %v3524_v42 = vadd.f32 %v3523_v37, %v3522_v18  ;;  %v3536_v9 = vadd.f32 %v3535_v52, %v3534_v58  ;;  %v4397_v16 = vadd.f32 %v4396_v28, %v4395_v20  ;;  %v4433_v14 = vrot.slane %v4432_v8, 2 }
 0x517   : > { %v3539_v47 = vsel %vm3489_vm10, %v3488_v24, 0.0 }
 0x518   : > { %v4501_v12 = vsel %vm4465_vm6, %v3524_v42, %v4500_v11  ;;  %v3537_v55 = vrot.slane %v3536_v9, 1  ;;  %v4398_v31 = vrot.slane %v4397_v16, 2  ;;  %v3540_v29 = vrot.slane %v3539_v47, 4  ;;  %v4384_v23 = vpop.permute.xlu1 %4383 }
 0x519   : > { %v4502_v49 = vsel %vm4467_vm7, %v3531_v39, %v4501_v12  ;;  %v4434_v46 = vadd.f32 %v4433_v14, %v4432_v8  ;;  %v4393_v20 = vmul.f32 %v4384_v23, %v6741_v6 }
 0x51a   : > { %v3538_v21 = vadd.f32 %v3537_v55, %v3536_v9  ;;  %v4399_v44 = vadd.f32 %v4398_v31, %v4397_v16  ;;  %v3541_v22 = vadd.f32 %v3540_v29, %v3539_v47  ;;  %v4870_v29 = vld [vmem:[%s6883_s6] ss:$0 sm:$0xff] }
 0x51b   : > { %v4435_v7 = vrot.slane %v4434_v46, 1 }
 0x51c   : > { %v4503_v54 = vsel %vm4469_vm8, %v3538_v21, %v4502_v49  ;;  %v4400_v15 = vrot.slane %v4399_v44, 1  ;;  %v3542_v53 = vrot.slane %v3541_v22, 2 }
 0x51d   : > { %v4436_v17 = vadd.f32 %v4435_v7, %v4434_v46 }
 0x51e   : > { %v4401_v38 = vadd.f32 %v4400_v15, %v4399_v44  ;;  %v3543_v48 = vadd.f32 %v3542_v53, %v3541_v22 }
 0x520   : > { %v4514_v1 = vsel %vm4459_vm3, %v4408_v56, %v4401_v38  ;;  %v3544_v60 = vrot.slane %v3543_v48, 1 }
 0x521   : > { %v4515_v59 = vsel %vm4461_vm4, %v4415_v61, %v4514_v1 }
 0x522   : > { %v3545_v32 = vadd.f32 %v3544_v60, %v3543_v48  ;;  %v4516_v5 = vsel %vm4463_vm5, %v4422_v62, %v4515_v59 }
 0x524   : > { %v4504_v26 = vsel %vm4471_vm11, %v3545_v32, %v4503_v54 }
 0x525   : > { %v4524_v50 = vsel %vm4523_vm13, %v6791_v34, %v4504_v26 }
 0x52b   : > { %v4369_v40 = vpop.permute.xlu0 %4368 }
 0x52c   : > { %v4390_v19 = vmul.f32 %v4369_v40, %v6695_v43  ;;  %v4444_v43 = vsel %vm4394_vm12, %v4393_v20, 0.0 }
 0x52d   : > { %v4445_v37 = vrot.slane %v4444_v43, 4 }
 0x52e   : > { %v4423_v4 = vsel %vm4394_vm12, %v4390_v19, 0.0 }
 0x52f   : > { %v4424_v11 = vrot.slane %v4423_v4, 4  ;;  %v4446_v52 = vadd.f32 %v4445_v37, %v4444_v43 }
 0x531   : > { %v4425_v30 = vadd.f32 %v4424_v11, %v4423_v4  ;;  %v4447_v24 = vrot.slane %v4446_v52, 2 }
 0x533   : > { %v4426_v33 = vrot.slane %v4425_v30, 2  ;;  %v4448_v16 = vadd.f32 %v4447_v24, %v4446_v52 }
 0x535   : > { %v4427_v36 = vadd.f32 %v4426_v33, %v4425_v30  ;;  %v4449_v39 = vrot.slane %v4448_v16, 1 }
 0x537   : > { %v4428_v18 = vrot.slane %v4427_v36, 1  ;;  %v4450_v12 = vadd.f32 %v4449_v39, %v4448_v16 }
 0x539   : > { %v4429_v58 = vadd.f32 %v4428_v18, %v4427_v36 }
 0x53b   : > { %v4517_v45 = vsel %vm4465_vm6, %v4429_v58, %v4516_v5 }
 0x53c   : > { %v4518_v34 = vsel %vm4467_vm7, %v4436_v17, %v4517_v45 }
 0x560   : > { %v4379_v28 = vpop.permute.xlu0 %4378 }
 0x561   : > { %v4392_v35 = vmul.f32 %v4379_v28, %v6715_v25 }
 0x563   : > { %v4437_v13 = vsel %vm4394_vm12, %v4392_v35, 0.0 }
 0x564   : > { %v4438_v42 = vrot.slane %v4437_v13, 4 }
 0x566   : > { %v4439_v9 = vadd.f32 %v4438_v42, %v4437_v13 }
 0x568   : > { %v4440_v0 = vrot.slane %v4439_v9, 2 }
 0x56a   : > { %v4441_v63 = vadd.f32 %v4440_v0, %v4439_v9 }
 0x56c   : > { %v4442_v47 = vrot.slane %v4441_v63, 1 }
 0x56e   : > { %v4443_v6 = vadd.f32 %v4442_v47, %v4441_v63 }
 0x570   : > { %v4519_v55 = vsel %vm4469_vm8, %v4443_v6, %v4518_v34 }
 0x571   : > { %v4520_v25 = vsel %vm4471_vm11, %v4450_v12, %v4519_v55 }
 0x572   : > { %v4526_v31 = vsel %vm4525_vm14, %v4524_v50, %v4520_v25 }
 0x573   : > { %5213 = vmatmul.mubr.msk.f32.vlgmr.msra.gmra.mrb[42].mxu0 %vm423_vm0, %v4526_v31 }
 0x646   : > { %v4607_v49 = vpop.f32.mrb[42].mxu0 }
 0x647   : > { %v4608_v3 = vadd.f32 %v4870_v29, %v4607_v49  ;;  %v5214_v21 = vpop.f32.mrb[43].mxu0 }
 0x649   : > { %4611 = vst.msk [vmem:[%s402_s30] sm:$0xff] %vm423_vm0, %v4608_v3 }
 0x64a   : > { %5624 = shalt.err (!%p5621_p1)
}
 0x64b   : > { %s5625_s21 = scalar_lea.hbm %s6832_s15, 128  ;;  %s5629_s18 = scalar_lea.hbm %s6884_s7, 256 }
 0x64c   : > { %p5626_p5 = scmp.ne.s32.totalorder %s6832_s15, %s5625_s21  ;;  %p5630_p4 = scmp.lt.u32.totalorder %s6832_s15, %s6884_s7 }
 0x64d   : > { %p5631_p8 = scmp.lt.u32.totalorder %s5629_s18, %s5625_s21  ;;  %p5633_p3 = scmp.lt.u32.totalorder %s5625_s21, %s6832_s15 }
 0x64e   : > { %p5627_p11 = pnand %p5626_p5, %p6945_p7 }
 0x64f   : > { %p5632_p13 = por %p5631_p8, %p5630_p4 }
 0x650   : > { %p5628_p12 = pneg %p5627_p11 }
 0x651   : > { %p5634_p0 = por %p5633_p3, %p5632_p13 }
 0x653   : > { %p5635_p6 = pnand %p5634_p0, %p5628_p12 }
 0x655   : > { %5638 = shalt.err (!%p5635_p6)
}
 0x656   : > { %5263 = dma.vmem_to_hbm [thread:$0]  (%p6945_p7), %s6834_s27, 128, %s6832_s15, %s4613_s11  }
 0x657 PF: > { %s6946_s16 = sld [smem:[#allocation16_spill]]  ;;  %s6947_s19 = sld [smem:[#allocation20_spill]] }
 0x658   : > { %s6948_s20 = sld [smem:[#allocation17_spill]] }
 0x65d   : > { %s4638_s9 = sand.u32 1, %s6946_s16   ;;  %p6949_p2 = scmp.ne.s32.totalorder %s6947_s19, 0 }
 0x65e   : > { %p6950_p9 = scmp.ge.s32.totalorder %s6948_s20, 2  ;;  %s4639_s1 = scalar_lea.sflag [#allocation4], %s4638_s9 }
 0x660   : > { %p5283_p10 = pnand %p6950_p9, %p6949_p2 }
 0x662   : > { %5668 = dma.done.wait (!%p5283_p10), %s4639_s1, 128  }
 0x663   : > { %5670 = vsyncadd (!%p5283_p10), %s4639_s1, 4294967168  ;;  %s6951_s27 = sld [smem:[#allocation18_spill]]  ;;  %s6952_s3 = sld [smem:[#allocation19_spill]] }
 0x664   : > { %s6953_s24 = smov %s5677_s25  ;;  %s6954_s25 = smov %s5681_s26 }
 0x669   : > { %p24_p1 = scmp.ge.s32.totalorder %s6951_s27, 4   ;;  %s6955_s26 = smov %s6952_s3 }
 0x66b   :  { %26 = sbr.rel (!%p24_p1) target bundleno = 11 (0xb), region = 127 }
 0x672   :  { %4644 = vsyncpa [#allocation3], 1 }
 0x673   :  { %4646 = vsyncpa [#allocation3 + $0x1], 1 }
 0x674   :  { %4647 = vsyncpa [#allocation6], 1 }
 0x675   :  { %4649 = vsyncpa [#allocation6 + $0x1], 1 }
 0x676   :  { %4650 = vsyncpa [#allocation9], 1 }
 0x677   :  { %4651 = vsyncpa [#allocation4], 1 }
 0x678   :  { %4653 = vsyncpa [#allocation4 + $0x1], 1 }

// kernel: tpu_custom_call.1
= control target key start
LH: loop header
LB: loop body
LE: loop exit
PB: predicated region body
PF: predicated region fallthrough
CT: control target
= control target key end

     0   :  { %s6877_s0 = inlined_call_operand.hbm [shape: f32[16,8,32], index: 0, kind: input, shape index: {}]   ;;  %s6878_s1 = inlined_call_operand.hbm [shape: f32[16,8,32], index: 1, kind: input, shape index: {}]   ;;  %s6879_s2 = inlined_call_operand.hbm [shape: f32[16,8,32], index: 2, kind: input, shape index: {}]   ;;  %s6880_s3 = inlined_call_operand.hbm [shape: f32[3,32,32], index: 3, kind: input, shape index: {}]   ;;  %s6881_s4 = inlined_call_operand.hbm [shape: f32[32,32], index: 4, kind: input, shape index: {}]   ;;  %s6882_s5 = inlined_call_operand.vmem [shape: f32[3,32], index: 5, kind: input, shape index: {}]   ;;  %s6883_s6 = inlined_call_operand.vmem [shape: f32[1,32], index: 6, kind: input, shape index: {}]   ;;  %s6884_s7 = inlined_call_operand.hbm [shape: f32[16,32], index: 7, kind: output, shape index: {}]  }
   0x1   :  { %6906 = sst [smem:[#allocation25_spill]] %s6878_s1 }
   0x2   :  { %6907 = sst [smem:[#allocation26_spill]] %s6880_s3 }
   0x3   :  { %12 = vsyncpa [#allocation3], 0 }
   0x4   :  { %14 = vsyncpa [#allocation3 + $0x1], 0 }
   0x5   :  { %15 = vsyncpa [#allocation6], 0 }
   0x6   :  { %17 = vsyncpa [#allocation6 + $0x1], 0 }
   0x7   :  { %18 = vsyncpa [#allocation9], 0 }
   0x8   :  { %19 = vsyncpa [#allocation4], 0 }
   0x9   :  { %21 = vsyncpa [#allocation4 + $0x1], 0  ;;  %s5742_s24 = smov 0   ;;  %s5744_s25 = smov 0  }
   0xa   :  { %s5746_s26 = smov 0   ;;  %s5748_s27 = smov 0  }
   0xb LB: > { %6908 = sst [smem:[#allocation16_spill]] %s5673_s24  ;;  %s5763_s28 = sadd.s32 4294967295, %s5685_s27   ;;  %s5685_s27 = sphi %s5748_s27, %s6951_s27   ;;  %s5681_s26 = sphi %s5746_s26, %s6955_s26   ;;  %s5677_s25 = sphi %s5744_s25, %s6954_s25   ;;  %s5673_s24 = sphi %s5742_s24, %s6953_s24  }
   0xc   : > { %6909 = sst [smem:[#allocation17_spill]] %s5685_s27  ;;  %s4758_s29 = sadd.s32 4294967294, %s5685_s27  }
   0xd   : > { %s5767_s30 = sadd.s32 1, %s5685_s27   ;;  %s34_s8 = sadd.s32 1, %s5681_s26 }
   0xe   : > { %6910 = sst [smem:[#allocation18_spill]] %s5767_s30  ;;  %s31_s9 = ssub.s32 %s5685_s27, %s5767_s30 }
   0xf   : > { %p41_p0 = scmp.ne.s32.totalorder %s5681_s26, %s5677_s25  ;;  %p32_p1 = scmp.eq.s32.totalorder %s31_s9, 0 }
  0x10   : > { %p42_p2 = scmp.eq.s32.totalorder %s5685_s27, 0  ;;  %p47_p3 = scmp.ne.s32.totalorder %s5677_s25, %s5673_s24 }
  0x11   : > { %p6886_p4 = scmp.eq.s32.totalorder %s5763_s28, 0  ;;  %p207_p7 = scmp.eq.s32.totalorder %s5763_s28, 1 }
  0x12   : > { %s5779_s10 = scalar_select %p32_p1, %s5681_s26, %s34_s8  }
  0x13   : > { %p5781_p5 = por %p42_p2, %p41_p0  ;;  %p5787_p6 = por %p6886_p4, %p47_p3 }
  0x14   : > { %6911 = sst [smem:[#allocation19_spill]] %s5779_s10  ;;  %p213_p8 = scmp.eq.s32.totalorder %s4758_s29, 1 }
  0x15   : > { %s6912_s11 = scalar_select %p5781_p5, 1, 0 }
  0x16   : > { %s6913_s12 = scalar_select %p5787_p6, 1, 0 }
  0x17   : > { %p4759_p9 = scmp.ge.s32.totalorder %s5685_s27, 1  ;;  %p220_p10 = scmp.lt.s32.totalorder %s5685_s27, 3 }
  0x18   : > { %p5794_p11 = por %p207_p7, %p41_p0  ;;  %p5798_p12 = por %p213_p8, %p47_p3 }
  0x19   : > { %p5802_p13 = pnand %p4759_p9, %p220_p10  ;;  %s5687_s16 = smov [#allocation8]  }
  0x1a   : > { %s6914_s13 = scalar_select %p5794_p11, 1, 0 }
  0x1b   : > { %s6915_s14 = scalar_select %p5798_p12, 1, 0 }
  0x1c   : > { %s6917_s15 = scalar_select %p5802_p13, 1, 0 }
  0x1d   : > { %6916 = sst [smem:[#allocation20_spill]] %s6915_s14  ;;  %p5265_p1 = pneg %p5802_p13 }
  0x1e   : > { %s232_s17 = sshll.u32 %s5687_s16, 4  ;;  %s6885_s19 = sand.u32 1, %s5681_s26   ;;  %s233_s17 = int_to_ptr.vmem [resolvable:$true] %s232_s17 }
  0x1f   : > { %p5810_p2 = pnand %p5265_p1, %p6886_p4  ;;  %s5819_s20 = sshll.u32 %s6885_s19, 6 }
  0x20   : > { %s6919_s3 = sld [smem:[#allocation26_spill]] }
  0x21   : > { %s6918_s18 = scalar_select %p5810_p2, 1, 0 }
  0x22   : > { %p6896_p8 = pneg %p5810_p2 }
  0x26   : > { %s5465_s23 = scalar_lea.hbm %s6919_s3, 1536 }
  0x27   : > { %p5466_p7 = scmp.ne.s32.totalorder %s6919_s3, %s5465_s23  ;;  %p5472_p1 = scmp.lt.u32.totalorder %s5465_s23, %s6919_s3 }
  0x29   : > { %p5468_p9 = pnand %p6896_p8, %p5466_p7 }
  0x2b   : > { %p5469_p10 = pneg %p5468_p9 }
  0x2d   : > { %p5474_p0 = pnand %p5472_p1, %p5469_p10 }
  0x2f   : > { %5477 = shalt.err (!%p5474_p0)
}
  0x30   : > { %s5478_s19 = scalar_lea.vmem %s233_s17, 1536  ;;  %p5486_p11 = scmp.lt.s32.totalorder %s233_s17, %s233_s17 }
  0x31   : > { %p5479_p4 = scmp.ne.s32.totalorder %s233_s17, %s5478_s19  ;;  %p5487_p6 = scmp.lt.s32.totalorder %s5478_s19, %s5478_s19 }
  0x33   : > { %p5481_p3 = pnand %p5479_p4, %p6896_p8  ;;  %p5488_p13 = por %p5487_p6, %p5486_p11 }
  0x35   : > { %p5482_p12 = pneg %p5481_p3 }
  0x37   : > { %p5489_p5 = pnand %p5488_p13, %p5482_p12 }
  0x39   : > { %5492 = shalt.err (!%p5489_p5)
}
  0x3a   : > { %s6892_s21 = smov 128   ;;  %s6894_s22 = smov 8  }
  0x3b   : > { %5268 = dma.hbm_to_vmem [thread:$0]  (!%p5810_p2), %s6919_s3, 1536, %s233_s17, [#allocation9], %s6892_s21, %s6892_s21, %s6894_s22  }
  0x3c   : > { %s5847_s19 = sshll.u32 %s5685_s27, 10  ;;  %p6920_p4 = scmp.ne.s32.totalorder %s6912_s11, 0 }
  0x3d   : > { %p6921_p5 = scmp.lt.s32.totalorder %s5685_s27, 2  ;;  %s286_s9 = sand.u32 1, %s5685_s27  }
  0x3e   : > { %s6923_s1 = sld [smem:[#allocation25_spill]]  ;;  %s290_s17 = scalar_lea.vmem [#allocation5], %s5819_s20 }
  0x3f   : > { %p5853_p6 = pnand %p6921_p5, %p6920_p4  ;;  %s297_s23 = sshll.u32 %s290_s17, 4  ;;  %s5865_s23 = int_to_ptr.vmem [resolvable:$true] %s297_s23 }
  0x40   : > { %s5867_s11 = scalar_lea.sflag [#allocation6], %s286_s9 }
  0x41   : > { %s6922_s8 = scalar_select %p5853_p6, 1, 0 }
  0x42   : > { %p5873_p12 = pneg %p5853_p6 }
  0x44   : > { %s5862_s30 = scalar_lea.hbm %s6923_s1, %s5847_s19  ;;  %s5498_s22 = scalar_lea.hbm %s6923_s1, 2048 }
  0x45   : > { %s5493_s29 = scalar_lea.hbm %s5862_s30, 1024  ;;  %p5499_p3 = scmp.lt.u32.totalorder %s5862_s30, %s6923_s1 }
  0x46   : > { %p5494_p11 = scmp.ne.s32.totalorder %s5862_s30, %s5493_s29  ;;  %p5500_p7 = scmp.lt.u32.totalorder %s5498_s22, %s5493_s29 }
  0x47   : > { %s6924_s21 = scalar_select %p5873_p12, 1, 0 }
  0x48   : > { %p5496_p13 = pnand %p5873_p12, %p5494_p11  ;;  %p5501_p9 = por %p5500_p7, %p5499_p3 }
  0x49   : > { %p5502_p10 = scmp.lt.u32.totalorder %s5493_s29, %s5862_s30 }
  0x4a   : > { %p5497_p0 = pneg %p5496_p13 }
  0x4b   : > { %p5503_p1 = por %p5502_p10, %p5501_p9 }
  0x4d   : > { %p5504_p4 = pnand %p5503_p1, %p5497_p0 }
  0x4f   : > { %5507 = shalt.err (!%p5504_p4)
}
  0x50   : > { %s5508_s9 = scalar_lea.vmem %s5865_s23, 1024  ;;  %s5690_s10 = smov [#allocation5]  }
  0x51   : > { %p5509_p5 = scmp.ne.s32.totalorder %s5865_s23, %s5508_s9  ;;  %s5513_s16 = sshll.u32 %s5690_s10, 4  ;;  %s5514_s16 = int_to_ptr.vmem [resolvable:$false] %s5513_s16 }
  0x52   : > { %s5515_s3 = scalar_lea.vmem %s5514_s16, 2048  ;;  %p5516_p8 = scmp.lt.s32.totalorder %s5865_s23, %s5514_s16 }
  0x53   : > { %p5511_p11 = pnand %p5509_p5, %p5873_p12  ;;  %p5517_p2 = scmp.lt.s32.totalorder %s5515_s3, %s5508_s9 }
  0x55   : > { %p5512_p13 = pneg %p5511_p11  ;;  %p5518_p3 = por %p5517_p2, %p5516_p8 }
  0x57   : > { %p5519_p7 = pnand %p5518_p3, %p5512_p13 }
  0x59   : > { %5522 = shalt.err (!%p5519_p7)
}
  0x5a   : > { %s6925_s22 = smov 8   ;;  %s6926_s29 = smov 128  }
  0x5b   : > { %5278 = dma.hbm_to_vmem [thread:$0]  (!%p5853_p6), %s5862_s30, 1024, %s5865_s23, %s5867_s11, %s6926_s29, %s6926_s29, %s6925_s22  }
  0x5c   : > { %s5691_s17 = smov [#allocation10]   ;;  %s5523_s9 = scalar_lea.hbm %s6881_s4, 512 }
  0x5d   : > { %s245_s1 = sshll.u32 %s5691_s17, 4  ;;  %p5524_p2 = scmp.ne.s32.totalorder %s6881_s4, %s5523_s9  ;;  %s246_s1 = int_to_ptr.vmem [resolvable:$true] %s245_s1 }
  0x5e   : > { %p6927_p8 = scmp.ne.s32.totalorder %s6918_s18, 0  ;;  %p5530_p1 = scmp.lt.u32.totalorder %s5523_s9, %s6881_s4 }
  0x60   : > { %p6928_p0 = pneg %p6927_p8 }
  0x62   : > { %p5526_p9 = pnand %p5524_p2, %p6928_p0 }
  0x64   : > { %p5527_p10 = pneg %p5526_p9 }
  0x66   : > { %p5532_p4 = pnand %p5530_p1, %p5527_p10 }
  0x68   : > { %5535 = shalt.err (!%p5532_p4)
}
  0x69   : > { %s5536_s30 = scalar_lea.vmem %s246_s1, 512  ;;  %p6929_p11 = pmov %p6928_p0 }
  0x6a   : > { %p5537_p5 = scmp.ne.s32.totalorder %s246_s1, %s5536_s30  ;;  %p5544_p7 = scmp.lt.s32.totalorder %s246_s1, %s246_s1 }
  0x6b   : > { %p5545_p6 = scmp.lt.s32.totalorder %s5536_s30, %s5536_s30 }
  0x6c   : > { %p5539_p13 = pnand %p5537_p5, %p6929_p11 }
  0x6d   : > { %p5546_p12 = por %p5545_p6, %p5544_p7 }
  0x6e   : > { %p5540_p3 = pneg %p5539_p13 }
  0x70   : > { %p5547_p0 = pnand %p5546_p12, %p5540_p3 }
  0x72   : > { %5550 = shalt.err (!%p5547_p0)
}
  0x73   : > { %5271 = dma.hbm_to_vmem [thread:$0]  (!%p6927_p8), %s6881_s4, 512, %s246_s1, [#allocation9], %s6926_s29, %s6926_s29, %s6925_s22  }
  0x74   : > { %s5927_s17 = scalar_lea.hbm %s6877_s0, %s5847_s19  ;;  %s269_s18 = scalar_lea.vmem [#allocation2], %s5819_s20 }
  0x75   : > { %s276_s10 = sshll.u32 %s269_s18, 4  ;;  %s6930_s9 = sand.u32 1, %s5681_s26   ;;  %s5930_s10 = int_to_ptr.vmem [resolvable:$true] %s276_s10 }
  0x76   : > { %s5934_s16 = scalar_lea.sflag [#allocation3], %s6930_s9  ;;  %s5551_s3 = scalar_lea.hbm %s5927_s17, 1024 }
  0x77   : > { %p5552_p6 = scmp.ne.s32.totalorder %s5927_s17, %s5551_s3  ;;  %p6931_p12 = scmp.ne.s32.totalorder %s6924_s21, 0 }
  0x78   : > { %s5556_s24 = scalar_lea.hbm %s6877_s0, 2048  ;;  %p5557_p9 = scmp.lt.u32.totalorder %s5927_s17, %s6877_s0 }
  0x79   : > { %p5554_p2 = pnand %p5552_p6, %p6931_p12  ;;  %p5558_p10 = scmp.lt.u32.totalorder %s5556_s24, %s5551_s3 }
  0x7a   : > { %p5560_p4 = scmp.lt.u32.totalorder %s5551_s3, %s5927_s17 }
  0x7b   : > { %p5555_p8 = pneg %p5554_p2  ;;  %p5559_p1 = por %p5558_p10, %p5557_p9 }
  0x7d   : > { %p5561_p5 = por %p5560_p4, %p5559_p1 }
  0x7f   : > { %p5562_p11 = pnand %p5561_p5, %p5555_p8 }
  0x81   : > { %5565 = shalt.err (!%p5562_p11)
}
  0x82   : > { %s5566_s23 = scalar_lea.vmem %s5930_s10, 1024  ;;  %s5692_s18 = smov [#allocation2]  }
  0x83   : > { %p5567_p13 = scmp.ne.s32.totalorder %s5930_s10, %s5566_s23  ;;  %s5571_s9 = sshll.u32 %s5692_s18, 4  ;;  %s5572_s9 = int_to_ptr.vmem [resolvable:$false] %s5571_s9 }
  0x84   : > { %s5573_s1 = scalar_lea.vmem %s5572_s9, 2048  ;;  %p5574_p0 = scmp.lt.s32.totalorder %s5930_s10, %s5572_s9 }
  0x85   : > { %p5569_p3 = pnand %p5567_p13, %p6931_p12  ;;  %p5575_p6 = scmp.lt.s32.totalorder %s5573_s1, %s5566_s23 }
  0x87   : > { %p5570_p7 = pneg %p5569_p3  ;;  %p5576_p2 = por %p5575_p6, %p5574_p0 }
  0x89   : > { %p5577_p9 = pnand %p5576_p2, %p5570_p7 }
  0x8b   : > { %5580 = shalt.err (!%p5577_p9)
}
  0x8c   : > { %p6932_p8 = scmp.ne.s32.totalorder %s6922_s8, 0  ;;  %s5965_s24 = scalar_lea.hbm %s6879_s2, %s5847_s19 }
  0x8d   : > { %s311_s27 = scalar_lea.vmem [#allocation7], %s5819_s20  ;;  %s5581_s23 = scalar_lea.hbm %s5965_s24, 1024 }
  0x8e   : > { %5275 = dma.hbm_to_vmem [thread:$0]  (!%p6932_p8), %s5927_s17, 1024, %s5930_s10, %s5934_s16, %s6926_s29, %s6926_s29, %s6925_s22  }
  0x8f   : > { %s318_s14 = sshll.u32 %s311_s27, 4  ;;  %p5582_p10 = scmp.ne.s32.totalorder %s5965_s24, %s5581_s23  ;;  %s5968_s14 = int_to_ptr.vmem [resolvable:$true] %s318_s14 }
  0x90   : > { %s5586_s10 = scalar_lea.hbm %s6879_s2, 2048  ;;  %p5587_p5 = scmp.lt.u32.totalorder %s5965_s24, %s6879_s2 }
  0x91   : > { %p5584_p1 = pnand %p5582_p10, %p6931_p12  ;;  %p5588_p11 = scmp.lt.u32.totalorder %s5586_s10, %s5581_s23 }
  0x92   : > { %p5590_p3 = scmp.lt.u32.totalorder %s5581_s23, %s5965_s24 }
  0x93   : > { %p5585_p4 = pneg %p5584_p1  ;;  %p5589_p13 = por %p5588_p11, %p5587_p5 }
  0x95   : > { %p5591_p7 = por %p5590_p3, %p5589_p13 }
  0x97   : > { %p5592_p0 = pnand %p5591_p7, %p5585_p4 }
  0x99   : > { %5595 = shalt.err (!%p5592_p0)
}
  0x9a   : > { %s5596_s20 = scalar_lea.vmem %s5968_s14, 1024  ;;  %s5693_s9 = smov [#allocation7]  }
  0x9b   : > { %p5597_p6 = scmp.ne.s32.totalorder %s5968_s14, %s5596_s20  ;;  %s5601_s1 = sshll.u32 %s5693_s9, 4  ;;  %s5602_s1 = int_to_ptr.vmem [resolvable:$false] %s5601_s1 }
  0x9c   : > { %s5603_s3 = scalar_lea.vmem %s5602_s1, 2048  ;;  %p5604_p10 = scmp.lt.s32.totalorder %s5968_s14, %s5602_s1 }
  0x9d   : > { %p5599_p2 = pnand %p5597_p6, %p6931_p12  ;;  %p5605_p1 = scmp.lt.s32.totalorder %s5603_s3, %s5596_s20 }
  0x9f   : > { %p5600_p9 = pneg %p5599_p2  ;;  %p5606_p5 = por %p5605_p1, %p5604_p10 }
  0xa1   : > { %p5607_p11 = pnand %p5606_p5, %p5600_p9 }
  0xa3   : > { %5610 = shalt.err (!%p5607_p11)
}
  0xa4   : > { %5281 = dma.hbm_to_vmem [thread:$0]  (!%p6932_p8), %s5965_s24, 1024, %s5968_s14, %s5867_s11, %s6926_s29, %s6926_s29, %s6925_s22  }
  0xa5   : > { %p6933_p12 = scmp.ne.s32.totalorder %s6917_s15, 0 }
  0xa7   : > { %330 = sbr.rel (%p6933_p12) target bundleno = 1623 (0x657), region = 48 }
  0xae   : > { %s5998_s21 = sand.u32 1, %s5677_s25   ;;  %p6934_p4 = scmp.ne.s32.totalorder %s6913_s12, 0 }
  0xaf   : > { %s4773_s30 = sshll.u32 %s5998_s21, 6  ;;  %s333_s27 = scalar_lea.sflag [#allocation3], %s5998_s21 }
  0xb0   : > { %s6002_s23 = scalar_lea.vmem [#allocation2], %s4773_s30 }
  0xb1   : > { %5656 = dma.done.wait (%p6934_p4), %s333_s27, 1024  }
  0xb2   : > { %5658 = vsyncadd (%p6934_p4), %s333_s27, 4294966272  ;;  %s341_s8 = sand.u32 1, %s5763_s28   ;;  %s6009_s11 = scalar_lea.vmem [#allocation5], %s4773_s30 }
  0xb3   : > { %s342_s15 = scalar_lea.sflag [#allocation6], %s341_s8 }
  0xb4   : > { %5660 = dma.done.wait (%p6934_p4), %s342_s15, 2048  }
  0xb5   : > { %5662 = vsyncadd (%p6934_p4), %s342_s15, 4294965248  ;;  %s6015_s22 = scalar_lea.vmem [#allocation7], %s4773_s30  ;;  %p6935_p8 = scmp.eq.s32.totalorder %s5763_s28, 0 }
  0xb7   : > { %5664 = dma.done.wait (%p6935_p8), [#allocation9], 2048   ;;  %p6936_p13 = pmov %p6935_p8 }
  0xb8   : > { %v406_v0 = vld [vmem:[#allocation8] sm:$0xff]  ;;  %v407_v1 = vld [vmem:[#allocation8 + $0x8] sm:$0xff]  ;;  %vm423_vm0 = vcmask 261120   ;;  %v408_v5 = vld [vmem:[#allocation8 + $0x10] sm:$0xff]  ;;  %v5694_v38 = vmov 0.0   ;;  %vm5695_vm1 = vmmov 0  }
  0xb9   : > { %5666 = vsyncadd (%p6936_p13), [#allocation9], 4294965248  ;;  %v554_v2 = vld [vmem:[#allocation8 + $0x20] sm:$0xff]  ;;  %v5215_v3 = vpack.c.bf16 %v407_v1, %v406_v0  ;;  %v555_v4 = vld [vmem:[#allocation8 + $0x28] sm:$0xff]  ;;  %vm847_vm2 = vcmask 64512   ;;  %s5696_s18 = smov 120  }
  0xba   : > { %v409_v6 = vld [vmem:[#allocation8 + $0x18] sm:$0xff]  ;;  %v5223_v7 = vpack.c.bf16 %v555_v4, %v554_v2  ;;  %v556_v9 = vld [vmem:[#allocation8 + $0x30] sm:$0xff]  ;;  %v411_v11 = vld [vmem:[%s6002_s23] sm:$0xff]  ;;  %s5697_s17 = smov 112   ;;  %s5698_s10 = smov 104   ;;  %vm4459_vm3 = vcmask 1041409  }
  0xbb   : > { %v5219_v8 = vpack.c.bf16 %v409_v6, %v408_v5  ;;  %v557_v10 = vld [vmem:[#allocation8 + $0x38] sm:$0xff]  ;;  %5216 = vmatprep.subr.bf16.mxu0 %v5215_v3  ;;  %4992 = vmatprep.mubr.msk.f32.mxu0 %vm423_vm0, %v411_v11  ;;  %v559_v13 = vld [vmem:[%s6009_s11] sm:$0xff]  ;;  %v412_v14 = vld [vmem:[%s6002_s23 + $0x8] sm:$0xff]  ;;  %vm4461_vm4 = vcmask 1042434   ;;  %vm4463_vm5 = vcmask 1043459   ;;  %vm4465_vm6 = vcmask 1044484  }
  0xbc   : > { %v5227_v12 = vpack.c.bf16 %v557_v10, %v556_v9  ;;  %5224 = vmatprep.subr.bf16.mxu1 %v5223_v7  ;;  %5218 = vmatpush3.bf16.msra.mxu0 %v5215_v3  ;;  %v701_v15 = vld [vmem:[#allocation8 + $0x40] sm:$0xff]  ;;  %v702_v16 = vld [vmem:[#allocation8 + $0x48] sm:$0xff]  ;;  %v703_v17 = vld [vmem:[#allocation8 + $0x50] sm:$0xff]  ;;  %vm4467_vm7 = vcmask 1045509   ;;  %vm4469_vm8 = vcmask 1046534   ;;  %vm2584_vm9 = vcmask 130112  }
  0xbd   : > { %5226 = vmatpush3.bf16.msra.mxu1 %v5223_v7  ;;  %5220 = vmatprep.subr.bf16.mxu0 %v5219_v8  ;;  %v560_v18 = vld [vmem:[%s6009_s11 + $0x8] sm:$0xff]  ;;  %v413_v19 = vld [vmem:[%s6002_s23 + $0x10] sm:$0xff]  ;;  %v5231_v20 = vpack.c.bf16 %v702_v16, %v701_v15  ;;  %v704_v21 = vld [vmem:[#allocation8 + $0x58] sm:$0xff]  ;;  %vm3489_vm10 = vcmask 195712   ;;  %vm4471_vm11 = vcmask 1047559   ;;  %vm4394_vm12 = vcmask 261312  }
  0xbe   : > { %5228 = vmatprep.subr.bf16.mxu1 %v5227_v12  ;;  %5012 = vmatprep.mubr.msk.f32.mxu1 %vm423_vm0, %v559_v13  ;;  %v561_v22 = vld [vmem:[%s6009_s11 + $0x10] sm:$0xff]  ;;  %v5235_v23 = vpack.c.bf16 %v704_v21, %v703_v17  ;;  %v414_v24 = vld [vmem:[%s6002_s23 + $0x18] sm:$0xff]  ;;  %v415_v25 = vld [vmem:[%s6002_s23 + $0x20] sm:$0xff]  ;;  %vm4523_vm13 = vcmask 130048   ;;  %vm4525_vm14 = vcmask 195584   ;;  %s4778_s20 = sshll.u32 %s5998_s21, 3 }
  0xbf   : > { %v562_v26 = vld [vmem:[%s6009_s11 + $0x18] sm:$0xff]  ;;  %v563_v27 = vld [vmem:[%s6009_s11 + $0x20] sm:$0xff]  ;;  %v416_v28 = vld [vmem:[%s6002_s23 + $0x28] sm:$0xff]  ;;  %s4873_s3 = sshll.u32 %s5763_s28, 7  ;;  %s402_s30 = scalar_lea.vmem [#allocation11], %s4778_s20 }
  0xc0   : > { %5222 = vmatpush3.bf16.msra.mxu0 %v5219_v8  ;;  %v417_v29 = vld [vmem:[%s6002_s23 + $0x30] sm:$0xff]  ;;  %v564_v30 = vld [vmem:[%s6009_s11 + $0x28] sm:$0xff]  ;;  %v418_v32 = vld [vmem:[%s6002_s23 + $0x38] sm:$0xff]  ;;  %s4626_s27 = sshll.u32 %s402_s30, 4  ;;  %s6832_s15 = scalar_lea.hbm %s6884_s7, %s4873_s3  ;;  %s6834_s27 = int_to_ptr.vmem [resolvable:$true] %s4626_s27 }
  0xc1   : > { %5230 = vmatpush3.bf16.msra.mxu1 %v5227_v12  ;;  %5232 = vmatprep.subr.bf16.mxu0 %v5231_v20  ;;  %v565_v31 = vld [vmem:[%s6009_s11 + $0x30] sm:$0xff]  ;;  %v566_v33 = vld [vmem:[%s6009_s11 + $0x38] sm:$0xff]  ;;  %v706_v34 = vld [vmem:[%s6015_s22] sm:$0xff]  ;;  %s4613_s11 = scalar_lea.sflag [#allocation4], %s5998_s21  ;;  %p6945_p7 = scmp.ne.s32.totalorder %s6914_s13, 0 }
  0xc2   : > { %5245 = vmatprep.subr.bf16.mxu1 %v5231_v20  ;;  %v712_v35 = vld [vmem:[%s6015_s22 + $0x30] sm:$0xff]  ;;  %v713_v36 = vld [vmem:[%s6015_s22 + $0x38] sm:$0xff]  ;;  %v707_v37 = vld [vmem:[%s6015_s22 + $0x8] sm:$0xff]  ;;  %s5701_s28 = smov [#allocation11]  }
  0xc3   : > { %4993 = vmatmul.mubr.msk.f32.vlgmr.msra.gmra.mrb[0].mxu0 %vm423_vm0, %v412_v14  ;;  %v708_v39 = vld [vmem:[%s6015_s22 + $0x10] sm:$0xff]  ;;  %v709_v40 = vld [vmem:[%s6015_s22 + $0x18] sm:$0xff]  ;;  %v710_v41 = vld [vmem:[%s6015_s22 + $0x20] sm:$0xff]  ;;  %s5615_s12 = sshll.u32 %s5701_s28, 4  ;;  %s5616_s12 = int_to_ptr.vmem [resolvable:$false] %s5615_s12 }
  0xc4   : > { %5013 = vmatmul.mubr.msk.f32.vlgmr.msra.gmra.mrb[0].mxu1 %vm423_vm0, %v560_v18  ;;  %4995 = vmatprep.mubr.msk.f32.mxu0 %vm423_vm0, %v413_v19  ;;  %v711_v42 = vld [vmem:[%s6015_s22 + $0x28] sm:$0xff]  ;;  %v6078_v43 = vld [vmem:[%s6882_s5] ss:$0 sm:$0xff]  ;;  %v6083_v44 = vld [vmem:[%s6882_s5 + $0x1] ss:$0 sm:$0xff]  ;;  %s5611_s22 = scalar_lea.vmem %s6834_s27, 128  ;;  %p5618_p2 = scmp.lt.s32.totalorder %s6834_s27, %s5616_s12 }
  0xc5   : > { %5015 = vmatprep.mubr.msk.f32.mxu1 %vm423_vm0, %v561_v22  ;;  %5247 = vmatpush3.bf16.msra.mxu1 %v5231_v20  ;;  %p5612_p3 = scmp.ne.s32.totalorder %s6834_s27, %s5611_s22  ;;  %s5617_s29 = scalar_lea.vmem %s5616_s12, 256 }
  0xc6   : > { %5246 = vmatprep.subr.bf16.mxu1 %v5235_v23  ;;  %5234 = vmatpush3.bf16.msra.mxu0 %v5231_v20  ;;  %p5619_p9 = scmp.lt.s32.totalorder %s5617_s29, %s5611_s22 }
  0xc7   : > { %4996 = vmatmul.mubr.msk.f32.gmra.mrb[2].mxu0 %vm423_vm0, %v414_v24  ;;  %5236 = vmatprep.subr.bf16.mxu0 %v5235_v23  ;;  %p5613_p0 = pnand %p5612_p3, %p6945_p7 }
  0xc8   : > { %4998 = vmatprep.mubr.msk.f32.mxu0 %vm423_vm0, %v415_v25  ;;  %5016 = vmatmul.mubr.msk.f32.gmra.mrb[2].mxu1 %vm423_vm0, %v562_v26  ;;  %p5620_p10 = por %p5619_p9, %p5618_p2 }
  0xc9   : > { %5018 = vmatprep.mubr.msk.f32.mxu1 %vm423_vm0, %v563_v27  ;;  %5248 = vmatpush3.bf16.msra.mxu1 %v5235_v23  ;;  %p5614_p6 = pneg %p5613_p0 }
  0xca   : > { %5238 = vmatpush3.bf16.msra.mxu0 %v5235_v23  ;;  %5044 = vmatprep.subr.mxu1 %v5694_v38 }
  0xcb   : > { %4999 = vmatmul.mubr.msk.f32.gmra.mrb[4].mxu0 %vm423_vm0, %v416_v28  ;;  %5064 = vmatprep.subr.mxu0 %v5694_v38  ;;  %p5621_p1 = pnand %p5620_p10, %p5614_p6 }
  0xcc   : > { %5001 = vmatprep.mubr.msk.f32.mxu0 %vm423_vm0, %v417_v29  ;;  %5019 = vmatmul.mubr.msk.f32.gmra.mrb[4].mxu1 %vm423_vm0, %v564_v30 }
  0xcd   : > { %5021 = vmatprep.mubr.msk.f32.mxu1 %vm423_vm0, %v565_v31 }
  0xcf   : > { %5002 = vmatmul.mubr.msk.f32.gmra.mrb[6].mxu0 %vm423_vm0, %v418_v32 }
  0xd0   : > { %5022 = vmatmul.mubr.msk.f32.gmra.mrb[6].mxu1 %vm423_vm0, %v566_v33  ;;  %5032 = vmatprep.mubr.msk.f32.mxu0 %vm423_vm0, %v706_v34 }
  0xd1   : > { %5041 = vmatprep.mubr.msk.f32.mxu1 %vm423_vm0, %v712_v35 }
  0xd3   : > { %5033 = vmatmul.mubr.msk.f32.vlgmr.msra.gmra.mrb[8].mxu0 %vm423_vm0, %v707_v37 }
  0xd4   : > { %5042 = vmatmul.mubr.msk.f32.vlgmr.msra.gmra.mrb[8].mxu1 %vm423_vm0, %v713_v36  ;;  %5035 = vmatprep.mubr.msk.f32.mxu0 %vm423_vm0, %v708_v39 }
  0xd5   : > { %5046 = vmatprep.mubr.msk.f32.mxu1 %vm5695_vm1, %v5694_v38 }
  0xd7   : > { %5036 = vmatmul.mubr.msk.f32.gmra.mrb[10].mxu0 %vm423_vm0, %v709_v40 }
  0xd8   : > { %5038 = vmatprep.mubr.msk.f32.mxu0 %vm423_vm0, %v710_v41 }
  0xdb   : > { %5039 = vmatmul.mubr.msk.f32.gmra.mrb[12].mxu0 %vm423_vm0, %v711_v42 }
  0xdc   : > { %5066 = vmatprep.mubr.msk.f32.mxu0 %vm5695_vm1, %v5694_v38 }
 0x196   : > { %v4994_v45 = vpop.f32.mrb[0].mxu0 }
 0x197   : > { %v520_v46 = vadd.f32 %v4994_v45, %v6078_v43  ;;  %v5014_v47 = vpop.f32.mrb[0].mxu1  ;;  %v514_v48 = vpop.f32.mrb[1].mxu0 }
 0x198   : > { %v667_v49 = vadd.f32 %v5014_v47, %v6083_v44  ;;  %v515_v50 = vadd.f32 %v6078_v43, %v514_v48  ;;  %v661_v51 = vpop.f32.mrb[1].mxu1 }
 0x199   : > { %1816 = vrot.lane.b32.xlu0 %v520_v46, %s5696_s18  ;;  %v662_v53 = vadd.f32 %v6083_v44, %v661_v51 }
 0x19a   : > { %1814 = vrot.lane.b32.xlu1 %v667_v49, %s5696_s18  ;;  %5045 = vmatpush3.xpose.msk.msra.mxu1 %vm847_vm2, %v515_v50  ;;  %v4997_v52 = vpop.f32.mrb[2].mxu0 }
 0x19b   : > { %v524_v54 = vpop.f32.mrb[3].mxu0  ;;  %5049 = vmatprep.subr.mxu1 %v5694_v38  ;;  %v5017_v55 = vpop.f32.mrb[2].mxu1  ;;  %v6118_v2 = vadd.f32 %v4997_v52, %v6078_v43 }
 0x19c   : > { %v671_v56 = vpop.f32.mrb[3].mxu1  ;;  %v6097_v57 = vadd.f32 %v6078_v43, %v524_v54  ;;  %v677_v8 = vadd.f32 %v5017_v55, %v6083_v44 }
 0x19d   : > { %1738 = vrot.lane.b32.xlu0 %v515_v50, %s5696_s18  ;;  %5047 = vmatmul.mubr.msk.f32.vlgmr.msra.gmra.mrb[10].mxu1 %vm847_vm2, %v662_v53  ;;  %v6107_v63 = vadd.f32 %v6083_v44, %v671_v56 }
 0x19e   : > { %2721 = vrot.lane.b32.xlu1 %v520_v46, %s5697_s17  ;;  %v5000_v58 = vpop.f32.mrb[4].mxu0  ;;  %5050 = vmatpush3.xpose.msk.msra.mxu1 %vm847_vm2, %v520_v46 }
 0x19f   : > { %v534_v59 = vpop.f32.mrb[5].mxu0  ;;  %5051 = vmatprep.mubr.msk.f32.mxu1 %vm5695_vm1, %v5694_v38  ;;  %v5020_v60 = vpop.f32.mrb[4].mxu1  ;;  %5054 = vmatprep.subr.mxu1 %v5694_v38  ;;  %v540_v9 = vadd.f32 %v5000_v58, %v6078_v43 }
 0x1a0   : > { %v6104_v61 = vadd.f32 %v6078_v43, %v534_v59  ;;  %v681_v62 = vpop.f32.mrb[5].mxu1  ;;  %v687_v10 = vadd.f32 %v5020_v60, %v6083_v44 }
 0x1a1   : > { %2643 = vrot.lane.b32.xlu0 %v515_v50, %s5697_s17  ;;  %5052 = vmatmul.mubr.msk.f32.vlgmr.msra.gmra.mrb[12].mxu1 %vm847_vm2, %v667_v49  ;;  %v6113_v1 = vadd.f32 %v6083_v44, %v681_v62 }
 0x1a2   : > { %2719 = vrot.lane.b32.xlu1 %v667_v49, %s5697_s17  ;;  %v5003_v0 = vpop.f32.mrb[6].mxu0  ;;  %5055 = vmatpush3.xpose.msk.msra.mxu1 %vm847_vm2, %v6097_v57 }
 0x1a3   : > { %5065 = vmatpush3.xpose.msk.msra.mxu0 %vm847_vm2, %v6104_v61  ;;  %v544_v3 = vpop.f32.mrb[7].mxu0  ;;  %5056 = vmatprep.mubr.msk.f32.mxu1 %vm5695_vm1, %v5694_v38  ;;  %v5023_v4 = vpop.f32.mrb[6].mxu1  ;;  %v550_v11 = vadd.f32 %v5003_v0, %v6078_v43 }
 0x1a4   : > { %v6125_v5 = vadd.f32 %v6078_v43, %v544_v3  ;;  %5074 = vmatprep.subr.mxu0 %v5694_v38  ;;  %5059 = vmatprep.subr.mxu1 %v5694_v38  ;;  %v691_v6 = vpop.f32.mrb[7].mxu1  ;;  %v697_v12 = vadd.f32 %v5023_v4, %v6083_v44 }
 0x1a5   : > { %2641 = vrot.lane.b32.xlu0 %v662_v53, %s5697_s17  ;;  %5057 = vmatmul.mubr.msk.f32.vlgmr.msra.gmra.mrb[14].mxu1 %vm847_vm2, %v6107_v63  ;;  %v6136_v7 = vadd.f32 %v6083_v44, %v691_v6 }
 0x1a6   : > { %3626 = vrot.lane.b32.xlu1 %v520_v46, %s5698_s10  ;;  %5067 = vmatmul.mubr.msk.f32.vlgmr.msra.gmra.mrb[14].mxu0 %vm847_vm2, %v6113_v1  ;;  %v6232_v15 = vpop.f32.mrb[8].mxu0 }
 0x1a7   : > { %5060 = vmatpush3.xpose.msk.msra.mxu1 %vm847_vm2, %v6118_v2  ;;  %5075 = vmatpush3.xpose.msk.msra.mxu0 %vm847_vm2, %v6125_v5  ;;  %v6224_v13 = vpop.f32.mrb[8].mxu1  ;;  %v6236_v16 = vpop.f32.mrb[9].mxu0 }
 0x1a8   : > { %5061 = vmatprep.mubr.msk.f32.mxu1 %vm5695_vm1, %v5694_v38  ;;  %5076 = vmatprep.mubr.msk.f32.mxu0 %vm5695_vm1, %v5694_v38  ;;  %6937 = vst [vmem:[#allocation21_spill] sm:$0xff] %v6224_v13  ;;  %v6227_v14 = vpop.f32.mrb[9].mxu1 }
 0x1a9   : > { %3548 = vrot.lane.b32.xlu0 %v515_v50, %s5698_s10  ;;  %5069 = vmatprep.subr.mxu1 %v5694_v38  ;;  %6938 = vst [vmem:[#allocation22_spill] sm:$0xff] %v6227_v14 }
 0x1aa   : > { %3624 = vrot.lane.b32.xlu1 %v667_v49, %s5698_s10  ;;  %5077 = vmatmul.mubr.msk.f32.vlgmr.msra.gmra.mrb[16].mxu0 %vm847_vm2, %v6136_v7  ;;  %v6239_v17 = vpop.f32.mrb[10].mxu0 }
 0x1ab   : > { %5062 = vmatmul.mubr.msk.f32.vlgmr.msra.gmra.mrb[16].mxu1 %vm847_vm2, %v677_v8  ;;  %5084 = vmatprep.subr.mxu0 %v5694_v38  ;;  %6939 = vst [vmem:[#allocation23_spill] sm:$0xff] %v6239_v17  ;;  %v6241_v18 = vpop.f32.mrb[11].mxu0 }
 0x1ac   : > { %5070 = vmatpush3.xpose.msk.msra.mxu1 %vm847_vm2, %v540_v9  ;;  %5071 = vmatprep.mubr.msk.f32.mxu1 %vm5695_vm1, %v5694_v38 }
 0x1ad   : > { %3546 = vrot.lane.b32.xlu0 %v662_v53, %s5698_s10  ;;  %5079 = vmatprep.subr.mxu1 %v5694_v38 }
 0x1ae   : > { %1736 = vrot.lane.b32.xlu1 %v662_v53, %s5696_s18  ;;  %5086 = vmatprep.mubr.msk.f32.mxu0 %vm5695_vm1, %v5694_v38  ;;  %v6243_v19 = vpop.f32.mrb[12].mxu0 }
 0x1af   : > { %5072 = vmatmul.mubr.msk.f32.vlgmr.msra.gmra.mrb[18].mxu1 %vm847_vm2, %v687_v10  ;;  %6940 = vst [vmem:[#allocation24_spill] sm:$0xff] %v6243_v19  ;;  %v6245_v20 = vpop.f32.mrb[13].mxu0 }
 0x1b0   : > { %5080 = vmatpush3.xpose.msk.msra.mxu1 %vm847_vm2, %v550_v11  ;;  %5081 = vmatprep.mubr.msk.f32.mxu1 %vm5695_vm1, %v5694_v38 }
 0x1b1   : > { %1894 = vrot.lane.b32.xlu0 %v6097_v57, %s5696_s18  ;;  %5089 = vmatprep.subr.mxu1 %v5694_v38 }
 0x1b2   : > { %1972 = vrot.lane.b32.xlu1 %v6118_v2, %s5696_s18 }
 0x1b3   : > { %5082 = vmatmul.mubr.msk.f32.vlgmr.msra.gmra.mrb[20].mxu1 %vm847_vm2, %v697_v12 }
 0x1b4   : > { %5091 = vmatprep.mubr.msk.f32.mxu1 %vm5695_vm1, %v5694_v38 }
 0x1b5   : > { %1892 = vrot.lane.b32.xlu0 %v6107_v63, %s5696_s18 }
 0x1b6   : > { %1970 = vrot.lane.b32.xlu1 %v677_v8, %s5696_s18 }
 0x1b9   : > { %2799 = vrot.lane.b32.xlu0 %v6097_v57, %s5697_s17 }
 0x1ba   : > { %2877 = vrot.lane.b32.xlu1 %v6118_v2, %s5697_s17 }
 0x1bd   : > { %2797 = vrot.lane.b32.xlu0 %v6107_v63, %s5697_s17 }
 0x1be   : > { %2875 = vrot.lane.b32.xlu1 %v677_v8, %s5697_s17 }
 0x1c1   : > { %2050 = vrot.lane.b32.xlu0 %v6104_v61, %s5696_s18 }
 0x1c2   : > { %2128 = vrot.lane.b32.xlu1 %v540_v9, %s5696_s18 }
 0x1c5   : > { %2048 = vrot.lane.b32.xlu0 %v6113_v1, %s5696_s18 }
 0x1c6   : > { %2126 = vrot.lane.b32.xlu1 %v687_v10, %s5696_s18 }
 0x1c9   : > { %2955 = vrot.lane.b32.xlu0 %v6104_v61, %s5697_s17 }
 0x1ca   : > { %3033 = vrot.lane.b32.xlu1 %v540_v9, %s5697_s17 }
 0x1cd   : > { %2953 = vrot.lane.b32.xlu0 %v6113_v1, %s5697_s17 }
 0x1ce   : > { %3031 = vrot.lane.b32.xlu1 %v687_v10, %s5697_s17 }
 0x1d1   : > { %2206 = vrot.lane.b32.xlu0 %v6125_v5, %s5696_s18 }
 0x1d2   : > { %2284 = vrot.lane.b32.xlu1 %v550_v11, %s5696_s18 }
 0x1d5   : > { %2204 = vrot.lane.b32.xlu0 %v6136_v7, %s5696_s18 }
 0x1d6   : > { %2282 = vrot.lane.b32.xlu1 %v697_v12, %s5696_s18 }
 0x1d9   : > { %3704 = vrot.lane.b32.xlu0 %v6097_v57, %s5698_s10 }
 0x1da   : > { %3189 = vrot.lane.b32.xlu1 %v550_v11, %s5697_s17 }
 0x1dd   : > { %3702 = vrot.lane.b32.xlu0 %v6107_v63, %s5698_s10 }
 0x1de   : > { %3187 = vrot.lane.b32.xlu1 %v697_v12, %s5697_s17 }
 0x1e1   : > { %3111 = vrot.lane.b32.xlu0 %v6125_v5, %s5697_s17 }
 0x1e2   : > { %3782 = vrot.lane.b32.xlu1 %v6118_v2, %s5698_s10 }
 0x1e5   : > { %3109 = vrot.lane.b32.xlu0 %v6136_v7, %s5697_s17 }
 0x1e6   : > { %3780 = vrot.lane.b32.xlu1 %v677_v8, %s5698_s10 }
 0x1e9   : > { %3860 = vrot.lane.b32.xlu0 %v6104_v61, %s5698_s10 }
 0x1ea   : > { %3938 = vrot.lane.b32.xlu1 %v540_v9, %s5698_s10 }
 0x1ed   : > { %3858 = vrot.lane.b32.xlu0 %v6113_v1, %s5698_s10 }
 0x1ee   : > { %3936 = vrot.lane.b32.xlu1 %v687_v10, %s5698_s10 }
 0x1f1   : > { %4016 = vrot.lane.b32.xlu0 %v6125_v5, %s5698_s10 }
 0x1f2   : > { %4094 = vrot.lane.b32.xlu1 %v550_v11, %s5698_s10 }
 0x1f5   : > { %4014 = vrot.lane.b32.xlu0 %v6136_v7, %s5698_s10 }
 0x1f6   : > { %4092 = vrot.lane.b32.xlu1 %v697_v12, %s5698_s10 }
 0x20b   : > { %v1817_v21 = vpop.permute.xlu0 %1816 }
 0x20c   : > { %v1815_v22 = vpop.permute.xlu1 %1814  ;;  %5090 = vmatpush3.xpose.msk.msra.mxu1 %vm847_vm2, %v1817_v21 }
 0x20d   : > { %5099 = vmatprep.subr.mxu1 %v5694_v38 }
 0x20f   : > { %v1739_v23 = vpop.permute.xlu0 %1738  ;;  %5092 = vmatmul.mubr.msk.f32.vlgmr.msra.gmra.mrb[22].mxu1 %vm847_vm2, %v1815_v22 }
 0x210   : > { %v2722_v24 = vpop.permute.xlu1 %2721  ;;  %5085 = vmatpush3.xpose.msk.msra.mxu0 %vm847_vm2, %v1739_v23  ;;  %5101 = vmatprep.mubr.msk.f32.mxu1 %vm5695_vm1, %v5694_v38 }
 0x211   : > { %5094 = vmatprep.subr.mxu0 %v5694_v38 }
 0x213   : > { %v2644_v25 = vpop.permute.xlu0 %2643 }
 0x214   : > { %v2720_v26 = vpop.permute.xlu1 %2719 }
 0x217   : > { %v2642_v27 = vpop.permute.xlu0 %2641 }
 0x218   : > { %v6254_v28 = vpop.permute.xlu1 %3626 }
 0x21b   : > { %v6256_v29 = vpop.permute.xlu0 %3548 }
 0x21c   : > { %v6258_v30 = vpop.permute.xlu1 %3624 }
 0x21f   : > { %v6260_v31 = vpop.permute.xlu0 %3546 }
 0x220   : > { %v1737_v32 = vpop.permute.xlu1 %1736 }
 0x221   : > { %5087 = vmatmul.mubr.msk.f32.vlgmr.msra.gmra.mrb[18].mxu0 %vm847_vm2, %v1737_v32 }
 0x222   : > { %5096 = vmatprep.mubr.msk.f32.mxu0 %vm5695_vm1, %v5694_v38 }
 0x223   : > { %v1895_v33 = vpop.permute.xlu0 %1894 }
 0x224   : > { %v1973_v34 = vpop.permute.xlu1 %1972  ;;  %5095 = vmatpush3.xpose.msk.msra.mxu0 %vm847_vm2, %v1895_v33 }
 0x225   : > { %5100 = vmatpush3.xpose.msk.msra.mxu1 %vm847_vm2, %v1973_v34  ;;  %5104 = vmatprep.subr.mxu0 %v5694_v38 }
 0x226   : > { %5109 = vmatprep.subr.mxu1 %v5694_v38 }
 0x227   : > { %v1893_v35 = vpop.permute.xlu0 %1892 }
 0x228   : > { %v1971_v36 = vpop.permute.xlu1 %1970  ;;  %5097 = vmatmul.mubr.msk.f32.vlgmr.msra.gmra.mrb[20].mxu0 %vm847_vm2, %v1893_v35 }
 0x229   : > { %5102 = vmatmul.mubr.msk.f32.vlgmr.msra.gmra.mrb[24].mxu1 %vm847_vm2, %v1971_v36  ;;  %5106 = vmatprep.mubr.msk.f32.mxu0 %vm5695_vm1, %v5694_v38 }
 0x22a   : > { %5111 = vmatprep.mubr.msk.f32.mxu1 %vm5695_vm1, %v5694_v38 }
 0x22b   : > { %v2800_v37 = vpop.permute.xlu0 %2799 }
 0x22c   : > { %v2878_v39 = vpop.permute.xlu1 %2877 }
 0x22f   : > { %v2798_v40 = vpop.permute.xlu0 %2797 }
 0x230   : > { %v2876_v41 = vpop.permute.xlu1 %2875 }
 0x233   : > { %v2051_v42 = vpop.permute.xlu0 %2050 }
 0x234   : > { %v2129_v43 = vpop.permute.xlu1 %2128  ;;  %5105 = vmatpush3.xpose.msk.msra.mxu0 %vm847_vm2, %v2051_v42 }
 0x235   : > { %5110 = vmatpush3.xpose.msk.msra.mxu1 %vm847_vm2, %v2129_v43  ;;  %5114 = vmatprep.subr.mxu0 %v5694_v38 }
 0x236   : > { %5119 = vmatprep.subr.mxu1 %v5694_v38 }
 0x237   : > { %v2049_v44 = vpop.permute.xlu0 %2048 }
 0x238   : > { %v2127_v45 = vpop.permute.xlu1 %2126  ;;  %5107 = vmatmul.mubr.msk.f32.vlgmr.msra.gmra.mrb[22].mxu0 %vm847_vm2, %v2049_v44 }
 0x239   : > { %5112 = vmatmul.mubr.msk.f32.vlgmr.msra.gmra.mrb[26].mxu1 %vm847_vm2, %v2127_v45  ;;  %5116 = vmatprep.mubr.msk.f32.mxu0 %vm5695_vm1, %v5694_v38 }
 0x23a   : > { %5121 = vmatprep.mubr.msk.f32.mxu1 %vm5695_vm1, %v5694_v38 }
 0x23b   : > { %v2956_v46 = vpop.permute.xlu0 %2955 }
 0x23c   : > { %v3034_v47 = vpop.permute.xlu1 %3033 }
 0x23f   : > { %v2954_v48 = vpop.permute.xlu0 %2953 }
 0x240   : > { %v3032_v49 = vpop.permute.xlu1 %3031 }
 0x243   : > { %v2207_v50 = vpop.permute.xlu0 %2206 }
 0x244   : > { %v2285_v51 = vpop.permute.xlu1 %2284  ;;  %5115 = vmatpush3.xpose.msk.msra.mxu0 %vm847_vm2, %v2207_v50 }
 0x245   : > { %5120 = vmatpush3.xpose.msk.msra.mxu1 %vm847_vm2, %v2285_v51  ;;  %5124 = vmatprep.subr.mxu0 %v5694_v38 }
 0x246   : > { %5129 = vmatprep.subr.mxu1 %v5694_v38 }
 0x247   : > { %v2205_v52 = vpop.permute.xlu0 %2204 }
 0x248   : > { %v2283_v53 = vpop.permute.xlu1 %2282  ;;  %5117 = vmatmul.mubr.msk.f32.vlgmr.msra.gmra.mrb[24].mxu0 %vm847_vm2, %v2205_v52 }
 0x249   : > { %5122 = vmatmul.mubr.msk.f32.vlgmr.msra.gmra.mrb[28].mxu1 %vm847_vm2, %v2283_v53  ;;  %5125 = vmatpush3.xpose.msk.msra.mxu0 %vm847_vm2, %v2644_v25 }
 0x24a   : > { %5130 = vmatpush3.xpose.msk.msra.mxu1 %vm847_vm2, %v2722_v24  ;;  %5126 = vmatprep.mubr.msk.f32.mxu0 %vm5695_vm1, %v5694_v38 }
 0x24b   : > { %5134 = vmatprep.subr.mxu0 %v5694_v38  ;;  %v3705_v54 = vpop.permute.xlu0 %3704  ;;  %5131 = vmatprep.mubr.msk.f32.mxu1 %vm5695_vm1, %v5694_v38 }
 0x24c   : > { %v3190_v55 = vpop.permute.xlu1 %3189  ;;  %5139 = vmatprep.subr.mxu1 %v5694_v38  ;;  %5127 = vmatmul.mubr.msk.f32.vlgmr.msra.gmra.mrb[26].mxu0 %vm847_vm2, %v2642_v27 }
 0x24d   : > { %5132 = vmatmul.mubr.msk.f32.vlgmr.msra.gmra.mrb[30].mxu1 %vm847_vm2, %v2720_v26  ;;  %5135 = vmatpush3.xpose.msk.msra.mxu0 %vm847_vm2, %v2800_v37 }
 0x24e   : > { %5140 = vmatpush3.xpose.msk.msra.mxu1 %vm847_vm2, %v2878_v39  ;;  %5136 = vmatprep.mubr.msk.f32.mxu0 %vm5695_vm1, %v5694_v38 }
 0x24f   : > { %5144 = vmatprep.subr.mxu0 %v5694_v38  ;;  %v3703_v56 = vpop.permute.xlu0 %3702  ;;  %5141 = vmatprep.mubr.msk.f32.mxu1 %vm5695_vm1, %v5694_v38 }
 0x250   : > { %v3188_v57 = vpop.permute.xlu1 %3187  ;;  %5149 = vmatprep.subr.mxu1 %v5694_v38  ;;  %5137 = vmatmul.mubr.msk.f32.vlgmr.msra.gmra.mrb[28].mxu0 %vm847_vm2, %v2798_v40 }
 0x251   : > { %5142 = vmatmul.mubr.msk.f32.vlgmr.msra.gmra.mrb[32].mxu1 %vm847_vm2, %v2876_v41  ;;  %5145 = vmatpush3.xpose.msk.msra.mxu0 %vm847_vm2, %v2956_v46 }
 0x252   : > { %5150 = vmatpush3.xpose.msk.msra.mxu1 %vm847_vm2, %v3034_v47  ;;  %5146 = vmatprep.mubr.msk.f32.mxu0 %vm5695_vm1, %v5694_v38 }
 0x253   : > { %5154 = vmatprep.subr.mxu0 %v5694_v38  ;;  %v3112_v58 = vpop.permute.xlu0 %3111  ;;  %5151 = vmatprep.mubr.msk.f32.mxu1 %vm5695_vm1, %v5694_v38 }
 0x254   : > { %v3783_v59 = vpop.permute.xlu1 %3782  ;;  %5159 = vmatprep.subr.mxu1 %v5694_v38  ;;  %5147 = vmatmul.mubr.msk.f32.vlgmr.msra.gmra.mrb[30].mxu0 %vm847_vm2, %v2954_v48 }
 0x255   : > { %5152 = vmatmul.mubr.msk.f32.vlgmr.msra.gmra.mrb[34].mxu1 %vm847_vm2, %v3032_v49  ;;  %5155 = vmatpush3.xpose.msk.msra.mxu0 %vm847_vm2, %v3112_v58 }
 0x256   : > { %5160 = vmatpush3.xpose.msk.msra.mxu1 %vm847_vm2, %v3190_v55  ;;  %5156 = vmatprep.mubr.msk.f32.mxu0 %vm5695_vm1, %v5694_v38 }
 0x257   : > { %5164 = vmatprep.subr.mxu0 %v5694_v38  ;;  %v3110_v60 = vpop.permute.xlu0 %3109  ;;  %5161 = vmatprep.mubr.msk.f32.mxu1 %vm5695_vm1, %v5694_v38 }
 0x258   : > { %v3781_v61 = vpop.permute.xlu1 %3780  ;;  %5169 = vmatprep.subr.mxu1 %v5694_v38  ;;  %5157 = vmatmul.mubr.msk.f32.vlgmr.msra.gmra.mrb[32].mxu0 %vm847_vm2, %v3110_v60 }
 0x259   : > { %5162 = vmatmul.mubr.msk.f32.vlgmr.msra.gmra.mrb[36].mxu1 %vm847_vm2, %v3188_v57  ;;  %5165 = vmatpush3.xpose.msk.msra.mxu0 %vm847_vm2, %v6256_v29 }
 0x25a   : > { %5170 = vmatpush3.xpose.msk.msra.mxu1 %vm847_vm2, %v6254_v28  ;;  %5166 = vmatprep.mubr.msk.f32.mxu0 %vm5695_vm1, %v5694_v38 }
 0x25b   : > { %5174 = vmatprep.subr.mxu0 %v5694_v38  ;;  %v3861_v62 = vpop.permute.xlu0 %3860  ;;  %5171 = vmatprep.mubr.msk.f32.mxu1 %vm5695_vm1, %v5694_v38 }
 0x25c   : > { %v3939_v63 = vpop.permute.xlu1 %3938  ;;  %5179 = vmatprep.subr.mxu1 %v5694_v38  ;;  %5167 = vmatmul.mubr.msk.f32.vlgmr.msra.gmra.mrb[34].mxu0 %vm847_vm2, %v6260_v31 }
 0x25d   : > { %5172 = vmatmul.mubr.msk.f32.vlgmr.msra.gmra.mrb[38].mxu1 %vm847_vm2, %v6258_v30  ;;  %5175 = vmatpush3.xpose.msk.msra.mxu0 %vm847_vm2, %v3705_v54 }
 0x25e   : > { %5180 = vmatpush3.xpose.msk.msra.mxu1 %vm847_vm2, %v3783_v59  ;;  %5176 = vmatprep.mubr.msk.f32.mxu0 %vm5695_vm1, %v5694_v38 }
 0x25f   : > { %5184 = vmatprep.subr.mxu0 %v5694_v38  ;;  %v3859_v0 = vpop.permute.xlu0 %3858  ;;  %5181 = vmatprep.mubr.msk.f32.mxu1 %vm5695_vm1, %v5694_v38 }
 0x260   : > { %v3937_v1 = vpop.permute.xlu1 %3936  ;;  %5189 = vmatprep.subr.mxu1 %v5694_v38  ;;  %5177 = vmatmul.mubr.msk.f32.vlgmr.msra.gmra.mrb[36].mxu0 %vm847_vm2, %v3703_v56 }
 0x261   : > { %5182 = vmatmul.mubr.msk.f32.vlgmr.msra.gmra.mrb[40].mxu1 %vm847_vm2, %v3781_v61  ;;  %5185 = vmatpush3.xpose.msk.msra.mxu0 %vm847_vm2, %v3861_v62 }
 0x262   : > { %5190 = vmatpush3.xpose.msk.msra.mxu1 %vm847_vm2, %v3939_v63  ;;  %5186 = vmatprep.mubr.msk.f32.mxu0 %vm5695_vm1, %v5694_v38 }
 0x263   : > { %5194 = vmatprep.subr.mxu0 %v5694_v38  ;;  %v4017_v2 = vpop.permute.xlu0 %4016  ;;  %5191 = vmatprep.mubr.msk.f32.mxu1 %vm5695_vm1, %v5694_v38 }
 0x264   : > { %v4095_v3 = vpop.permute.xlu1 %4094  ;;  %5199 = vmatprep.subr.mxu1 %v5694_v38  ;;  %5187 = vmatmul.mubr.msk.f32.vlgmr.msra.gmra.mrb[38].mxu0 %vm847_vm2, %v3859_v0 }
 0x265   : > { %5192 = vmatmul.mubr.msk.f32.vlgmr.msra.gmra.mrb[42].mxu1 %vm847_vm2, %v3937_v1  ;;  %5195 = vmatpush3.xpose.msk.msra.mxu0 %vm847_vm2, %v4017_v2 }
 0x266   : > { %5200 = vmatpush3.xpose.msk.msra.mxu1 %vm847_vm2, %v4095_v3  ;;  %5196 = vmatprep.mubr.msk.f32.mxu0 %vm5695_vm1, %v5694_v38 }
 0x267   : > { %v4015_v4 = vpop.permute.xlu0 %4014  ;;  %5201 = vmatprep.mubr.msk.f32.mxu1 %vm5695_vm1, %v5694_v38 }
 0x268   : > { %v4093_v5 = vpop.permute.xlu1 %4092  ;;  %5197 = vmatmul.mubr.msk.f32.vlgmr.msra.gmra.mrb[40].mxu0 %vm847_vm2, %v4015_v4 }
 0x269   : > { %5202 = vmatmul.mubr.msk.f32.vlgmr.msra.gmra.mrb[44].mxu1 %vm847_vm2, %v4093_v5  ;;  %5212 = vmatprep.mubr.msk.f32.mxu0 %vm5695_vm1, %v5694_v38 }
 0x270   : > { %v920_v6 = vpop.f32.mrb[10].mxu1 }
 0x271   : > { %v1456_v7 = vsel %vm847_vm2, %v920_v6, -inf  ;;  %v5048_v8 = vpop.f32.mrb[11].mxu1 }
 0x272   : > { %v1457_v9 = vrot.slane %v1456_v7, 4 }
 0x274   : > { %v1458_v10 = vmax.f32 %v1456_v7, %v1457_v9  ;;  %v996_v11 = vpop.f32.mrb[12].mxu1 }
 0x275   : > { %v1463_v12 = vsel %vm847_vm2, %v996_v11, -inf  ;;  %v5053_v21 = vpop.f32.mrb[13].mxu1 }
 0x276   : > { %v1459_v22 = vrot.slane %v1458_v10, 2  ;;  %v1464_v23 = vrot.slane %v1463_v12, 4 }
 0x278   : > { %v1460_v24 = vmax.f32 %v1458_v10, %v1459_v22  ;;  %v1465_v25 = vmax.f32 %v1463_v12, %v1464_v23  ;;  %v1072_v26 = vpop.f32.mrb[14].mxu1 }
 0x279   : > { %v1470_v27 = vsel %vm847_vm2, %v1072_v26, -inf  ;;  %v1224_v28 = vpop.f32.mrb[14].mxu0  ;;  %v5058_v29 = vpop.f32.mrb[15].mxu1 }
 0x27a   : > { %v1461_v38 = vrot.slane %v1460_v24, 1  ;;  %v1466_v30 = vrot.slane %v1465_v25, 2  ;;  %v1471_v31 = vrot.slane %v1470_v27, 4  ;;  %v1484_v32 = vsel %vm847_vm2, %v1224_v28, -inf  ;;  %v5068_v33 = vpop.f32.mrb[15].mxu0 }
 0x27b   : > { %v1485_v34 = vrot.slane %v1484_v32, 4 }
 0x27c   : > { %v1462_v35 = vmax.f32 %v1460_v24, %v1461_v38  ;;  %v1467_v36 = vmax.f32 %v1465_v25, %v1466_v30  ;;  %v1472_v37 = vmax.f32 %v1470_v27, %v1471_v31 }
 0x27d   : > { %v1486_v39 = vmax.f32 %v1484_v32, %v1485_v34  ;;  %v1376_v40 = vpop.f32.mrb[16].mxu0 }
 0x27e   : > { %v1512_v41 = vsub.f32 %v920_v6, %v1462_v35  ;;  %v1468_v42 = vrot.slane %v1467_v36, 1  ;;  %v1473_v43 = vrot.slane %v1472_v37, 2  ;;  %v1148_v44 = vpop.f32.mrb[16].mxu1  ;;  %v1498_v45 = vsel %vm847_vm2, %v1376_v40, -inf  ;;  %v5078_v46 = vpop.f32.mrb[17].mxu0 }
 0x27f   : > { %v1487_v47 = vrot.slane %v1486_v39, 2  ;;  %v1477_v48 = vsel %vm847_vm2, %v1148_v44, -inf  ;;  %v1499_v49 = vrot.slane %v1498_v45, 4  ;;  %v5063_v50 = vpop.f32.mrb[17].mxu1 }
 0x280   : > { %v1520_v51 = vmul.f32 1.442695, %v1512_v41  ;;  %v1469_v52 = vmax.f32 %v1467_v36, %v1468_v42  ;;  %v1474_v53 = vmax.f32 %v1472_v37, %v1473_v43  ;;  %v1478_v54 = vrot.slane %v1477_v48, 4 }
 0x281   : > { %v1488_v55 = vmax.f32 %v1486_v39, %v1487_v47  ;;  %v1500_v56 = vmax.f32 %v1498_v45, %v1499_v49 }
 0x282   : > { %5337 = vpow2.f32 %v1520_v51  ;;  %v1513_v57 = vsub.f32 %v996_v11, %v1469_v52  ;;  %v1475_v58 = vrot.slane %v1474_v53, 1  ;;  %v1479_v59 = vmax.f32 %v1477_v48, %v1478_v54  ;;  %v1300_v60 = vpop.f32.mrb[18].mxu1 }
 0x283   : > { %v1489_v61 = vrot.slane %v1488_v55, 1  ;;  %v1501_v62 = vrot.slane %v1500_v56, 2  ;;  %v1491_v63 = vsel %vm847_vm2, %v1300_v60, -inf  ;;  %v5073_v0 = vpop.f32.mrb[19].mxu1 }
 0x284   : > { %v1522_v1 = vmul.f32 1.442695, %v1513_v57  ;;  %v1476_v2 = vmax.f32 %v1474_v53, %v1475_v58  ;;  %v1480_v3 = vrot.slane %v1479_v59, 2  ;;  %v1492_v4 = vrot.slane %v1491_v63, 4 }
 0x285   : > { %v1490_v5 = vmax.f32 %v1488_v55, %v1489_v61  ;;  %v1502_v6 = vmax.f32 %v1500_v56, %v1501_v62 }
 0x286   : > { %5339 = vpow2.f32 %v1522_v1  ;;  %v1514_v7 = vsub.f32 %v1072_v26, %v1476_v2  ;;  %v1481_v8 = vmax.f32 %v1479_v59, %v1480_v3  ;;  %v1493_v9 = vmax.f32 %v1491_v63, %v1492_v4  ;;  %v1452_v10 = vpop.f32.mrb[20].mxu1 }
 0x287   : > { %v1516_v11 = vsub.f32 %v1224_v28, %v1490_v5  ;;  %v1503_v12 = vrot.slane %v1502_v6, 1  ;;  %v1505_v21 = vsel %vm847_vm2, %v1452_v10, -inf  ;;  %v5083_v22 = vpop.f32.mrb[21].mxu1 }
 0x288   : > { %v1524_v23 = vmul.f32 1.442695, %v1514_v7  ;;  %v1482_v24 = vrot.slane %v1481_v8, 1  ;;  %v1494_v25 = vrot.slane %v1493_v9, 2  ;;  %v1506_v27 = vrot.slane %v1505_v21, 4 }
 0x289   : > { %v1528_v29 = vmul.f32 1.442695, %v1516_v11  ;;  %v1504_v38 = vmax.f32 %v1502_v6, %v1503_v12 }
 0x28a   : > { %5341 = vpow2.f32 %v1524_v23  ;;  %v1483_v30 = vmax.f32 %v1481_v8, %v1482_v24  ;;  %v1495_v31 = vmax.f32 %v1493_v9, %v1494_v25  ;;  %v1507_v32 = vmax.f32 %v1505_v21, %v1506_v27 }
 0x28b   : > { %5343 = vpow2.f32 %v1528_v29  ;;  %v1518_v26 = vsub.f32 %v1376_v40, %v1504_v38 }
 0x28c   : > { %v6383_v33 = vpop.eup %5337  ;;  %v1515_v34 = vsub.f32 %v1148_v44, %v1483_v30  ;;  %v1496_v28 = vrot.slane %v1495_v31, 1  ;;  %v1508_v35 = vrot.slane %v1507_v32, 2 }
 0x28d   : > { %v1536_v36 = vsel %vm847_vm2, %v6383_v33, 0.0  ;;  %v1532_v37 = vmul.f32 1.442695, %v1518_v26 }
 0x28e   : > { %v1537_v39 = vrot.slane %v1536_v36, 4  ;;  %v1526_v41 = vmul.f32 1.442695, %v1515_v34  ;;  %v1497_v42 = vmax.f32 %v1495_v31, %v1496_v28  ;;  %v1509_v43 = vmax.f32 %v1507_v32, %v1508_v35 }
 0x28f   : > { %5345 = vpow2.f32 %v1532_v37 }
 0x290   : > { %v6387_v45 = vpop.eup %5339  ;;  %v1538_v46 = vadd.f32 %v1537_v39, %v1536_v36  ;;  %5347 = vpow2.f32 %v1526_v41  ;;  %v1517_v47 = vsub.f32 %v1300_v60, %v1497_v42  ;;  %v1510_v40 = vrot.slane %v1509_v43, 1 }
 0x291   : > { %v1543_v44 = vsel %vm847_vm2, %v6387_v45, 0.0 }
 0x292   : > { %v1539_v48 = vrot.slane %v1538_v46, 2  ;;  %v1544_v49 = vrot.slane %v1543_v44, 4  ;;  %v1530_v50 = vmul.f32 1.442695, %v1517_v47  ;;  %v1511_v51 = vmax.f32 %v1509_v43, %v1510_v40 }
 0x294   : > { %v6391_v52 = vpop.eup %5341  ;;  %v1545_v53 = vadd.f32 %v1544_v49, %v1543_v44  ;;  %5349 = vpow2.f32 %v1530_v50  ;;  %v1519_v54 = vsub.f32 %v1452_v10, %v1511_v51  ;;  %v1540_v55 = vadd.f32 %v1539_v48, %v1538_v46 }
 0x295   : > { %v6393_v56 = vpop.eup %5343  ;;  %v1550_v57 = vsel %vm847_vm2, %v6391_v52, 0.0 }
 0x296   : > { %v1546_v58 = vrot.slane %v1545_v53, 2  ;;  %v1551_v59 = vrot.slane %v1550_v57, 4  ;;  %v1564_v60 = vsel %vm847_vm2, %v6393_v56, 0.0  ;;  %v1534_v61 = vmul.f32 1.442695, %v1519_v54 }
 0x297   : > { %v1565_v62 = vrot.slane %v1564_v60, 4  ;;  %v1541_v63 = vrot.slane %v1540_v55, 1 }
 0x298   : > { %v1552_v0 = vadd.f32 %v1551_v59, %v1550_v57  ;;  %5351 = vpow2.f32 %v1534_v61  ;;  %v1547_v1 = vadd.f32 %v1546_v58, %v1545_v53 }
 0x299   : > { %v6399_v2 = vpop.eup %5345  ;;  %v1566_v3 = vadd.f32 %v1565_v62, %v1564_v60  ;;  %v1542_v4 = vadd.f32 %v1541_v63, %v1540_v55 }
 0x29a   : > { %v6401_v5 = vpop.eup %5347  ;;  %v1553_v6 = vrot.slane %v1552_v0, 2  ;;  %v1578_v7 = vsel %vm847_vm2, %v6399_v2, 0.0  ;;  %v1548_v8 = vrot.slane %v1547_v1, 1 }
 0x29b   : > { %v1567_v9 = vrot.slane %v1566_v3, 2  ;;  %v1557_v10 = vsel %vm847_vm2, %v6401_v5, 0.0  ;;  %v1579_v11 = vrot.slane %v1578_v7, 4  ;;  %5353 = vrcp.f32 %v1542_v4 }
 0x29c   : > { %v1558_v12 = vrot.slane %v1557_v10, 4  ;;  %v1549_v21 = vadd.f32 %v1548_v8, %v1547_v1  ;;  %v1554_v22 = vadd.f32 %v1553_v6, %v1552_v0 }
 0x29d   : > { %v1580_v23 = vadd.f32 %v1579_v11, %v1578_v7  ;;  %v1568_v24 = vadd.f32 %v1567_v9, %v1566_v3 }
 0x29e   : > { %v5350_v25 = vpop.eup %5349  ;;  %v1559_v27 = vadd.f32 %v1558_v12, %v1557_v10  ;;  %5355 = vrcp.f32 %v1549_v21  ;;  %v1555_v29 = vrot.slane %v1554_v22, 1 }
 0x29f   : > { %v1581_v38 = vrot.slane %v1580_v23, 2  ;;  %v1571_v30 = vsel %vm847_vm2, %v5350_v25, 0.0  ;;  %v1569_v31 = vrot.slane %v1568_v24, 1 }
 0x2a0   : > { %v1560_v32 = vrot.slane %v1559_v27, 2  ;;  %v1572_v26 = vrot.slane %v1571_v30, 4  ;;  %v1556_v34 = vadd.f32 %v1555_v29, %v1554_v22 }
 0x2a1   : > { %v1570_v28 = vadd.f32 %v1569_v31, %v1568_v24  ;;  %v1582_v35 = vadd.f32 %v1581_v38, %v1580_v23 }
 0x2a2   : > { %v5352_v36 = vpop.eup %5351  ;;  %v1573_v37 = vadd.f32 %v1572_v26, %v1571_v30  ;;  %5357 = vrcp.f32 %v1556_v34  ;;  %v1561_v39 = vadd.f32 %v1560_v32, %v1559_v27 }
 0x2a3   : > { %v1585_v41 = vsel %vm847_vm2, %v5352_v36, 0.0  ;;  %5359 = vrcp.f32 %v1570_v28  ;;  %v1583_v42 = vrot.slane %v1582_v35, 1 }
 0x2a4   : > { %v1574_v43 = vrot.slane %v1573_v37, 2  ;;  %v1586_v46 = vrot.slane %v1585_v41, 4  ;;  %v1562_v47 = vrot.slane %v1561_v39, 1 }
 0x2a5   : > { %v5354_v40 = vpop.eup %5353  ;;  %v1584_v44 = vadd.f32 %v1583_v42, %v1582_v35 }
 0x2a6   : > { %v1587_v48 = vadd.f32 %v1586_v46, %v1585_v41  ;;  %v1600_v49 = vmul.f32 %v5354_v40, %v6383_v33  ;;  %v1563_v50 = vadd.f32 %v1562_v47, %v1561_v39  ;;  %v1575_v51 = vadd.f32 %v1574_v43, %v1573_v37 }
 0x2a7   : > { %5361 = vrcp.f32 %v1584_v44 }
 0x2a8   : > { %v5356_v53 = vpop.eup %5355  ;;  %v1588_v54 = vrot.slane %v1587_v48, 2  ;;  %v1601_v55 = vsel %vm847_vm2, %v1600_v49, 0.0  ;;  %5363 = vrcp.f32 %v1563_v50  ;;  %v1576_v57 = vrot.slane %v1575_v51, 1 }
 0x2a9   : > { %1602 = vadd.xlane.f32.xlu0 %v1601_v55  ;;  %v1604_v58 = vmul.f32 %v5356_v53, %v6387_v45 }
 0x2aa   : > { %v1577_v59 = vadd.f32 %v1576_v57, %v1575_v51  ;;  %v1589_v60 = vadd.f32 %v1588_v54, %v1587_v48 }
 0x2ab   : > { %v1605_v61 = vsel %vm847_vm2, %v1604_v58, 0.0 }
 0x2ac   : > { %v5358_v62 = vpop.eup %5357  ;;  %1606 = vadd.xlane.f32.xlu1 %v1605_v61  ;;  %5365 = vrcp.f32 %v1577_v59  ;;  %v1590_v33 = vrot.slane %v1589_v60, 1 }
 0x2ad   : > { %v5360_v63 = vpop.eup %5359  ;;  %v1608_v0 = vmul.f32 %v5358_v62, %v6391_v52 }
 0x2ae   : > { %v1616_v1 = vmul.f32 %v5360_v63, %v6393_v56  ;;  %v1591_v3 = vadd.f32 %v1590_v33, %v1589_v60 }
 0x2af   : > { %v1609_v4 = vsel %vm847_vm2, %v1608_v0, 0.0 }
 0x2b0   : > { %v1617_v6 = vsel %vm847_vm2, %v1616_v1, 0.0  ;;  %1610 = vadd.xlane.f32.xlu1 %v1609_v4  ;;  %5367 = vrcp.f32 %v1591_v3 }
 0x2b1   : > { %v5362_v45 = vpop.eup %5361  ;;  %1618 = vadd.xlane.f32.xlu0 %v1617_v6 }
 0x2b2   : > { %v5364_v7 = vpop.eup %5363  ;;  %v1624_v8 = vmul.f32 %v5362_v45, %v6399_v2 }
 0x2b3   : > { %v1612_v9 = vmul.f32 %v5364_v7, %v6401_v5 }
 0x2b4   : > { %v1625_v10 = vsel %vm847_vm2, %v1624_v8, 0.0 }
 0x2b5   : > { %1626 = vadd.xlane.f32.xlu0 %v1625_v10  ;;  %v1613_v52 = vsel %vm847_vm2, %v1612_v9, 0.0  ;;  %v5699_v10 = vmov 0  }
 0x2b6   : > { %v5366_v56 = vpop.eup %5365  ;;  %1614 = vadd.xlane.f32.xlu1 %v1613_v52  ;;  %5336 = vset.pattern.permute.xlu0 %v5699_v10 }
 0x2b7   : > { %v1620_v11 = vmul.f32 %v5366_v56, %v5350_v25  ;;  %5335 = vset.pattern.permute.xlu1 %v5699_v10 }
 0x2b9   : > { %v1621_v12 = vsel %vm847_vm2, %v1620_v11, 0.0 }
 0x2ba   : > { %v5368_v21 = vpop.eup %5367  ;;  %1622 = vadd.xlane.f32.xlu0 %v1621_v12 }
 0x2bb   : > { %v1628_v22 = vmul.f32 %v5368_v21, %v5352_v36 }
 0x2bd   : > { %v1629_v23 = vsel %vm847_vm2, %v1628_v22, 0.0 }
 0x2be   : > { %1630 = vadd.xlane.f32.xlu0 %v1629_v23 }
 0x2e2   : > { %v1888_v24 = vpop.f32.mrb[22].mxu1 }
 0x2e3   : > { %v2367_v2 = vsel %vm847_vm2, %v1888_v24, -inf  ;;  %v5093_v5 = vpop.f32.mrb[23].mxu1 }
 0x2e4   : > { %v2368_v27 = vrot.slane %v2367_v2, 4 }
 0x2e6   : > { %v2369_v29 = vmax.f32 %v2367_v2, %v2368_v27 }
 0x2e8   : > { %v2370_v38 = vrot.slane %v2369_v29, 2 }
 0x2ea   : > { %v2371_v30 = vmax.f32 %v2369_v29, %v2370_v38 }
 0x2ec   : > { %v2372_v31 = vrot.slane %v2371_v30, 1 }
 0x2ee   : > { %v2373_v32 = vmax.f32 %v2371_v30, %v2372_v31 }
 0x2f0   : > { %v2417_v26 = vsub.f32 %v1888_v24, %v2373_v32 }
 0x2f2   : > { %v2426_v25 = vmul.f32 1.442695, %v2417_v26 }
 0x2f4   : > { %5369 = vpow2.f32 %v2426_v25  ;;  %v1810_v34 = vpop.f32.mrb[18].mxu0 }
 0x2f5   : > { %v2360_v28 = vsel %vm847_vm2, %v1810_v34, -inf  ;;  %v5088_v35 = vpop.f32.mrb[19].mxu0 }
 0x2f6   : > { %v2361_v36 = vrot.slane %v2360_v28, 4 }
 0x2f8   : > { %v2362_v37 = vmax.f32 %v2360_v28, %v2361_v36 }
 0x2fa   : > { %v2363_v39 = vrot.slane %v2362_v37, 2 }
 0x2fb   : > { %v1966_v41 = vpop.f32.mrb[20].mxu0 }
 0x2fc   : > { %v2364_v42 = vmax.f32 %v2362_v37, %v2363_v39  ;;  %v2374_v43 = vsel %vm847_vm2, %v1966_v41, -inf  ;;  %v2044_v46 = vpop.f32.mrb[24].mxu1  ;;  %v5098_v47 = vpop.f32.mrb[21].mxu0 }
 0x2fd   : > { %v2375_v40 = vrot.slane %v2374_v43, 4  ;;  %v2381_v44 = vsel %vm847_vm2, %v2044_v46, -inf  ;;  %v5103_v48 = vpop.f32.mrb[25].mxu1 }
 0x2fe   : > { %v5370_v49 = vpop.eup %5369  ;;  %v2365_v50 = vrot.slane %v2364_v42, 1  ;;  %v2382_v51 = vrot.slane %v2381_v44, 4 }
 0x2ff   : > { %v2447_v53 = vsel %vm847_vm2, %v5370_v49, 0.0  ;;  %v2376_v54 = vmax.f32 %v2374_v43, %v2375_v40 }
 0x300   : > { %v2448_v55 = vrot.slane %v2447_v53, 4  ;;  %v2366_v57 = vmax.f32 %v2364_v42, %v2365_v50  ;;  %v2383_v58 = vmax.f32 %v2381_v44, %v2382_v51 }
 0x301   : > { %v2377_v59 = vrot.slane %v2376_v54, 2 }
 0x302   : > { %v2449_v60 = vadd.f32 %v2448_v55, %v2447_v53  ;;  %v2416_v61 = vsub.f32 %v1810_v34, %v2366_v57  ;;  %v2384_v62 = vrot.slane %v2383_v58, 2 }
 0x303   : > { %v2378_v33 = vmax.f32 %v2376_v54, %v2377_v59 }
 0x304   : > { %v2450_v63 = vrot.slane %v2449_v60, 2  ;;  %v2424_v0 = vmul.f32 1.442695, %v2416_v61  ;;  %v2385_v1 = vmax.f32 %v2383_v58, %v2384_v62 }
 0x305   : > { %v2379_v3 = vrot.slane %v2378_v33, 1 }
 0x306   : > { %5371 = vpow2.f32 %v2424_v0  ;;  %v2386_v4 = vrot.slane %v2385_v1, 1  ;;  %v2451_v6 = vadd.f32 %v2450_v63, %v2449_v60 }
 0x307   : > { %v2380_v45 = vmax.f32 %v2378_v33, %v2379_v3 }
 0x308   : > { %v2387_v7 = vmax.f32 %v2385_v1, %v2386_v4  ;;  %v2452_v8 = vrot.slane %v2451_v6, 1 }
 0x309   : > { %v2418_v9 = vsub.f32 %v1966_v41, %v2380_v45 }
 0x30a   : > { %v2419_v52 = vsub.f32 %v2044_v46, %v2387_v7  ;;  %v2453_v56 = vadd.f32 %v2452_v8, %v2451_v6 }
 0x30b   : > { %v2428_v11 = vmul.f32 1.442695, %v2418_v9  ;;  %v6428_v12 = vpop.f32.mrb[22].mxu0 }
 0x30c   : > { %v2430_v21 = vmul.f32 1.442695, %v2419_v52  ;;  %v6430_v22 = vpop.f32.mrb[26].mxu1  ;;  %v5108_v23 = vpop.f32.mrb[23].mxu0  ;;  %5373 = vrcp.f32 %v2453_v56  ;;  %v2388_v2 = vsel %vm847_vm2, %v6428_v12, -inf }
 0x30d   : > { %5375 = vpow2.f32 %v2428_v11  ;;  %v5113_v24 = vpop.f32.mrb[27].mxu1  ;;  %v2395_v5 = vsel %vm847_vm2, %v6430_v22, -inf  ;;  %v2389_v38 = vrot.slane %v2388_v2, 4 }
 0x30e   : > { %5377 = vpow2.f32 %v2430_v21  ;;  %v2396_v31 = vrot.slane %v2395_v5, 4 }
 0x30f   : > { %v2390_v26 = vmax.f32 %v2388_v2, %v2389_v38 }
 0x310   : > { %v6436_v27 = vpop.eup %5371  ;;  %v2397_v28 = vmax.f32 %v2395_v5, %v2396_v31 }
 0x311   : > { %v2440_v29 = vsel %vm847_vm2, %v6436_v27, 0.0  ;;  %v2391_v43 = vrot.slane %v2390_v26, 2 }
 0x312   : > { %v2441_v30 = vrot.slane %v2440_v29, 4  ;;  %v2398_v47 = vrot.slane %v2397_v28, 2 }
 0x313   : > { %v2392_v54 = vmax.f32 %v2390_v26, %v2391_v43 }
 0x314   : > { %v2442_v32 = vadd.f32 %v2441_v30, %v2440_v29  ;;  %v2399_v59 = vmax.f32 %v2397_v28, %v2398_v47 }
 0x315   : > { %v2393_v4 = vrot.slane %v2392_v54, 1 }
 0x316   : > { %v5374_v25 = vpop.eup %5373  ;;  %v2443_v34 = vrot.slane %v2442_v32, 2  ;;  %v2400_v8 = vrot.slane %v2399_v59, 1 }
 0x317   : > { %v6440_v35 = vpop.eup %5375  ;;  %v2508_v36 = vmul.f32 %v5374_v25, %v5370_v49  ;;  %v2394_v5 = vmax.f32 %v2392_v54, %v2393_v4 }
 0x318   : > { %v6442_v37 = vpop.eup %5377  ;;  %v2454_v39 = vsel %vm847_vm2, %v6440_v35, 0.0  ;;  %v2444_v41 = vadd.f32 %v2443_v34, %v2442_v32  ;;  %v2401_v32 = vmax.f32 %v2399_v59, %v2400_v8 }
 0x319   : > { %v2461_v42 = vsel %vm847_vm2, %v6442_v37, 0.0  ;;  %v2509_v46 = vsel %vm847_vm2, %v2508_v36, 0.0  ;;  %v2455_v40 = vrot.slane %v2454_v39, 4 }
 0x31a   : > { %2510 = vadd.xlane.f32.xlu0 %v2509_v46  ;;  %v2462_v48 = vrot.slane %v2461_v42, 4  ;;  %v2445_v53 = vrot.slane %v2444_v41, 1 }
 0x31b   : > { %v6449_v44 = vpop.f32.mrb[24].mxu0  ;;  %v2456_v61 = vadd.f32 %v2455_v40, %v2454_v39 }
 0x31c   : > { %v2402_v49 = vsel %vm847_vm2, %v6449_v44, -inf  ;;  %v6453_v50 = vpop.f32.mrb[28].mxu1  ;;  %v5118_v51 = vpop.f32.mrb[25].mxu0  ;;  %v2463_v33 = vadd.f32 %v2462_v48, %v2461_v42  ;;  %v2446_v3 = vadd.f32 %v2445_v53, %v2444_v41 }
 0x31d   : > { %v2403_v55 = vrot.slane %v2402_v49, 4  ;;  %v2409_v57 = vsel %vm847_vm2, %v6453_v50, -inf  ;;  %v5123_v58 = vpop.f32.mrb[29].mxu1  ;;  %v2457_v52 = vrot.slane %v2456_v61, 2  ;;  %v2421_v51 = vsub.f32 %v6430_v22, %v2401_v32 }
 0x31e   : > { %v2410_v60 = vrot.slane %v2409_v57, 4  ;;  %v2464_v21 = vrot.slane %v2463_v33, 2  ;;  %5379 = vrcp.f32 %v2446_v3 }
 0x31f   : > { %v6457_v62 = vpop.f32.mrb[26].mxu0  ;;  %v2404_v6 = vmax.f32 %v2402_v49, %v2403_v55  ;;  %v2458_v39 = vadd.f32 %v2457_v52, %v2456_v61  ;;  %v2420_v49 = vsub.f32 %v6428_v12, %v2394_v5  ;;  %v2434_v12 = vmul.f32 1.442695, %v2421_v51 }
 0x320   : > { %v3265_v63 = vsel %vm847_vm2, %v6457_v62, -inf  ;;  %v6461_v0 = vpop.f32.mrb[30].mxu1  ;;  %v5128_v1 = vpop.f32.mrb[27].mxu0  ;;  %v2411_v9 = vmax.f32 %v2409_v57, %v2410_v60  ;;  %v2465_v46 = vadd.f32 %v2464_v21, %v2463_v33 }
 0x321   : > { %v3272_v45 = vsel %vm847_vm2, %v6461_v0, -inf  ;;  %v5133_v7 = vpop.f32.mrb[31].mxu1  ;;  %v3266_v10 = vrot.slane %v3265_v63, 4  ;;  %v2405_v29 = vrot.slane %v2404_v6, 2  ;;  %v2459_v58 = vrot.slane %v2458_v39, 1 }
 0x322   : > { %v3273_v56 = vrot.slane %v3272_v45, 4  ;;  %v2412_v26 = vrot.slane %v2411_v9, 2 }
 0x323   : > { %v6465_v11 = vpop.f32.mrb[28].mxu0  ;;  %v3267_v25 = vmax.f32 %v3265_v63, %v3266_v10  ;;  %v2406_v47 = vmax.f32 %v2404_v6, %v2405_v29  ;;  %v2466_v63 = vrot.slane %v2465_v46, 1  ;;  %v6483_v6 = vmul.f32 1.442695, %v2420_v49 }
 0x324   : > { %v3279_v23 = vsel %vm847_vm2, %v6465_v11, -inf  ;;  %v6469_v24 = vpop.f32.mrb[32].mxu1  ;;  %v5138_v2 = vpop.f32.mrb[29].mxu0  ;;  %v3274_v28 = vmax.f32 %v3272_v45, %v3273_v56  ;;  %v2413_v53 = vmax.f32 %v2411_v9, %v2412_v26  ;;  %v2460_v52 = vadd.f32 %v2459_v58, %v2458_v39 }
 0x325   : > { %v3280_v38 = vrot.slane %v3279_v23, 4  ;;  %v3286_v30 = vsel %vm847_vm2, %v6469_v24, -inf  ;;  %v5143_v31 = vpop.f32.mrb[33].mxu1  ;;  %v3268_v54 = vrot.slane %v3267_v25, 2  ;;  %v2407_v1 = vrot.slane %v2406_v47, 1 }
 0x326   : > { %v3287_v34 = vrot.slane %v3286_v30, 4  ;;  %v3275_v55 = vrot.slane %v3274_v28, 2  ;;  %v2414_v45 = vrot.slane %v2413_v53, 1  ;;  %v2467_v29 = vadd.f32 %v2466_v63, %v2465_v46 }
 0x327   : > { %v6473_v36 = vpop.f32.mrb[30].mxu0  ;;  %v3281_v41 = vmax.f32 %v3279_v23, %v3280_v38  ;;  %v3269_v22 = vmax.f32 %v3267_v25, %v3268_v54  ;;  %v2408_v38 = vmax.f32 %v2406_v47, %v2407_v1 }
 0x328   : > { %v6475_v42 = vpop.f32.mrb[34].mxu1  ;;  %v5148_v43 = vpop.f32.mrb[31].mxu0  ;;  %v3288_v40 = vmax.f32 %v3286_v30, %v3287_v34  ;;  %v3276_v7 = vmax.f32 %v3274_v28, %v3275_v55  ;;  %v3293_v8 = vsel %vm847_vm2, %v6473_v36, -inf  ;;  %v2415_v25 = vmax.f32 %v2413_v53, %v2414_v45 }
 0x329   : > { %v5153_v48 = vpop.f32.mrb[35].mxu1  ;;  %v3282_v59 = vrot.slane %v3281_v41, 2  ;;  %v5380_v4 = vpop.eup %5379  ;;  %v3300_v9 = vsel %vm847_vm2, %v6475_v42, -inf  ;;  %v3294_v21 = vrot.slane %v3293_v8, 4  ;;  %v3270_v34 = vrot.slane %v3269_v22, 1 }
 0x32a   : > { %v3289_v33 = vrot.slane %v3288_v40, 2  ;;  %v3301_v23 = vrot.slane %v3300_v9, 4  ;;  %v2504_v32 = vmul.f32 %v5380_v4, %v6436_v27  ;;  %v3277_v39 = vrot.slane %v3276_v7, 1 }
 0x32b   : > { %v6479_v57 = vpop.f32.mrb[32].mxu0  ;;  %v3283_v56 = vmax.f32 %v3281_v41, %v3282_v59  ;;  %v3295_v28 = vmax.f32 %v3293_v8, %v3294_v21  ;;  %5381 = vrcp.f32 %v2467_v29  ;;  %v2422_v63 = vsub.f32 %v6449_v44, %v2408_v38 }
 0x32c   : > { %v6481_v60 = vpop.f32.mrb[36].mxu1  ;;  %v5158_v61 = vpop.f32.mrb[33].mxu0  ;;  %v3290_v30 = vmax.f32 %v3288_v40, %v3289_v33  ;;  %v3307_v31 = vsel %vm847_vm2, %v6479_v57, -inf  ;;  %v3302_v43 = vmax.f32 %v3300_v9, %v3301_v23  ;;  %v2505_v48 = vsel %vm847_vm2, %v2504_v32, 0.0 }
 0x32d   : > { %v5163_v3 = vpop.f32.mrb[37].mxu1  ;;  %v3308_v41 = vrot.slane %v3307_v31, 4  ;;  %v3314_v49 = vsel %vm847_vm2, %v6481_v60, -inf  ;;  %v3284_v47 = vrot.slane %v3283_v56, 1  ;;  %v3296_v40 = vrot.slane %v3295_v28, 2  ;;  %2506 = vadd.xlane.f32.xlu0 %v2505_v48 }
 0x32e   : > { %v3303_v51 = vrot.slane %v3302_v43, 2  ;;  %v3315_v54 = vrot.slane %v3314_v49, 4  ;;  %v3291_v53 = vrot.slane %v3290_v30, 1  ;;  %v3271_v1 = vmax.f32 %v3269_v22, %v3270_v34 }
 0x32f   : > { %v6489_v10 = vpop.f32.mrb[34].mxu0  ;;  %v3309_v55 = vmax.f32 %v3307_v31, %v3308_v41  ;;  %v3278_v4 = vmax.f32 %v3276_v7, %v3277_v39  ;;  %v3297_v45 = vmax.f32 %v3295_v28, %v3296_v40  ;;  %v2423_v23 = vsub.f32 %v6453_v50, %v2415_v25 }
 0x330   : > { %v6491_v2 = vpop.f32.mrb[38].mxu1  ;;  %v5168_v5 = vpop.f32.mrb[35].mxu0  ;;  %v4170_v58 = vsel %vm847_vm2, %v6489_v10, -inf  ;;  %v3304_v33 = vmax.f32 %v3302_v43, %v3303_v51  ;;  %v3316_v3 = vmax.f32 %v3314_v49, %v3315_v54  ;;  %5383 = vpow2.f32 %v2434_v12 }
 0x331   : > { %v5173_v26 = vpop.f32.mrb[39].mxu1  ;;  %v3310_v8 = vrot.slane %v3309_v55, 2  ;;  %v4171_v9 = vrot.slane %v4170_v58, 4  ;;  %v3285_v5 = vmax.f32 %v3283_v56, %v3284_v47  ;;  %v3292_v41 = vmax.f32 %v3290_v30, %v3291_v53 }
 0x332   : > { %v3305_v31 = vrot.slane %v3304_v33, 1  ;;  %v3317_v32 = vrot.slane %v3316_v3, 2  ;;  %v2436_v34 = vmul.f32 1.442695, %v2422_v63  ;;  %v3321_v7 = vsub.f32 %v6457_v62, %v3271_v1 }
 0x333   : > { %v6499_v46 = vpop.f32.mrb[36].mxu0  ;;  %v3311_v44 = vmax.f32 %v3309_v55, %v3310_v8  ;;  %v4172_v22 = vmax.f32 %v4170_v58, %v4171_v9  ;;  %5385 = vrcp.f32 %v2460_v52  ;;  %v3322_v28 = vsub.f32 %v6461_v0, %v3278_v4 }
 0x334   : > { %v6501_v27 = vpop.f32.mrb[40].mxu1  ;;  %v5178_v59 = vpop.f32.mrb[37].mxu0  ;;  %v3298_v43 = vrot.slane %v3297_v45, 1  ;;  %v3318_v39 = vmax.f32 %v3316_v3, %v3317_v32  ;;  %v2438_v25 = vmul.f32 1.442695, %v2423_v23  ;;  %v3323_v48 = vsub.f32 %v6465_v11, %v3285_v5 }
 0x335   : > { %v5183_v61 = vpop.f32.mrb[41].mxu1  ;;  %v4173_v50 = vrot.slane %v4172_v22, 2  ;;  %v3306_v49 = vmax.f32 %v3304_v33, %v3305_v31  ;;  %5387 = vpow2.f32 %v6483_v6  ;;  %v3324_v47 = vsub.f32 %v6469_v24, %v3292_v41  ;;  %v5382_v40 = vpop.eup %5381 }
 0x336   : > { %v3312_v62 = vrot.slane %v3311_v44, 1  ;;  %5389 = vpow2.f32 %v2436_v34  ;;  %v3329_v0 = vmul.f32 1.442695, %v3321_v7  ;;  %v3331_v51 = vmul.f32 1.442695, %v3322_v28 }
 0x337   : > { %v6506_v21 = vpop.f32.mrb[38].mxu0  ;;  %v3299_v54 = vmax.f32 %v3297_v45, %v3298_v43  ;;  %v3319_v53 = vrot.slane %v3318_v39, 1  ;;  %v4174_v55 = vmax.f32 %v4172_v22, %v4173_v50  ;;  %5391 = vpow2.f32 %v2438_v25 }
 0x338   : > { %v6509_v26 = vpop.f32.mrb[42].mxu1  ;;  %v5188_v29 = vpop.f32.mrb[39].mxu0  ;;  %v3333_v58 = vmul.f32 1.442695, %v3323_v48  ;;  %v3326_v11 = vsub.f32 %v6475_v42, %v3306_v49  ;;  %v3335_v59 = vmul.f32 1.442695, %v3324_v47  ;;  %v3313_v61 = vmax.f32 %v3311_v44, %v3312_v62 }
 0x339   : > { %v5193_v38 = vpop.f32.mrb[43].mxu1  ;;  %5393 = vpow2.f32 %v3329_v0  ;;  %v3320_v63 = vmax.f32 %v3318_v39, %v3319_v53  ;;  %v3325_v24 = vsub.f32 %v6473_v36, %v3299_v54  ;;  %v4175_v1 = vrot.slane %v4174_v55, 1 }
 0x33a   : > { %v6521_v6 = vpop.eup %5383  ;;  %5395 = vpow2.f32 %v3331_v51  ;;  %v3339_v3 = vmul.f32 1.442695, %v3326_v11  ;;  %v2516_v4 = vmul.f32 %v5382_v40, %v6442_v37  ;;  %v3327_v45 = vsub.f32 %v6479_v57, %v3313_v61 }
 0x33b   : > { %v6513_v56 = vpop.f32.mrb[40].mxu0  ;;  %5397 = vpow2.f32 %v3333_v58  ;;  %v3328_v42 = vsub.f32 %v6481_v60, %v3320_v63  ;;  %v2475_v23 = vsel %vm847_vm2, %v6521_v6, 0.0  ;;  %v3337_v5 = vmul.f32 1.442695, %v3325_v24 }
 0x33c   : > { %v6516_v12 = vpop.f32.mrb[44].mxu1  ;;  %v5198_v30 = vpop.f32.mrb[41].mxu0  ;;  %5399 = vpow2.f32 %v3335_v59  ;;  %v2517_v8 = vsel %vm847_vm2, %v2516_v4, 0.0  ;;  %v4176_v36 = vmax.f32 %v4174_v55, %v4175_v1  ;;  %v3341_v32 = vmul.f32 1.442695, %v3327_v45 }
 0x33d   : > { %v5203_v52 = vpop.f32.mrb[45].mxu1  ;;  %v5386_v33 = vpop.eup %5385  ;;  %2518 = vadd.xlane.f32.xlu0 %v2517_v8  ;;  %5401 = vpow2.f32 %v3339_v3  ;;  %v2476_v60 = vrot.slane %v2475_v23, 4  ;;  %v3343_v41 = vmul.f32 1.442695, %v3328_v42 }
 0x33e   : > { %v2512_v37 = vmul.f32 %v5386_v33, %v6440_v35  ;;  %5403 = vpow2.f32 %v3337_v5  ;;  %v4226_v22 = vsub.f32 %v6489_v10, %v4176_v36  ;;  %v4177_v10 = vsel %vm847_vm2, %v6491_v2, -inf }
 0x33f   : > { %v6528_v9 = vpop.eup %5387  ;;  %5405 = vpow2.f32 %v3341_v32  ;;  %v2477_v39 = vadd.f32 %v2476_v60, %v2475_v23  ;;  %v4178_v52 = vrot.slane %v4177_v10, 4 }
 0x340   : > { %v6532_v31 = vpop.eup %5389  ;;  %v2468_v57 = vsel %vm847_vm2, %v6528_v9, 0.0  ;;  %v2513_v44 = vsel %vm847_vm2, %v2512_v37, 0.0  ;;  %5407 = vpow2.f32 %v3343_v41  ;;  %v4234_v48 = vmul.f32 1.442695, %v4226_v22 }
 0x341   : > { %v6535_v29 = vpop.eup %5391  ;;  %2514 = vadd.xlane.f32.xlu0 %v2513_v44  ;;  %v2469_v7 = vrot.slane %v2468_v57, 4  ;;  %v2482_v35 = vsel %vm847_vm2, %v6532_v31, 0.0  ;;  %v2478_v40 = vrot.slane %v2477_v39, 2  ;;  %v4179_v1 = vmax.f32 %v4177_v10, %v4178_v52 }
 0x342   : > { %v2489_v28 = vsel %vm847_vm2, %v6535_v29, 0.0  ;;  %v2483_v49 = vrot.slane %v2482_v35, 4  ;;  %5409 = vpow2.f32 %v4234_v48  ;;  %v4191_v37 = vsel %vm847_vm2, %v6501_v27, -inf }
 0x343   : > { %v6541_v38 = vpop.eup %5393  ;;  %v2490_v30 = vrot.slane %v2489_v28, 4  ;;  %v2470_v62 = vadd.f32 %v2469_v7, %v2468_v57  ;;  %v2479_v4 = vadd.f32 %v2478_v40, %v2477_v39  ;;  %v4180_v41 = vrot.slane %v4179_v1, 2 }
 0x344   : > { %v6543_v34 = vpop.eup %5395  ;;  %v3345_v25 = vsel %vm847_vm2, %v6541_v38, 0.0  ;;  %v2484_v58 = vadd.f32 %v2483_v49, %v2482_v35 }
 0x345   : > { %v6549_v43 = vpop.eup %5397  ;;  %v3352_v47 = vsel %vm847_vm2, %v6543_v34, 0.0  ;;  %v3346_v51 = vrot.slane %v3345_v25, 4  ;;  %v2491_v11 = vadd.f32 %v2490_v30, %v2489_v28  ;;  %v2471_v33 = vrot.slane %v2470_v62, 2 }
 0x346   : > { %v6553_v50 = vpop.eup %5399  ;;  %v3359_v54 = vsel %vm847_vm2, %v6549_v43, 0.0  ;;  %v3353_v55 = vrot.slane %v3352_v47, 4  ;;  %v2485_v32 = vrot.slane %v2484_v58, 2  ;;  %v2480_v7 = vrot.slane %v2479_v4, 1 }
 0x347   : > { %v6559_v0 = vpop.eup %5401  ;;  %v3366_v53 = vsel %vm847_vm2, %v6553_v50, 0.0  ;;  %v3360_v61 = vrot.slane %v3359_v54, 4  ;;  %v3347_v3 = vadd.f32 %v3346_v51, %v3345_v25  ;;  %v2492_v23 = vrot.slane %v2491_v11, 2 }
 0x348   : > { %v6565_v59 = vpop.eup %5403  ;;  %v3367_v63 = vrot.slane %v3366_v53, 4  ;;  %v3380_v24 = vsel %vm847_vm2, %v6559_v0, 0.0  ;;  %v3354_v42 = vadd.f32 %v3353_v55, %v3352_v47  ;;  %v2472_v35 = vadd.f32 %v2471_v33, %v2470_v62 }
 0x349   : > { %v6569_v45 = vpop.eup %5405  ;;  %v3373_v5 = vsel %vm847_vm2, %v6565_v59, 0.0  ;;  %v3381_v36 = vrot.slane %v3380_v24, 4  ;;  %v3361_v57 = vadd.f32 %v3360_v61, %v3359_v54  ;;  %v3348_v44 = vrot.slane %v3347_v3, 2 }
 0x34a   : > { %v6571_v8 = vpop.eup %5407  ;;  %v3368_v60 = vadd.f32 %v3367_v63, %v3366_v53  ;;  %v3387_v22 = vsel %vm847_vm2, %v6569_v45, 0.0  ;;  %v3355_v28 = vrot.slane %v3354_v42, 2  ;;  %v3374_v39 = vrot.slane %v3373_v5, 4 }
 0x34b   : > { %v3394_v10 = vsel %vm847_vm2, %v6571_v8, 0.0  ;;  %v4192_v25 = vrot.slane %v4191_v37, 4  ;;  %v3382_v48 = vadd.f32 %v3381_v36, %v3380_v24  ;;  %v2481_v49 = vadd.f32 %v2480_v7, %v2479_v4 }
 0x34c   : > { %v2473_v30 = vrot.slane %v2472_v35, 1  ;;  %v2493_v47 = vadd.f32 %v2492_v23, %v2491_v11  ;;  %v6581_v52 = vpop.eup %5409  ;;  %v3362_v40 = vrot.slane %v3361_v57, 2  ;;  %v3369_v51 = vrot.slane %v3368_v60, 2 }
 0x34d   : > { %v3388_v54 = vrot.slane %v3387_v22, 4  ;;  %v2486_v53 = vadd.f32 %v2485_v32, %v2484_v58  ;;  %v3395_v55 = vrot.slane %v3394_v10, 4  ;;  %5411 = vrcp.f32 %v2481_v49 }
 0x34e   : > { %v2474_v61 = vadd.f32 %v2473_v30, %v2472_v35  ;;  %v2494_v62 = vrot.slane %v2493_v47, 1  ;;  %v3375_v63 = vadd.f32 %v3374_v39, %v3373_v5  ;;  %v4193_v33 = vmax.f32 %v4191_v37, %v4192_v25 }
 0x34f   : > { %v2487_v13 = vrot.slane %v2486_v53, 1  ;;  %v3356_v19 = vadd.f32 %v3355_v28, %v3354_v42  ;;  %v3383_v14 = vrot.slane %v3382_v48, 2  ;;  %v4250_v24 = vsel %vm847_vm2, %v6581_v52, 0.0 }
 0x350   : > { %v2495_v4 = vadd.f32 %v2494_v62, %v2493_v47  ;;  %v3349_v11 = vadd.f32 %v3348_v44, %v3347_v3  ;;  %v3389_v23 = vadd.f32 %v3388_v54, %v3387_v22  ;;  %5413 = vrcp.f32 %v2474_v61 }
 0x351   : > { %v2488_v36 = vadd.f32 %v2487_v13, %v2486_v53  ;;  %v3357_v7 = vrot.slane %v3356_v19, 1  ;;  %v3396_v17 = vadd.f32 %v3395_v55, %v3394_v10  ;;  %v4219_v58 = vsel %vm847_vm2, %v6516_v12, -inf }
 0x352   : > { %5415 = vrcp.f32 %v2495_v4  ;;  %v3350_v32 = vrot.slane %v3349_v11, 1  ;;  %v3376_v5 = vrot.slane %v3375_v63, 2  ;;  %v4251_v37 = vrot.slane %v4250_v24, 4 }
 0x353   : > { %v4181_v35 = vmax.f32 %v4179_v1, %v4180_v41  ;;  %v3358_v42 = vadd.f32 %v3357_v7, %v3356_v19  ;;  %v4194_v28 = vrot.slane %v4193_v33, 2  ;;  %v3370_v25 = vadd.f32 %v3369_v51, %v3368_v60 }
 0x354   : > { %v3351_v39 = vadd.f32 %v3350_v32, %v3349_v11  ;;  %v3363_v49 = vadd.f32 %v3362_v40, %v3361_v57  ;;  %v3390_v30 = vrot.slane %v3389_v23, 2  ;;  %v4220_v3 = vrot.slane %v4219_v58, 4 }
 0x355   : > { %5417 = vrcp.f32 %v2488_v36  ;;  %v3384_v44 = vadd.f32 %v3383_v14, %v3382_v48  ;;  %v3397_v13 = vrot.slane %v3396_v17, 2  ;;  %v3371_v22 = vrot.slane %v3370_v25, 1 }
 0x356   : > { %5419 = vrcp.f32 %v3358_v42  ;;  %v3364_v10 = vrot.slane %v3363_v49, 1  ;;  %v4252_v47 = vadd.f32 %v4251_v37, %v4250_v24  ;;  %v3377_v53 = vadd.f32 %v3376_v5, %v3375_v63 }
 0x357   : > { %v3385_v54 = vrot.slane %v3384_v44, 1  ;;  %v5412_v55 = vpop.eup %5411  ;;  %v4182_v61 = vrot.slane %v4181_v35, 1  ;;  %v4195_v62 = vmax.f32 %v4193_v33, %v4194_v28  ;;  %5421 = vrcp.f32 %v3351_v39 }
 0x358   : > { %v3372_v19 = vadd.f32 %v3371_v22, %v3370_v25  ;;  %v2524_v1 = vmul.f32 %v5412_v55, %v6521_v6  ;;  %v3365_v60 = vadd.f32 %v3364_v10, %v3363_v49  ;;  %v3378_v41 = vrot.slane %v3377_v53, 1 }
 0x359   : > { %v3386_v57 = vadd.f32 %v3385_v54, %v3384_v44  ;;  %v4221_v40 = vmax.f32 %v4219_v58, %v4220_v3  ;;  %v3398_v14 = vadd.f32 %v3397_v13, %v3396_v17  ;;  %v3391_v48 = vadd.f32 %v3390_v30, %v3389_v23 }
 0x35a   : > { %5423 = vrcp.f32 %v3372_v19  ;;  %v5414_v51 = vpop.eup %5413  ;;  %v4253_v4 = vrot.slane %v4252_v47, 2  ;;  %v2525_v24 = vsel %vm847_vm2, %v2524_v1, 0.0  ;;  %v4183_v63 = vmax.f32 %v4181_v35, %v4182_v61 }
 0x35b   : > { %2526 = vadd.xlane.f32.xlu1 %v2525_v24  ;;  %v2520_v33 = vmul.f32 %v5414_v51, %v6528_v9  ;;  %5425 = vrcp.f32 %v3386_v57  ;;  %v3379_v36 = vadd.f32 %v3378_v41, %v3377_v53  ;;  %v4196_v7 = vrot.slane %v4195_v62, 1 }
 0x35c   : > { %v5416_v11 = vpop.eup %5415  ;;  %5427 = vrcp.f32 %v3365_v60  ;;  %v3399_v32 = vrot.slane %v3398_v14, 1  ;;  %v4222_v58 = vrot.slane %v4221_v40, 2  ;;  %v3392_v17 = vrot.slane %v3391_v48, 1 }
 0x35d   : > { %v2532_v6 = vmul.f32 %v5416_v11, %v6535_v29  ;;  %5429 = vrcp.f32 %v3379_v36  ;;  %v2521_v5 = vsel %vm847_vm2, %v2520_v33, 0.0  ;;  %v4254_v42 = vadd.f32 %v4253_v4, %v4252_v47 }
 0x35e   : > { %v3400_v37 = vadd.f32 %v3399_v32, %v3398_v14  ;;  %v4227_v35 = vsub.f32 %v6491_v2, %v4183_v63  ;;  %v4197_v9 = vmax.f32 %v4195_v62, %v4196_v7  ;;  %v4223_v49 = vmax.f32 %v4221_v40, %v4222_v58 }
 0x35f   : > { %v5418_v23 = vpop.eup %5417  ;;  %2522 = vadd.xlane.f32.xlu1 %v2521_v5  ;;  %v2533_v39 = vsel %vm847_vm2, %v2532_v6, 0.0  ;;  %v3393_v30 = vadd.f32 %v3392_v17, %v3391_v48  ;;  %v4255_v3 = vrot.slane %v4254_v42, 1 }
 0x360   : > { %v5420_v28 = vpop.eup %5419  ;;  %5431 = vrcp.f32 %v3400_v37  ;;  %v2528_v44 = vmul.f32 %v5418_v23, %v6532_v31  ;;  %v4236_v10 = vmul.f32 1.442695, %v4227_v35  ;;  %v4229_v54 = vsub.f32 %v6501_v27, %v4197_v9 }
 0x361   : > { %v3413_v25 = vmul.f32 %v5420_v28, %v6543_v34  ;;  %v5422_v29 = vpop.eup %5421  ;;  %v4224_v53 = vrot.slane %v4223_v49, 1  ;;  %5433 = vrcp.f32 %v3393_v30  ;;  %v4256_v34 = vadd.f32 %v4255_v3, %v4254_v42 }
 0x362   : > { %v2529_v61 = vsel %vm847_vm2, %v2528_v44, 0.0  ;;  %v3409_v62 = vmul.f32 %v5422_v29, %v6541_v38  ;;  %5435 = vpow2.f32 %v4236_v10  ;;  %v4240_v60 = vmul.f32 1.442695, %v4229_v54  ;;  %v1607_v54 = vpop.xlane.xlu1 %1606 }
 0x363   : > { %v3414_v13 = vsel %vm847_vm2, %v3413_v25, 0.0  ;;  %2534 = vadd.xlane.f32.xlu1 %v2533_v39  ;;  %5437 = vrcp.f32 %v4256_v34  ;;  %v4225_v27 = vmax.f32 %v4223_v49, %v4224_v53  ;;  %v4205_v25 = vsel %vm847_vm2, %v6509_v26, -inf }
 0x364   : > { %v5424_v22 = vpop.eup %5423  ;;  %3415 = vadd.xlane.f32.xlu0 %v3414_v13  ;;  %v3410_v57 = vsel %vm847_vm2, %v3409_v62, 0.0  ;;  %5439 = vpow2.f32 %v4240_v60  ;;  %v4206_v44 = vrot.slane %v4205_v25, 4 }
 0x365   : > { %v3421_v2 = vmul.f32 %v5424_v22, %v6553_v50  ;;  %v5426_v47 = vpop.eup %5425 }
 0x366   : > { %v5428_v55 = vpop.eup %5427  ;;  %v3429_v19 = vmul.f32 %v5426_v47, %v6559_v0  ;;  %v4233_v0 = vsub.f32 %v6516_v12, %v4225_v27  ;;  %v4207_v47 = vmax.f32 %v4205_v25, %v4206_v44 }
 0x367   : > { %v3422_v31 = vsel %vm847_vm2, %v3421_v2, 0.0  ;;  %v5430_v1 = vpop.eup %5429  ;;  %2530 = vadd.xlane.f32.xlu1 %v2529_v61  ;;  %v3417_v41 = vmul.f32 %v5428_v55, %v6549_v43 }
 0x368   : > { %3423 = vadd.xlane.f32.xlu0 %v3422_v31  ;;  %v3430_v50 = vsel %vm847_vm2, %v3429_v19, 0.0  ;;  %v3425_v40 = vmul.f32 %v5430_v1, %v6565_v59  ;;  %v4248_v11 = vmul.f32 1.442695, %v4233_v0  ;;  %v4208_v61 = vrot.slane %v4207_v47, 2 }
 0x369   : > { %v3418_v14 = vsel %vm847_vm2, %v3417_v41, 0.0 }
 0x36a   : > { %v5432_v38 = vpop.eup %5431  ;;  %v3426_v48 = vsel %vm847_vm2, %v3425_v40, 0.0  ;;  %5441 = vpow2.f32 %v4248_v11  ;;  %v4209_v19 = vmax.f32 %v4207_v47, %v4208_v61 }
 0x36b   : > { %3411 = vadd.xlane.f32.xlu1 %v3410_v57  ;;  %v3437_v51 = vmul.f32 %v5432_v38, %v6571_v8  ;;  %v5434_v4 = vpop.eup %5433 }
 0x36c   : > { %3431 = vadd.xlane.f32.xlu0 %v3430_v50  ;;  %v5436_v24 = vpop.eup %5435  ;;  %v3433_v59 = vmul.f32 %v5434_v4, %v6569_v45  ;;  %v1603_v45 = vpop.xlane.xlu0 %1602  ;;  %v4210_v60 = vrot.slane %v4209_v19, 1 }
 0x36d   : > { %v3438_v43 = vsel %vm847_vm2, %v3437_v51, 0.0  ;;  %v5438_v63 = vpop.eup %5437  ;;  %v4257_v7 = vsel %vm847_vm2, %v5436_v24, 0.0 }
 0x36e   : > { %v3434_v12 = vsel %vm847_vm2, %v3433_v59, 0.0  ;;  %v4314_v33 = vmul.f32 %v5438_v63, %v6581_v52  ;;  %v5440_v36 = vpop.eup %5439  ;;  %v4258_v8 = vrot.slane %v4257_v7, 4  ;;  %v4184_v52 = vsel %vm847_vm2, %v6499_v46, -inf }
 0x36f   : > { %3419 = vadd.xlane.f32.xlu1 %v3418_v14  ;;  %v4271_v32 = vsel %vm847_vm2, %v5440_v36, 0.0  ;;  %v4185_v39 = vrot.slane %v4184_v52, 4  ;;  %v4211_v41 = vmax.f32 %v4209_v19, %v4210_v60 }
 0x370   : > { %3427 = vadd.xlane.f32.xlu0 %v3426_v48  ;;  %v4315_v6 = vsel %vm847_vm2, %v4314_v33, 0.0  ;;  %v4259_v58 = vadd.f32 %v4258_v8, %v4257_v7  ;;  %v4272_v17 = vrot.slane %v4271_v32, 4 }
 0x371   : > { %v4186_v3 = vmax.f32 %v4184_v52, %v4185_v39  ;;  %v4231_v14 = vsub.f32 %v6509_v26, %v4211_v41 }
 0x372   : > { %v4260_v5 = vrot.slane %v4259_v58, 2  ;;  %v4273_v37 = vadd.f32 %v4272_v17, %v4271_v32  ;;  %v4198_v17 = vsel %vm847_vm2, %v6506_v21, -inf }
 0x373   : > { %v4187_v2 = vrot.slane %v4186_v3, 2  ;;  %v4244_v4 = vmul.f32 1.442695, %v4231_v14 }
 0x374   : > { %3439 = vadd.xlane.f32.xlu0 %v3438_v43  ;;  %v5442_v23 = vpop.eup %5441  ;;  %v4274_v28 = vrot.slane %v4273_v37, 2  ;;  %v4261_v9 = vadd.f32 %v4260_v5, %v4259_v58  ;;  %v4199_v5 = vrot.slane %v4198_v17, 4 }
 0x375   : > { %v4299_v42 = vsel %vm847_vm2, %v5442_v23, 0.0  ;;  %v4188_v55 = vmax.f32 %v4186_v3, %v4187_v2 }
 0x376   : > { %v4300_v35 = vrot.slane %v4299_v42, 4  ;;  %v4262_v49 = vrot.slane %v4261_v9, 1  ;;  %v4275_v30 = vadd.f32 %v4274_v28, %v4273_v37  ;;  %v4200_v52 = vmax.f32 %v4198_v17, %v4199_v5 }
 0x377   : > { %v4189_v31 = vrot.slane %v4188_v55, 1 }
 0x378   : > { %3435 = vadd.xlane.f32.xlu0 %v3434_v12  ;;  %v4301_v29 = vadd.f32 %v4300_v35, %v4299_v42  ;;  %v4263_v22 = vadd.f32 %v4262_v49, %v4261_v9  ;;  %v4276_v10 = vrot.slane %v4275_v30, 1  ;;  %v4201_v9 = vrot.slane %v4200_v52, 2 }
 0x379   : > { %v4190_v50 = vmax.f32 %v4188_v55, %v4189_v31 }
 0x37a   : > { %v4302_v13 = vrot.slane %v4301_v29, 2  ;;  %5443 = vrcp.f32 %v4263_v22  ;;  %v4277_v53 = vadd.f32 %v4276_v10, %v4275_v30 }
 0x37b   : > { %v4228_v57 = vsub.f32 %v6499_v46, %v4190_v50 }
 0x37c   : > { %4316 = vadd.xlane.f32.xlu0 %v4315_v6  ;;  %v4303_v34 = vadd.f32 %v4302_v13, %v4301_v29  ;;  %5445 = vrcp.f32 %v4277_v53  ;;  %v1619_v6 = vpop.xlane.xlu0 %1618  ;;  %v4202_v29 = vmax.f32 %v4200_v52, %v4201_v9 }
 0x37d   : > { %v4238_v0 = vmul.f32 1.442695, %v4228_v57 }
 0x37e   : > { %v4304_v62 = vrot.slane %v4303_v34, 1  ;;  %v4203_v49 = vrot.slane %v4202_v29, 1 }
 0x380   : > { %1634 = vperm.xlu1 %5335, %v1603_v45   ;;  %v4305_v1 = vadd.f32 %v4304_v62, %v4303_v34  ;;  %v1627_v39 = vpop.xlane.xlu0 %1626  ;;  %v4204_v3 = vmax.f32 %v4202_v29, %v4203_v49 }
 0x382   : > { %5447 = vrcp.f32 %v4305_v1  ;;  %v4230_v22 = vsub.f32 %v6506_v21, %v4204_v3 }
 0x383   : > { %5449 = vpow2.f32 %v4238_v0  ;;  %v4212_v0 = vsel %vm847_vm2, %v6513_v56, -inf }
 0x384   : > { %v5444_v27 = vpop.eup %5443  ;;  %5451 = vpow2.f32 %v4244_v4  ;;  %v6632_v30 = vpop.xlane.xlu0 %1622  ;;  %v4213_v4 = vrot.slane %v4212_v0, 4 }
 0x385   : > { %v4318_v40 = vmul.f32 %v5444_v27, %v5436_v24 }
 0x386   : > { %v5446_v38 = vpop.eup %5445 }
 0x387   : > { %v4319_v48 = vsel %vm847_vm2, %v4318_v40, 0.0  ;;  %v4326_v51 = vmul.f32 %v5446_v38, %v5440_v36  ;;  %v1611_v36 = vpop.xlane.xlu1 %1610 }
 0x388   : > { %v6634_v13 = vpop.xlane.xlu0 %1630 }
 0x389   : > { %v4327_v11 = vsel %vm847_vm2, %v4326_v51, 0.0 }
 0x38b   : > { %v1615_v61 = vpop.xlane.xlu1 %1614 }
 0x38c   : > { %v5448_v43 = vpop.eup %5447 }
 0x38d   : > { %v4342_v59 = vmul.f32 %v5448_v43, %v5442_v23  ;;  %v5450_v24 = vpop.eup %5449 }
 0x38e   : > { %v4264_v63 = vsel %vm847_vm2, %v5450_v24, 0.0  ;;  %v5452_v12 = vpop.eup %5451 }
 0x38f   : > { %v4343_v46 = vsel %vm847_vm2, %v4342_v59, 0.0  ;;  %v4265_v26 = vrot.slane %v4264_v63, 4  ;;  %v4285_v33 = vsel %vm847_vm2, %v5452_v12, 0.0 }
 0x390   : > { %v4286_v8 = vrot.slane %v4285_v33, 4 }
 0x391   : > { %v4266_v7 = vadd.f32 %v4265_v26, %v4264_v63 }
 0x392   : > { %1639 = vperm.xlu0 %5336, %v1607_v54   ;;  %v4287_v58 = vadd.f32 %v4286_v8, %v4285_v33  ;;  %v4242_v54 = vmul.f32 1.442695, %v4230_v22 }
 0x393   : > { %v4267_v32 = vrot.slane %v4266_v7, 2 }
 0x394   : > { %v4288_v45 = vrot.slane %v4287_v58, 2 }
 0x395   : > { %v4268_v23 = vadd.f32 %v4267_v32, %v4266_v7 }
 0x396   : > { %v4289_v42 = vadd.f32 %v4288_v45, %v4287_v58 }
 0x397   : > { %v4269_v37 = vrot.slane %v4268_v23, 1 }
 0x398   : > { %v4290_v35 = vrot.slane %v4289_v42, 1 }
 0x399   : > { %v4270_v28 = vadd.f32 %v4269_v37, %v4268_v23 }
 0x39a   : > { %v4291_v25 = vadd.f32 %v4290_v35, %v4289_v42 }
 0x39b   : > { %5453 = vrcp.f32 %v4270_v28 }
 0x39c   : > { %5455 = vrcp.f32 %v4291_v25 }
 0x39d   : > { %5457 = vpow2.f32 %v4242_v54 }
 0x3a4   : > { %4320 = vadd.xlane.f32.xlu1 %v4319_v48 }
 0x3a5   : > { %v5454_v44 = vpop.eup %5453 }
 0x3a6   : > { %v4322_v10 = vmul.f32 %v5454_v44, %v5450_v24  ;;  %v5456_v2 = vpop.eup %5455  ;;  %v6663_v24 = vld [vmem:[%s6882_s5 + $0x2] ss:$0 sm:$0xff] }
 0x3a7   : > { %v6637_v47 = vpop.xlane.xlu0 %2510  ;;  %v4334_v34 = vmul.f32 %v5456_v2, %v5452_v12  ;;  %v5458_v50 = vpop.eup %5457  ;;  %v6667_v63 = vadd.f32 %v6663_v24, %v6236_v16  ;;  %v6679_v42 = vadd.f32 %v6232_v15, %v6663_v24 }
 0x3a8   : > { %4328 = vadd.xlane.f32.xlu1 %v4327_v11  ;;  %v4323_v53 = vsel %vm847_vm2, %v4322_v10, 0.0  ;;  %v4278_v57 = vsel %vm847_vm2, %v5458_v50, 0.0 }
 0x3a9   : > { %v4335_v62 = vsel %vm847_vm2, %v4334_v34, 0.0  ;;  %v4279_v41 = vrot.slane %v4278_v57, 4 }
 0x3ab   : > { %v4280_v14 = vadd.f32 %v4279_v41, %v4278_v57 }
 0x3ad   : > { %v4281_v11 = vrot.slane %v4280_v14, 2 }
 0x3af   : > { %v4282_v33 = vadd.f32 %v4281_v11, %v4280_v14 }
 0x3b1   : > { %4344 = vadd.xlane.f32.xlu0 %v4343_v46  ;;  %v4214_v46 = vmax.f32 %v4212_v0, %v4213_v4  ;;  %v4283_v8 = vrot.slane %v4282_v33, 1  ;;  %v6690_v0 = vadd.f32 %v6663_v24, %v6241_v18 }
 0x3b3   : > { %v4284_v17 = vadd.f32 %v4283_v8, %v4282_v33 }
 0x3b5   : > { %5459 = vrcp.f32 %v4284_v17 }
 0x3b9   : > { %1644 = vperm.xlu1 %5335, %v1611_v36   ;;  %v4215_v36 = vrot.slane %v4214_v46, 2 }
 0x3ba   : > { %v6640_v55 = vpop.xlane.xlu0 %2506 }
 0x3bd   : > { %1654 = vperm.xlu1 %5335, %v1619_v6   ;;  %v4216_v6 = vmax.f32 %v4214_v46, %v4215_v36 }
 0x3bf   : > { %v4217_v45 = vrot.slane %v4216_v6, 1  ;;  %v5460_v49 = vpop.eup %5459 }
 0x3c0   : > { %v4330_v10 = vmul.f32 %v5460_v49, %v5458_v50 }
 0x3c1   : > { %v4218_v16 = vmax.f32 %v4216_v6, %v4217_v45 }
 0x3c3   : > { %v4232_v28 = vsub.f32 %v6513_v56, %v4218_v16 }
 0x3c5   : > { %v4246_v29 = vmul.f32 1.442695, %v4232_v28 }
 0x3c7   : > { %5461 = vpow2.f32 %v4246_v29 }
 0x3ca   : > { %v6643_v31 = vpop.xlane.xlu0 %2518 }
 0x3ce   : > { %v6645_v21 = vpop.xlane.xlu0 %2514 }
 0x3e1   : > { %4324 = vadd.xlane.f32.xlu1 %v4323_v53  ;;  %v4331_v53 = vsel %vm847_vm2, %v4330_v10, 0.0 }
 0x3e5   : > { %4336 = vadd.xlane.f32.xlu1 %v4335_v62  ;;  %v5462_v62 = vpop.eup %5461 }
 0x3e8   : > { %v2527_v19 = vpop.xlane.xlu1 %2526 }
 0x3e9   : > { %2563 = vperm.xlu0 %5336, %v2527_v19   ;;  %v4292_v19 = vsel %vm847_vm2, %v5462_v62, 0.0 }
 0x3ec   : > { %v2523_v1 = vpop.xlane.xlu1 %2522 }
 0x3ed   : > { %2558 = vperm.xlu0 %5336, %v2523_v1   ;;  %v4293_v1 = vrot.slane %v4292_v19, 4 }
 0x3f0   : > { %v2535_v60 = vpop.xlane.xlu1 %2534 }
 0x3f1   : > { %v6647_v27 = vpop.xlane.xlu0 %3415  ;;  %2573 = vperm.xlu0 %5336, %v2535_v60   ;;  %v4294_v60 = vadd.f32 %v4293_v1, %v4292_v19 }
 0x3f3   : > { %v4295_v57 = vrot.slane %v4294_v60, 2 }
 0x3f4   : > { %v2531_v40 = vpop.xlane.xlu1 %2530 }
 0x3f5   : > { %v6650_v38 = vpop.xlane.xlu0 %3423  ;;  %2568 = vperm.xlu0 %5336, %v2531_v40   ;;  %v4296_v40 = vadd.f32 %v4295_v57, %v4294_v60 }
 0x3f6   : > { %1649 = vperm.xlu1 %5335, %v1615_v61  }
 0x3f7   : > { %v4297_v4 = vrot.slane %v4296_v40, 1 }
 0x3f8   : > { %v6654_v48 = vpop.xlane.xlu1 %3411 }
 0x3f9   : > { %v6656_v51 = vpop.xlane.xlu0 %3431  ;;  %v4298_v33 = vadd.f32 %v4297_v4, %v4296_v40 }
 0x3fa   : > { %1664 = vperm.xlu1 %5335, %v1627_v39  }
 0x3fb   : > { %5463 = vrcp.f32 %v4298_v33 }
 0x3fc   : > { %v3420_v43 = vpop.xlane.xlu1 %3419 }
 0x3fd   : > { %v6658_v59 = vpop.xlane.xlu0 %3427  ;;  %3453 = vperm.xlu0 %5336, %v3420_v43   ;;  %v6695_v43 = vadd.f32 %v6663_v24, %v6245_v20 }
 0x400   : > { %v1635_v12 = vpop.permute.xlu1 %1634 }
 0x401   : > { %v6669_v26 = vpop.xlane.xlu0 %3439  ;;  %v1672_v7 = vmul.f32 %v1635_v12, %v6667_v63 }
 0x403   : > { %v1680_v58 = vsel %vm847_vm2, %v1672_v7, 0.0 }
 0x404   : > { %v1681_v23 = vrot.slane %v1680_v58, 4 }
 0x405   : > { %v6672_v32 = vpop.xlane.xlu0 %3435  ;;  %v5464_v45 = vpop.eup %5463 }
 0x406   : > { %v1682_v37 = vadd.f32 %v1681_v23, %v1680_v58  ;;  %v4338_v23 = vmul.f32 %v5464_v45, %v5462_v62  ;;  %v6943_v62 = vld [vmem:[#allocation24_spill] sm:$0xff] }
 0x407   : > { %v6731_v19 = vadd.f32 %v6943_v62, %v6663_v24  ;;  %v5700_v62 = vmov 0.0|0.0  }
 0x408   : > { %v1683_v9 = vrot.slane %v1682_v37, 2  ;;  %v4339_v20 = vsel %vm847_vm2, %v4338_v23, 0.0  ;;  %5239 = vmatprep.subr.bf16.mxu0 %v5700_v62 }
 0x409   : > { %v6675_v5 = vpop.xlane.xlu0 %4316 }
 0x40a   : > { %v1684_v3 = vadd.f32 %v1683_v9, %v1682_v37 }
 0x40c   : > { %v1685_v2 = vrot.slane %v1684_v3, 1 }
 0x40e   : > { %v1686_v56 = vadd.f32 %v1685_v2, %v1684_v3 }
 0x411   : > { %v1640_v52 = vpop.permute.xlu0 %1639 }
 0x412   : > { %v1673_v35 = vmul.f32 %v1640_v52, %v6679_v42 }
 0x414   : > { %v1687_v39 = vsel %vm847_vm2, %v1673_v35, 0.0  ;;  %v6941_v35 = vld [vmem:[#allocation23_spill] sm:$0xff] }
 0x415   : > { %v1688_v25 = vrot.slane %v1687_v39, 4  ;;  %v6709_v9 = vadd.f32 %v6941_v35, %v6663_v24 }
 0x417   : > { %v1689_v44 = vadd.f32 %v1688_v25, %v1687_v39 }
 0x419   : > { %v1690_v22 = vrot.slane %v1689_v44, 2 }
 0x41b   : > { %v1691_v54 = vadd.f32 %v1690_v22, %v1689_v44 }
 0x41d   : > { %v1692_v15 = vrot.slane %v1691_v54, 1 }
 0x41e   : > { %4332 = vadd.xlane.f32.xlu1 %v4331_v53 }
 0x41f   : > { %v1693_v34 = vadd.f32 %v1692_v15, %v1691_v54 }
 0x421   : > { %v4460_v61 = vsel %vm4459_vm3, %v1693_v34, %v1686_v56 }
 0x42f   : > { %1659 = vperm.xlu1 %5335, %v6632_v30  }
 0x431   : > { %v4321_v50 = vpop.xlane.xlu1 %4320 }
 0x432   : > { %4353 = vperm.xlu0 %5336, %v4321_v50  }
 0x435   : > { %v4329_v41 = vpop.xlane.xlu1 %4328 }
 0x436   : > { %4363 = vperm.xlu0 %5336, %v4329_v41  }
 0x439   : > { %v1645_v14 = vpop.permute.xlu1 %1644 }
 0x43a   : > { %v1674_v11 = vmul.f32 %v1645_v14, %v6690_v0 }
 0x43c   : > { %v1694_v30 = vsel %vm847_vm2, %v1674_v11, 0.0 }
 0x43d   : > { %v1695_v46 = vrot.slane %v1694_v30, 4  ;;  %v1655_v12 = vpop.permute.xlu1 %1654 }
 0x43e   : > { %v1676_v36 = vmul.f32 %v1655_v12, %v6695_v43 }
 0x43f   : > { %v1696_v7 = vadd.f32 %v1695_v46, %v1694_v30 }
 0x440   : > { %v1708_v16 = vsel %vm847_vm2, %v1676_v36, 0.0 }
 0x441   : > { %v1697_v8 = vrot.slane %v1696_v7, 2  ;;  %v1709_v52 = vrot.slane %v1708_v16, 4 }
 0x443   : > { %v1698_v18 = vadd.f32 %v1697_v8, %v1696_v7 }
 0x445   : > { %v1699_v6 = vrot.slane %v1698_v18, 1 }
 0x447   : > { %v1700_v58 = vadd.f32 %v1699_v6, %v1698_v18  ;;  %v6944_v18 = vld [vmem:[#allocation21_spill] sm:$0xff] }
 0x448   : > { %v6741_v6 = vadd.f32 %v6944_v18, %v6663_v24 }
 0x449   : > { %v4462_v17 = vsel %vm4461_vm4, %v1700_v58, %v4460_v61 }
 0x453   : > { %4340 = vadd.xlane.f32.xlu1 %v4339_v20 }
 0x464   : > { %1669 = vperm.xlu1 %5335, %v6634_v13   ;;  %v1710_v13 = vadd.f32 %v1709_v52, %v1708_v16 }
 0x468   : > { %2543 = vperm.xlu1 %5335, %v6637_v47  }
 0x46c   : > { %2538 = vperm.xlu1 %5335, %v6640_v55   ;;  %v6942_v55 = vld [vmem:[#allocation22_spill] sm:$0xff] }
 0x46d   : > { %v6715_v25 = vadd.f32 %v6663_v24, %v6942_v55 }
 0x46e   : > { %v4325_v37 = vpop.xlane.xlu1 %4324 }
 0x46f   : > { %4358 = vperm.xlu0 %5336, %v4325_v37  }
 0x470   : > { %2553 = vperm.xlu1 %5335, %v6643_v31   ;;  %v1711_v31 = vrot.slane %v1710_v13, 2 }
 0x472   : > { %v4337_v28 = vpop.xlane.xlu1 %4336  ;;  %v1712_v22 = vadd.f32 %v1711_v31, %v1710_v13 }
 0x473   : > { %4373 = vperm.xlu0 %5336, %v4337_v28  }
 0x474   : > { %2548 = vperm.xlu1 %5335, %v6645_v21  }
 0x476   : > { %v1650_v39 = vpop.permute.xlu1 %1649 }
 0x477   : > { %v1675_v47 = vmul.f32 %v1650_v39, %v6709_v9 }
 0x478   : > { %3448 = vperm.xlu1 %5335, %v6647_v27   ;;  %v1713_v27 = vrot.slane %v1712_v22, 1 }
 0x479   : > { %v1701_v29 = vsel %vm847_vm2, %v1675_v47, 0.0 }
 0x47a   : > { %v1702_v49 = vrot.slane %v1701_v29, 4  ;;  %v1665_v3 = vpop.permute.xlu1 %1664  ;;  %v1714_v53 = vadd.f32 %v1713_v27, %v1712_v22 }
 0x47b   : > { %v1678_v21 = vmul.f32 %v1665_v3, %v6715_v25 }
 0x47c   : > { %v1703_v44 = vadd.f32 %v1702_v49, %v1701_v29  ;;  %3443 = vperm.xlu1 %5335, %v6654_v48  }
 0x47d   : > { %v1722_v48 = vsel %vm847_vm2, %v1678_v21, 0.0 }
 0x47e   : > { %v1704_v10 = vrot.slane %v1703_v44, 2  ;;  %v1723_v61 = vrot.slane %v1722_v48, 4 }
 0x480   : > { %v1705_v2 = vadd.f32 %v1704_v10, %v1703_v44  ;;  %3458 = vperm.xlu1 %5335, %v6650_v38   ;;  %v4345_v38 = vpop.xlane.xlu0 %4344  ;;  %v1724_v1 = vadd.f32 %v1723_v61, %v1722_v48 }
 0x482   : > { %v1706_v54 = vrot.slane %v1705_v2, 1 }
 0x484   : > { %v1707_v15 = vadd.f32 %v1706_v54, %v1705_v2  ;;  %3468 = vperm.xlu1 %5335, %v6656_v51   ;;  %v2564_v33 = vpop.permute.xlu0 %2563 }
 0x485   : > { %v2581_v58 = vmul.f32 %v2564_v33, %v6731_v19 }
 0x486   : > { %v4464_v56 = vsel %vm4463_vm5, %v1707_v15, %v4462_v17 }
 0x487   : > { %v4466_v34 = vsel %vm4465_vm6, %v1714_v53, %v4464_v56  ;;  %v2620_v52 = vsel %vm2584_vm9, %v2581_v58, 0.0  ;;  %v4527_v56 = vld [vmem:[#allocation10] sm:$0xff] }
 0x488   : > { %3463 = vperm.xlu1 %5335, %v6658_v59   ;;  %v2559_v36 = vpop.permute.xlu0 %2558  ;;  %v2621_v31 = vrot.slane %v2620_v52, 4 }
 0x489   : > { %v2580_v17 = vmul.f32 %v2559_v36, %v6695_v43 }
 0x48a   : > { %v2622_v48 = vadd.f32 %v2621_v31, %v2620_v52 }
 0x48b   : > { %v2613_v28 = vsel %vm2584_vm9, %v2580_v17, 0.0 }
 0x48c   : > { %3473 = vperm.xlu1 %5335, %v6672_v32   ;;  %v1725_v32 = vrot.slane %v1724_v1, 2  ;;  %v2574_v7 = vpop.permute.xlu0 %2573  ;;  %v2614_v29 = vrot.slane %v2613_v28, 4 }
 0x48d   : > { %v2583_v20 = vmul.f32 %v2574_v7, %v6741_v6 }
 0x48e   : > { %v1726_v50 = vadd.f32 %v1725_v32, %v1724_v1  ;;  %v2615_v61 = vadd.f32 %v2614_v29, %v2613_v28 }
 0x48f   : > { %v2634_v47 = vsel %vm2584_vm9, %v2583_v20, 0.0 }
 0x490   : > { %4348 = vperm.xlu1 %5335, %v6675_v5   ;;  %v1727_v14 = vrot.slane %v1726_v50, 1  ;;  %v2569_v16 = vpop.permute.xlu0 %2568  ;;  %v2635_v10 = vrot.slane %v2634_v47, 4  ;;  %v2616_v36 = vrot.slane %v2615_v61, 2 }
 0x491   : > { %v2582_v13 = vmul.f32 %v2569_v16, %v6715_v25 }
 0x492   : > { %v1728_v30 = vadd.f32 %v1727_v14, %v1726_v50  ;;  %v2636_v50 = vadd.f32 %v2635_v10, %v2634_v47 }
 0x493   : > { %v2627_v2 = vsel %vm2584_vm9, %v2582_v13, 0.0  ;;  %v2617_v13 = vadd.f32 %v2616_v36, %v2615_v61 }
 0x494   : > { %3478 = vperm.xlu1 %5335, %v6669_v26   ;;  %v3454_v49 = vpop.permute.xlu0 %3453  ;;  %v2637_v17 = vrot.slane %v2636_v50, 2 }
 0x495   : > { %v3483_v54 = vmul.f32 %v3454_v49, %v6690_v0 }
 0x496   : > { %v2638_v31 = vadd.f32 %v2637_v17, %v2636_v50 }
 0x497   : > { %v3504_v14 = vsel %vm3489_vm10, %v3483_v54, 0.0  ;;  %v2618_v54 = vrot.slane %v2617_v13, 1 }
 0x498   : > { %4383 = vperm.xlu1 %5335, %v4345_v38   ;;  %v4529_v38 = vld [vmem:[#allocation10 + $0x10] sm:$0xff] }
 0x4ab   : > { %v4333_v51 = vpop.xlane.xlu1 %4332 }
 0x4ac   : > { %4368 = vperm.xlu0 %5336, %v4333_v51  }
 0x4af   : > { %v1660_v60 = vpop.permute.xlu1 %1659 }
 0x4b0   : > { %v1677_v59 = vmul.f32 %v1660_v60, %v6731_v19  ;;  %v4530_v60 = vld [vmem:[#allocation10 + $0x18] sm:$0xff] }
 0x4b1   : > { %v4354_v16 = vpop.permute.xlu0 %4353 }
 0x4b2   : > { %v1715_v5 = vsel %vm847_vm2, %v1677_v59, 0.0  ;;  %v2628_v59 = vrot.slane %v2627_v2, 4 }
 0x4b3   : > { %v1716_v57 = vrot.slane %v1715_v5, 4 }
 0x4b4   : > { %v2629_v7 = vadd.f32 %v2628_v59, %v2627_v2 }
 0x4b5   : > { %v1717_v26 = vadd.f32 %v1716_v57, %v1715_v5 }
 0x4b7   : > { %v1718_v41 = vrot.slane %v1717_v26, 2 }
 0x4b9   : > { %v1719_v40 = vadd.f32 %v1718_v41, %v1717_v26 }
 0x4bb   : > { %v1720_v4 = vrot.slane %v1719_v40, 1 }
 0x4bd   : > { %v1721_v11 = vadd.f32 %v1720_v4, %v1719_v40  ;;  %v5243_v40 = vpack.c.bf16 %v4530_v60, %v4529_v38 }
 0x4bf   : > { %v4468_v46 = vsel %vm4467_vm7, %v1721_v11, %v4466_v34  ;;  %v4528_v34 = vld [vmem:[#allocation10 + $0x8] sm:$0xff] }
 0x4c0   : > { %v6737_v12 = vsel %vm4469_vm8, %v1728_v30, %v4468_v46  ;;  %v5240_v1 = vpack.c.bf16 %v4528_v34, %v4527_v56  ;;  %v2623_v46 = vrot.slane %v2622_v48, 2 }
 0x4c2   : > { %5241 = vmatpush3.bf16.msra.mxu0 %v5240_v1  ;;  %v2624_v28 = vadd.f32 %v2623_v46, %v2622_v48  ;;  %v2639_v48 = vrot.slane %v2638_v31, 1 }
 0x4c3   : > { %5242 = vmatprep.subr.bf16.mxu0 %v5700_v62 }
 0x4c4   : > { %v2625_v10 = vrot.slane %v2624_v28, 1 }
 0x4c6   : > { %5244 = vmatpush3.bf16.msra.mxu0 %v5243_v40  ;;  %v2626_v60 = vadd.f32 %v2625_v10, %v2624_v28 }
 0x4e0   : > { %v4341_v8 = vpop.xlane.xlu1 %4340 }
 0x4e1   : > { %4378 = vperm.xlu0 %5336, %v4341_v8  }
 0x4e4   : > { %v1670_v45 = vpop.permute.xlu1 %1669 }
 0x4e5   : > { %v1679_v23 = vmul.f32 %v1670_v45, %v6741_v6  ;;  %v3505_v45 = vrot.slane %v3504_v14, 4 }
 0x4e7   : > { %v1729_v37 = vsel %vm847_vm2, %v1679_v23, 0.0  ;;  %v3506_v29 = vadd.f32 %v3505_v45, %v3504_v14 }
 0x4e8   : > { %v1730_v35 = vrot.slane %v1729_v37, 4  ;;  %v2544_v24 = vpop.permute.xlu1 %2543 }
 0x4e9   : > { %v2577_v39 = vmul.f32 %v2544_v24, %v6679_v42  ;;  %v3507_v61 = vrot.slane %v3506_v29, 2 }
 0x4ea   : > { %v1731_v55 = vadd.f32 %v1730_v35, %v1729_v37 }
 0x4eb   : > { %v2592_v3 = vsel %vm2584_vm9, %v2577_v39, 0.0  ;;  %v2630_v39 = vrot.slane %v2629_v7, 2 }
 0x4ec   : > { %v1732_v21 = vrot.slane %v1731_v55, 2  ;;  %v2593_v44 = vrot.slane %v2592_v3, 4  ;;  %v2539_v22 = vpop.permute.xlu1 %2538 }
 0x4ed   : > { %v2576_v27 = vmul.f32 %v2539_v22, %v6667_v63 }
 0x4ee   : > { %v1733_v15 = vadd.f32 %v1732_v21, %v1731_v55  ;;  %v2594_v53 = vadd.f32 %v2593_v44, %v2592_v3 }
 0x4ef   : > { %v2585_v51 = vsel %vm2584_vm9, %v2576_v27, 0.0 }
 0x4f0   : > { %v1734_v32 = vrot.slane %v1733_v15, 1  ;;  %v2595_v5 = vrot.slane %v2594_v53, 2  ;;  %v2586_v57 = vrot.slane %v2585_v51, 4  ;;  %v2554_v26 = vpop.permute.xlu1 %2553 }
 0x4f1   : > { %v2579_v41 = vmul.f32 %v2554_v26, %v6709_v9 }
 0x4f2   : > { %v1735_v4 = vadd.f32 %v1734_v32, %v1733_v15  ;;  %v2596_v11 = vadd.f32 %v2595_v5, %v2594_v53  ;;  %v2587_v30 = vadd.f32 %v2586_v57, %v2585_v51  ;;  %v2631_v15 = vadd.f32 %v2630_v39, %v2629_v7  ;;  %v4364_v53 = vpop.permute.xlu0 %4363 }
 0x4f3   : > { %v2606_v33 = vsel %vm2584_vm9, %v2579_v41, 0.0  ;;  %v2619_v57 = vadd.f32 %v2618_v54, %v2617_v13  ;;  %v4389_v36 = vmul.f32 %v4364_v53, %v6709_v9 }
 0x4f4   : > { %v6763_v8 = vsel %vm4471_vm11, %v1735_v4, %v6737_v12  ;;  %v2588_v18 = vrot.slane %v2587_v30, 2  ;;  %v2549_v58 = vpop.permute.xlu1 %2548  ;;  %v2607_v23 = vrot.slane %v2606_v33, 4  ;;  %v2597_v37 = vrot.slane %v2596_v11, 1 }
 0x4f5   : > { %v2578_v20 = vmul.f32 %v2549_v58, %v6690_v0  ;;  %v2632_v26 = vrot.slane %v2631_v15, 1  ;;  %v2640_v4 = vadd.f32 %v2639_v48, %v2638_v31 }
 0x4f6   : > { %v2589_v52 = vadd.f32 %v2588_v18, %v2587_v30  ;;  %v2608_v35 = vadd.f32 %v2607_v23, %v2606_v33  ;;  %v2598_v21 = vadd.f32 %v2597_v37, %v2596_v11  ;;  %v4359_v50 = vpop.permute.xlu0 %4358  ;;  %v3508_v11 = vadd.f32 %v3507_v61, %v3506_v29 }
 0x4f7   : > { %v2599_v24 = vsel %vm2584_vm9, %v2578_v20, 0.0  ;;  %v4387_v33 = vmul.f32 %v4354_v16, %v6679_v42  ;;  %v4388_v58 = vmul.f32 %v4359_v50, %v6690_v0  ;;  %v2633_v20 = vadd.f32 %v2632_v26, %v2631_v15 }
 0x4f8   : > { %v2590_v47 = vrot.slane %v2589_v52, 1  ;;  %v2600_v12 = vrot.slane %v2599_v24, 4  ;;  %v3449_v55 = vpop.permute.xlu1 %3448  ;;  %v2609_v49 = vrot.slane %v2608_v35, 2 }
 0x4f9   : > { %v3482_v3 = vmul.f32 %v3449_v55, %v6679_v42  ;;  %v4402_v16 = vsel %vm4394_vm12, %v4387_v33, 0.0  ;;  %v4409_v55 = vsel %vm4394_vm12, %v4388_v58, 0.0 }
 0x4fa   : > { %v2591_v44 = vadd.f32 %v2590_v47, %v2589_v52  ;;  %v2601_v22 = vadd.f32 %v2600_v12, %v2599_v24  ;;  %v2610_v2 = vadd.f32 %v2609_v49, %v2608_v35  ;;  %v3509_v24 = vrot.slane %v3508_v11, 1 }
 0x4fb   : > { %v3497_v27 = vsel %vm3489_vm10, %v3482_v3, 0.0  ;;  %v4416_v12 = vsel %vm4394_vm12, %v4389_v36, 0.0  ;;  %v4403_v10 = vrot.slane %v4402_v16, 4  ;;  %v4410_v61 = vrot.slane %v4409_v55, 4 }
 0x4fc   : > { %v4482_v56 = vsel %vm4459_vm3, %v2598_v21, %v2591_v44  ;;  %v2602_v34 = vrot.slane %v2601_v22, 2  ;;  %v3444_v38 = vpop.permute.xlu1 %3443  ;;  %v3498_v51 = vrot.slane %v3497_v27, 4  ;;  %v2611_v59 = vrot.slane %v2610_v2, 1 }
 0x4fd   : > { %v3481_v62 = vmul.f32 %v3444_v38, %v6667_v63  ;;  %v3510_v38 = vadd.f32 %v3509_v24, %v3508_v11  ;;  %v4417_v48 = vrot.slane %v4416_v12, 4  ;;  %v4404_v26 = vadd.f32 %v4403_v10, %v4402_v16 }
 0x4fe   : > { %v2603_v1 = vadd.f32 %v2602_v34, %v2601_v22  ;;  %v3499_v32 = vadd.f32 %v3498_v51, %v3497_v27  ;;  %v2612_v17 = vadd.f32 %v2611_v59, %v2610_v2 }
 0x4ff   : > { %v3490_v5 = vsel %vm3489_vm10, %v3481_v62, 0.0 }
 0x500   : > { %v2604_v41 = vrot.slane %v2603_v1, 1  ;;  %v3491_v40 = vrot.slane %v3490_v5, 4  ;;  %v3459_v14 = vpop.permute.xlu1 %3458  ;;  %v3500_v30 = vrot.slane %v3499_v32, 2 }
 0x501   : > { %v3484_v46 = vmul.f32 %v3459_v14, %v6709_v9 }
 0x502   : > { %v2605_v7 = vadd.f32 %v2604_v41, %v2603_v1  ;;  %v3492_v18 = vadd.f32 %v3491_v40, %v3490_v5  ;;  %v3501_v45 = vadd.f32 %v3500_v30, %v3499_v32  ;;  %v4411_v40 = vadd.f32 %v4410_v61, %v4409_v55 }
 0x503   : > { %v3511_v23 = vsel %vm3489_vm10, %v3484_v46, 0.0 }
 0x504   : > { %v4483_v37 = vsel %vm4461_vm4, %v2605_v7, %v4482_v56  ;;  %v3493_v52 = vrot.slane %v3492_v18, 2  ;;  %v3512_v28 = vrot.slane %v3511_v23, 4  ;;  %v3469_v35 = vpop.permute.xlu1 %3468  ;;  %v3502_v42 = vrot.slane %v3501_v45, 1 }
 0x505   : > { %v4484_v13 = vsel %vm4463_vm5, %v2612_v17, %v4483_v37  ;;  %v3486_v9 = vmul.f32 %v3469_v35, %v6731_v19  ;;  %v4405_v7 = vrot.slane %v4404_v26, 2 }
 0x506   : > { %v4485_v0 = vsel %vm4465_vm6, %v2619_v57, %v4484_v13  ;;  %v3494_v39 = vadd.f32 %v3493_v52, %v3492_v18  ;;  %v3513_v47 = vadd.f32 %v3512_v28, %v3511_v23  ;;  %v3503_v2 = vadd.f32 %v3502_v42, %v3501_v45 }
 0x507   : > { %v3525_v31 = vsel %vm3489_vm10, %v3486_v9, 0.0  ;;  %v4486_v29 = vsel %vm4467_vm7, %v2626_v60, %v4485_v0  ;;  %v4412_v45 = vrot.slane %v4411_v40, 2  ;;  %v4406_v13 = vadd.f32 %v4405_v7, %v4404_v26 }
 0x508   : > { %v3495_v49 = vrot.slane %v3494_v39, 1  ;;  %v3514_v3 = vrot.slane %v3513_v47, 2  ;;  %v3526_v21 = vrot.slane %v3525_v31, 4  ;;  %v3464_v44 = vpop.permute.xlu1 %3463  ;;  %v4487_v22 = vsel %vm4469_vm8, %v2633_v20, %v4486_v29 }
 0x509   : > { %v3485_v27 = vmul.f32 %v3464_v44, %v6695_v43  ;;  %v4488_v54 = vsel %vm4471_vm11, %v2640_v4, %v4487_v22 }
 0x50a   : > { %v3496_v15 = vadd.f32 %v3495_v49, %v3494_v39  ;;  %v3515_v53 = vadd.f32 %v3514_v3, %v3513_v47  ;;  %v3527_v56 = vadd.f32 %v3526_v21, %v3525_v31  ;;  %v6791_v34 = vsel %vm847_vm2, %v6763_v8, %v4488_v54 }
 0x50b   : > { %v3518_v51 = vsel %vm3489_vm10, %v3485_v27, 0.0  ;;  %v4418_v8 = vadd.f32 %v4417_v48, %v4416_v12  ;;  %v4407_v3 = vrot.slane %v4406_v13, 1  ;;  %v4374_v27 = vpop.permute.xlu0 %4373 }
 0x50c   : > { %v4498_v62 = vsel %vm4459_vm3, %v3503_v2, %v3496_v15  ;;  %v3516_v1 = vrot.slane %v3515_v53, 1  ;;  %v3528_v60 = vrot.slane %v3527_v56, 2  ;;  %v3519_v59 = vrot.slane %v3518_v51, 4  ;;  %v3474_v32 = vpop.permute.xlu1 %3473 }
 0x50d   : > { %v4499_v5 = vsel %vm4461_vm4, %v3510_v38, %v4498_v62  ;;  %v3487_v57 = vmul.f32 %v3474_v32, %v6715_v25  ;;  %v4419_v17 = vrot.slane %v4418_v8, 2 }
 0x50e   : > { %v3517_v50 = vadd.f32 %v3516_v1, %v3515_v53  ;;  %v3520_v41 = vadd.f32 %v3519_v59, %v3518_v51  ;;  %v3529_v14 = vadd.f32 %v3528_v60, %v3527_v56  ;;  %v4408_v56 = vadd.f32 %v4407_v3, %v4406_v13 }
 0x50f   : > { %v3532_v4 = vsel %vm3489_vm10, %v3487_v57, 0.0  ;;  %v4420_v0 = vadd.f32 %v4419_v17, %v4418_v8  ;;  %v4391_v51 = vmul.f32 %v4374_v27, %v6731_v19 }
 0x510   : > { %v4500_v11 = vsel %vm4463_vm5, %v3517_v50, %v4499_v5  ;;  %v3521_v30 = vrot.slane %v3520_v41, 2  ;;  %v3533_v46 = vrot.slane %v3532_v4, 4  ;;  %v4349_v33 = vpop.permute.xlu1 %4348  ;;  %v3530_v23 = vrot.slane %v3529_v14, 1 }
 0x511   : > { %v4386_v36 = vmul.f32 %v4349_v33, %v6667_v63  ;;  %v4413_v63 = vadd.f32 %v4412_v45, %v4411_v40  ;;  %v4421_v2 = vrot.slane %v4420_v0, 1  ;;  %v4430_v57 = vsel %vm4394_vm12, %v4391_v51, 0.0 }
 0x512   : > { %v3522_v18 = vadd.f32 %v3521_v30, %v3520_v41  ;;  %v3534_v58 = vadd.f32 %v3533_v46, %v3532_v4  ;;  %v3531_v39 = vadd.f32 %v3530_v23, %v3529_v14  ;;  %v4431_v41 = vrot.slane %v4430_v57, 4 }
 0x513   : > { %v4395_v20 = vsel %vm4394_vm12, %v4386_v36, 0.0  ;;  %v4414_v10 = vrot.slane %v4413_v63, 1  ;;  %v4422_v62 = vadd.f32 %v4421_v2, %v4420_v0 }
 0x514   : > { %v3523_v37 = vrot.slane %v3522_v18, 1  ;;  %v3535_v52 = vrot.slane %v3534_v58, 2  ;;  %v4396_v28 = vrot.slane %v4395_v20, 4  ;;  %v3479_v35 = vpop.permute.xlu1 %3478  ;;  %v4432_v8 = vadd.f32 %v4431_v41, %v4430_v57 }
 0x515   : > { %v3488_v24 = vmul.f32 %v3479_v35, %v6741_v6  ;;  %v4415_v61 = vadd.f32 %v4414_v10, %v4413_v63 }
 0x516   : > { %v3524_v42 = vadd.f32 %v3523_v37, %v3522_v18  ;;  %v3536_v9 = vadd.f32 %v3535_v52, %v3534_v58  ;;  %v4397_v16 = vadd.f32 %v4396_v28, %v4395_v20  ;;  %v4433_v14 = vrot.slane %v4432_v8, 2 }
 0x517   : > { %v3539_v47 = vsel %vm3489_vm10, %v3488_v24, 0.0 }
 0x518   : > { %v4501_v12 = vsel %vm4465_vm6, %v3524_v42, %v4500_v11  ;;  %v3537_v55 = vrot.slane %v3536_v9, 1  ;;  %v4398_v31 = vrot.slane %v4397_v16, 2  ;;  %v3540_v29 = vrot.slane %v3539_v47, 4  ;;  %v4384_v23 = vpop.permute.xlu1 %4383 }
 0x519   : > { %v4502_v49 = vsel %vm4467_vm7, %v3531_v39, %v4501_v12  ;;  %v4434_v46 = vadd.f32 %v4433_v14, %v4432_v8  ;;  %v4393_v20 = vmul.f32 %v4384_v23, %v6741_v6 }
 0x51a   : > { %v3538_v21 = vadd.f32 %v3537_v55, %v3536_v9  ;;  %v4399_v44 = vadd.f32 %v4398_v31, %v4397_v16  ;;  %v3541_v22 = vadd.f32 %v3540_v29, %v3539_v47  ;;  %v4870_v29 = vld [vmem:[%s6883_s6] ss:$0 sm:$0xff] }
 0x51b   : > { %v4435_v7 = vrot.slane %v4434_v46, 1 }
 0x51c   : > { %v4503_v54 = vsel %vm4469_vm8, %v3538_v21, %v4502_v49  ;;  %v4400_v15 = vrot.slane %v4399_v44, 1  ;;  %v3542_v53 = vrot.slane %v3541_v22, 2 }
 0x51d   : > { %v4436_v17 = vadd.f32 %v4435_v7, %v4434_v46 }
 0x51e   : > { %v4401_v38 = vadd.f32 %v4400_v15, %v4399_v44  ;;  %v3543_v48 = vadd.f32 %v3542_v53, %v3541_v22 }
 0x520   : > { %v4514_v1 = vsel %vm4459_vm3, %v4408_v56, %v4401_v38  ;;  %v3544_v60 = vrot.slane %v3543_v48, 1 }
 0x521   : > { %v4515_v59 = vsel %vm4461_vm4, %v4415_v61, %v4514_v1 }
 0x522   : > { %v3545_v32 = vadd.f32 %v3544_v60, %v3543_v48  ;;  %v4516_v5 = vsel %vm4463_vm5, %v4422_v62, %v4515_v59 }
 0x524   : > { %v4504_v26 = vsel %vm4471_vm11, %v3545_v32, %v4503_v54 }
 0x525   : > { %v4524_v50 = vsel %vm4523_vm13, %v6791_v34, %v4504_v26 }
 0x52b   : > { %v4369_v40 = vpop.permute.xlu0 %4368 }
 0x52c   : > { %v4390_v19 = vmul.f32 %v4369_v40, %v6695_v43  ;;  %v4444_v43 = vsel %vm4394_vm12, %v4393_v20, 0.0 }
 0x52d   : > { %v4445_v37 = vrot.slane %v4444_v43, 4 }
 0x52e   : > { %v4423_v4 = vsel %vm4394_vm12, %v4390_v19, 0.0 }
 0x52f   : > { %v4424_v11 = vrot.slane %v4423_v4, 4  ;;  %v4446_v52 = vadd.f32 %v4445_v37, %v4444_v43 }
 0x531   : > { %v4425_v30 = vadd.f32 %v4424_v11, %v4423_v4  ;;  %v4447_v24 = vrot.slane %v4446_v52, 2 }
 0x533   : > { %v4426_v33 = vrot.slane %v4425_v30, 2  ;;  %v4448_v16 = vadd.f32 %v4447_v24, %v4446_v52 }
 0x535   : > { %v4427_v36 = vadd.f32 %v4426_v33, %v4425_v30  ;;  %v4449_v39 = vrot.slane %v4448_v16, 1 }
 0x537   : > { %v4428_v18 = vrot.slane %v4427_v36, 1  ;;  %v4450_v12 = vadd.f32 %v4449_v39, %v4448_v16 }
 0x539   : > { %v4429_v58 = vadd.f32 %v4428_v18, %v4427_v36 }
 0x53b   : > { %v4517_v45 = vsel %vm4465_vm6, %v4429_v58, %v4516_v5 }
 0x53c   : > { %v4518_v34 = vsel %vm4467_vm7, %v4436_v17, %v4517_v45 }
 0x560   : > { %v4379_v28 = vpop.permute.xlu0 %4378 }
 0x561   : > { %v4392_v35 = vmul.f32 %v4379_v28, %v6715_v25 }
 0x563   : > { %v4437_v13 = vsel %vm4394_vm12, %v4392_v35, 0.0 }
 0x564   : > { %v4438_v42 = vrot.slane %v4437_v13, 4 }
 0x566   : > { %v4439_v9 = vadd.f32 %v4438_v42, %v4437_v13 }
 0x568   : > { %v4440_v0 = vrot.slane %v4439_v9, 2 }
 0x56a   : > { %v4441_v63 = vadd.f32 %v4440_v0, %v4439_v9 }
 0x56c   : > { %v4442_v47 = vrot.slane %v4441_v63, 1 }
 0x56e   : > { %v4443_v6 = vadd.f32 %v4442_v47, %v4441_v63 }
 0x570   : > { %v4519_v55 = vsel %vm4469_vm8, %v4443_v6, %v4518_v34 }
 0x571   : > { %v4520_v25 = vsel %vm4471_vm11, %v4450_v12, %v4519_v55 }
 0x572   : > { %v4526_v31 = vsel %vm4525_vm14, %v4524_v50, %v4520_v25 }
 0x573   : > { %5213 = vmatmul.mubr.msk.f32.vlgmr.msra.gmra.mrb[42].mxu0 %vm423_vm0, %v4526_v31 }
 0x646   : > { %v4607_v49 = vpop.f32.mrb[42].mxu0 }
 0x647   : > { %v4608_v3 = vadd.f32 %v4870_v29, %v4607_v49  ;;  %v5214_v21 = vpop.f32.mrb[43].mxu0 }
 0x649   : > { %4611 = vst.msk [vmem:[%s402_s30] sm:$0xff] %vm423_vm0, %v4608_v3 }
 0x64a   : > { %5624 = shalt.err (!%p5621_p1)
}
 0x64b   : > { %s5625_s21 = scalar_lea.hbm %s6832_s15, 128  ;;  %s5629_s18 = scalar_lea.hbm %s6884_s7, 256 }
 0x64c   : > { %p5626_p5 = scmp.ne.s32.totalorder %s6832_s15, %s5625_s21  ;;  %p5630_p4 = scmp.lt.u32.totalorder %s6832_s15, %s6884_s7 }
 0x64d   : > { %p5631_p8 = scmp.lt.u32.totalorder %s5629_s18, %s5625_s21  ;;  %p5633_p3 = scmp.lt.u32.totalorder %s5625_s21, %s6832_s15 }
 0x64e   : > { %p5627_p11 = pnand %p5626_p5, %p6945_p7 }
 0x64f   : > { %p5632_p13 = por %p5631_p8, %p5630_p4 }
 0x650   : > { %p5628_p12 = pneg %p5627_p11 }
 0x651   : > { %p5634_p0 = por %p5633_p3, %p5632_p13 }
 0x653   : > { %p5635_p6 = pnand %p5634_p0, %p5628_p12 }
 0x655   : > { %5638 = shalt.err (!%p5635_p6)
}
 0x656   : > { %5263 = dma.vmem_to_hbm [thread:$0]  (%p6945_p7), %s6834_s27, 128, %s6832_s15, %s4613_s11  }
 0x657 PF: > { %s6946_s16 = sld [smem:[#allocation16_spill]]  ;;  %s6947_s19 = sld [smem:[#allocation20_spill]] }
 0x658   : > { %s6948_s20 = sld [smem:[#allocation17_spill]] }
 0x65d   : > { %s4638_s9 = sand.u32 1, %s6946_s16   ;;  %p6949_p2 = scmp.ne.s32.totalorder %s6947_s19, 0 }
 0x65e   : > { %p6950_p9 = scmp.ge.s32.totalorder %s6948_s20, 2  ;;  %s4639_s1 = scalar_lea.sflag [#allocation4], %s4638_s9 }
 0x660   : > { %p5283_p10 = pnand %p6950_p9, %p6949_p2 }
 0x662   : > { %5668 = dma.done.wait (!%p5283_p10), %s4639_s1, 128  }
 0x663   : > { %5670 = vsyncadd (!%p5283_p10), %s4639_s1, 4294967168  ;;  %s6951_s27 = sld [smem:[#allocation18_spill]]  ;;  %s6952_s3 = sld [smem:[#allocation19_spill]] }
 0x664   : > { %s6953_s24 = smov %s5677_s25  ;;  %s6954_s25 = smov %s5681_s26 }
 0x669   : > { %p24_p1 = scmp.ge.s32.totalorder %s6951_s27, 4   ;;  %s6955_s26 = smov %s6952_s3 }
 0x66b   :  { %26 = sbr.rel (!%p24_p1) target bundleno = 11 (0xb), region = 127 }
 0x672   :  { %4644 = vsyncpa [#allocation3], 1 }
 0x673   :  { %4646 = vsyncpa [#allocation3 + $0x1], 1 }
 0x674   :  { %4647 = vsyncpa [#allocation6], 1 }
 0x675   :  { %4649 = vsyncpa [#allocation6 + $0x1], 1 }
 0x676   :  { %4650 = vsyncpa [#allocation9], 1 }
 0x677   :  { %4651 = vsyncpa [#allocation4], 1 }
 0x678   :  { %4653 = vsyncpa [#allocation4 + $0x1], 1 }

</bundles_post_ra>
